<compile_context>
chip_gen: v7x
topology: tpu7x:2x2x1
jax: 0.10.0
libtpu: 0.0.40
codegen_flags: <defaults>
</compile_context>

<pallas_src>
import functools

import jax
import jax.numpy as jnp
from jax import lax
from jax.experimental import pallas as pl
from jax.experimental.pallas import tpu as pltpu


def _bottleneck_kernel(*refs, NB, H, W, Cin, Cmid, Cout, stride,
                       has_downsample, conv2_accum):
    idx = 0
    x_ref = refs[idx]; idx += 1
    if has_downsample and stride > 1:
        xds_ref = refs[idx]; idx += 1
    else:
        xds_ref = None
    w1_ref, b1_ref, w2_ref, b2_ref, w3_ref, b3_ref = refs[idx:idx + 6]
    idx += 6
    if has_downsample:
        wd_ref, bd_ref = refs[idx:idx + 2]
        idx += 2
    else:
        wd_ref = bd_ref = None
    o_ref, pad_ref = refs[idx], refs[idx + 1]

    Ho = (H + 2 - 3) // stride + 1
    Wo = (W + 2 - 3) // stride + 1
    Mo = NB * Ho * Wo

    # Zero only the 1-px border of the bf16 padded scratch (the interior is
    # fully overwritten every step).  Done every step so batch-axis sharding
    # across TensorCores stays safe.
    zrow = jnp.zeros((NB, 1, W + 2, Cmid), jnp.bfloat16)
    zcol = jnp.zeros((NB, H, 1, Cmid), jnp.bfloat16)
    pad_ref[:, 0:1, :, :] = zrow
    pad_ref[:, H + 1:H + 2, :, :] = zrow
    pad_ref[:, 1:H + 1, 0:1, :] = zcol
    pad_ref[:, 1:H + 1, W + 1:W + 2, :] = zcol

    x2d = x_ref[...]                                   # (NB*H*W, Cin) bf16

    # ---- conv1 (1x1, BN scale folded in) + shift + relu ------------------
    t1 = jnp.dot(x2d, w1_ref[...], preferred_element_type=jnp.float32)
    t1 = jnp.maximum(t1 + b1_ref[...], 0.0)            # (M, Cmid) f32

    # ---- conv2 (3x3, pad=1, stride=s) + shift + relu ----------------------
    pad_ref[:, 1:H + 1, 1:W + 1, :] = (
        t1.astype(jnp.bfloat16).reshape(NB, H, W, Cmid))

    def tap(ky, kx):
        if stride == 1:
            patch = pad_ref[:, ky:ky + Ho, kx:kx + Wo, :]
        else:
            # TODO(synk): stride>1 conv2 path (strided ref reads) is
            # implemented but not exercised by the demo below.
            patch = pad_ref[:, pl.ds(ky, Ho, stride),
                            pl.ds(kx, Wo, stride), :]
        return patch.reshape(Mo, Cmid)

    if conv2_accum:
        # 9 accumulating matmuls: avoids materializing the (Mo, 9*Cmid)
        # im2col buffer; preferred once Cmid >= the MXU K dimension.
        acc = None
        t = 0
        for ky in range(3):
            for kx in range(3):
                part = jnp.dot(tap(ky, kx),
                               w2_ref[t * Cmid:(t + 1) * Cmid, :],
                               preferred_element_type=jnp.float32)
                acc = part if acc is None else acc + part
                t += 1
        t2 = jnp.maximum(acc + b2_ref[...], 0.0)        # (Mo, Cmid) f32
    else:
        patches = jnp.concatenate(
            [tap(ky, kx) for ky in range(3) for kx in range(3)], axis=-1)
        t2 = jnp.dot(patches, w2_ref[...],
                     preferred_element_type=jnp.float32)
        t2 = jnp.maximum(t2 + b2_ref[...], 0.0)         # (Mo, Cmid) f32

    # ---- conv3 (1x1) + shift ---------------------------------------------
    y = jnp.dot(t2.astype(jnp.bfloat16), w3_ref[...],
                preferred_element_type=jnp.float32) + b3_ref[...]

    # ---- identity / downsample path ---------------------------------------
    if has_downsample:
        xs = xds_ref[...] if stride > 1 else x2d        # (Mo, Cin) bf16
        ident = jnp.dot(xs, wd_ref[...],
                        preferred_element_type=jnp.float32) + bd_ref[...]
    else:
        ident = x2d.astype(jnp.float32)                 # Cin == Cout, stride 1

    o_ref[...] = jnp.maximum(y + ident, 0.0).astype(o_ref.dtype)


def bottleneck_pallas(x_nchw, p, *, stride, has_downsample, batch_tile=None,
                      conv2_accum=None, single_buffer_weights=True):
    N, Cin, H, W = x_nchw.shape
    Cmid = p["w1"].shape[1]
    Cout = p["w3"].shape[1]
    Ho = (H + 2 - 3) // stride + 1
    Wo = (W + 2 - 3) // stride + 1

    if not has_downsample and (Cin != Cout or stride != 1):
        raise ValueError("identity path requires Cin == Cout and stride == 1")

    if conv2_accum is None:
        # im2col only helps below the MXU K dimension; above it, accumulating
        # matmuls save the (Mo, 9*Cmid) concat buffer.
        conv2_accum = Cmid >= 128

    if batch_tile is None:
        # Aim for >= ~256 matmul rows per grid step, but keep at least 2 grid
        # steps so both v7x TensorCores get work and prologue DMA overlaps.
        batch_tile = max(1, min(N, pl.cdiv(256, H * W)))
        if N >= 2:
            batch_tile = min(batch_tile, N // 2)
        while N % batch_tile:
            batch_tile -= 1
    NB = batch_tile

    # Keep the flattened row counts 8-aligned (sublane) where possible.
    def rows_ok(nb):
        return (nb * H * W) % 8 == 0 and (nb * Ho * Wo) % 8 == 0
    if not rows_ok(NB):
        for nb in range(NB, N + 1):
            if N % nb == 0 and rows_ok(nb):
                NB = nb
                break
        # TODO(synk): ragged row counts (e.g. 7x7 with odd batch) would need
        # the 4-D block layout; not needed for the shapes exercised here.
    grid = (N // NB,)

    # NCHW -> NHWC, bf16 matmul operands, flattened to 2-D in HBM so the
    # kernel never relayouts x / out (wrapper reshape/transpose is free).
    x_nhwc = jnp.transpose(x_nchw, (0, 2, 3, 1)).astype(jnp.bfloat16)
    x2d = x_nhwc.reshape(N * H * W, Cin)
    if has_downsample and stride > 1:
        xds2d = (x_nhwc[:, ::stride, ::stride, :][:, :Ho, :Wo, :]
                 .reshape(N * Ho * Wo, Cin))
    else:
        xds2d = None

    # Fold inference-mode BN scale into the conv weights (f32 math, then
    # bf16); only the per-channel shift + relu remain in-kernel.
    f32 = lambda a: a.astype(jnp.float32)
    w1 = (f32(p["w1"]) * f32(p["s1"])).astype(jnp.bfloat16)
    w2 = (f32(p["w2"]) * f32(p["s2"]).reshape(1, 1, 1, Cmid)).astype(
        jnp.bfloat16).reshape(9 * Cmid, Cmid)            # rows = (ky,kx,cin)
    w3 = (f32(p["w3"]) * f32(p["s3"])).astype(jnp.bfloat16)
    wlist = [(w1, (Cin, Cmid)), (f32(p["b1"]), (1, Cmid)),
             (w2, (9 * Cmid, Cmid)), (f32(p["b2"]), (1, Cmid)),
             (w3, (Cmid, Cout)), (f32(p["b3"]), (1, Cout))]
    if has_downsample:
        wd = (f32(p["wd"]) * f32(p["sd"])).astype(jnp.bfloat16)
        wlist += [(wd, (Cin, Cout)), (f32(p["bd"]), (1, Cout))]

    kernel = functools.partial(
        _bottleneck_kernel, NB=NB, H=H, W=W, Cin=Cin, Cmid=Cmid, Cout=Cout,
        stride=stride, has_downsample=has_downsample, conv2_accum=conv2_accum)

    def run(weight_pipeline_mode):
        def wspec(shape):
            kw = {}
            if weight_pipeline_mode is not None:
                kw["pipeline_mode"] = weight_pipeline_mode
            return pl.BlockSpec(shape, lambda n, _r=len(shape): (0,) * _r,
                                **kw)

        in_specs = [pl.BlockSpec((NB * H * W, Cin), lambda n: (n, 0))]
        args = [x2d]
        if xds2d is not None:
            in_specs.append(pl.BlockSpec((NB * Ho * Wo, Cin),
                                         lambda n: (n, 0)))
            args.append(xds2d)
        for arr, shape in wlist:
            in_specs.append(wspec(shape))
            args.append(arr)

        return pl.pallas_call(
            kernel,
            out_shape=jax.ShapeDtypeStruct((N * Ho * Wo, Cout), jnp.bfloat16),
            grid_spec=pltpu.PrefetchScalarGridSpec(
                num_scalar_prefetch=0,
                grid=grid,
                in_specs=in_specs,
                out_specs=pl.BlockSpec((NB * Ho * Wo, Cout),
                                       lambda n: (n, 0)),
                scratch_shapes=[pltpu.VMEM((NB, H + 2, W + 2, Cmid),
                                           jnp.bfloat16)]),
            compiler_params=pltpu.CompilerParams(
                dimension_semantics=("parallel",),
                vmem_limit_bytes=64 * 1024 * 1024),
        )(*args)

    if single_buffer_weights:
        # Constant-index weight blocks do not need double buffering; halving
        # their footprint matters for the Cmid>=256 stages (v7x 64 MiB VMEM,
        # v5e 16 MiB default scoped limit).  Fall back if this Pallas build
        # does not accept pipeline_mode / Buffered(1).
        try:
            out2d = run(pl.Buffered(1))
        except Exception:
            out2d = run(None)
    else:
        out2d = run(None)

    out = out2d.reshape(N, Ho, Wo, Cout)
    return jnp.transpose(out, (0, 3, 1, 2))              # -> NCHW, bf16


# ------------------------- parameter construction -------------------------
def init_params(key, Cin, Cmid, Cout, has_downsample, eps=1e-5):
    ks = jax.random.split(key, 8)

    def bn_fold(k, c):
        k1, k2, k3, k4 = jax.random.split(k, 4)
        gamma = 1.0 + 0.1 * jax.random.normal(k1, (c,))
        beta = 0.1 * jax.random.normal(k2, (c,))
        mean = 0.1 * jax.random.normal(k3, (c,))
        var = 1.0 + 0.5 * jax.random.uniform(k4, (c,))
        scale = gamma * lax.rsqrt(var + eps)
        shift = beta - mean * scale
        return (scale.reshape(1, c).astype(jnp.float32),
                shift.reshape(1, c).astype(jnp.float32))

    p = {}
    p["w1"] = 0.05 * jax.random.normal(ks[0], (Cin, Cmid), jnp.float32)
    p["w2"] = 0.05 * jax.random.normal(ks[1], (3, 3, Cmid, Cmid), jnp.float32)
    p["w3"] = 0.05 * jax.random.normal(ks[2], (Cmid, Cout), jnp.float32)
    p["s1"], p["b1"] = bn_fold(ks[4], Cmid)
    p["s2"], p["b2"] = bn_fold(ks[5], Cmid)
    p["s3"], p["b3"] = bn_fold(ks[6], Cout)
    if has_downsample:
        p["wd"] = 0.05 * jax.random.normal(ks[3], (Cin, Cout), jnp.float32)
        p["sd"], p["bd"] = bn_fold(ks[7], Cout)
    return p


# ------------------------------ reference ---------------------------------
def _conv(x, w, stride, pad):
    return lax.conv_general_dilated(
        x, w, window_strides=(stride, stride),
        padding=((pad, pad), (pad, pad)),
        dimension_numbers=("NHWC", "HWIO", "NHWC"))


def ref_forward(x_nhwc, p, stride, has_downsample):
    # Mirrors the kernel's bf16 operand rounding and folded BN scale so the
    # tolerances stay tight; mathematically identical to conv->BN->... .
    rt = lambda a: a.astype(jnp.bfloat16).astype(jnp.float32)
    Cin = x_nhwc.shape[-1]
    Cmid = p["w1"].shape[1]
    Cout = p["w3"].shape[1]

    def shift(x, b):
        return x + b.reshape(1, 1, 1, -1)

    w1 = rt(p["w1"] * p["s1"]).reshape(1, 1, Cin, Cmid)
    w2 = rt(p["w2"] * p["s2"].reshape(1, 1, 1, Cmid))
    w3 = rt(p["w3"] * p["s3"]).reshape(1, 1, Cmid, Cout)

    x = rt(x_nhwc)
    t = jnp.maximum(shift(_conv(x, w1, 1, 0), p["b1"]), 0.0)
    t = jnp.maximum(shift(_conv(rt(t), w2, stride, 1), p["b2"]), 0.0)
    y = shift(_conv(rt(t), w3, 1, 0), p["b3"])
    if has_downsample:
        wd = rt(p["wd"] * p["sd"]).reshape(1, 1, Cin, Cout)
        ident = shift(_conv(x, wd, stride, 0), p["bd"])
    else:
        ident = x
    return jnp.maximum(y + ident, 0.0)


# -------------------------------- main -------------------------------------
if __name__ == "__main__":
    def block_config(stage, block):
        Cmid = 64 * 2 ** stage
        Cout = 4 * Cmid
        if block == 0:
            if stage > 0:
                return 2 * Cmid, Cmid, Cout, 2, True
            return Cmid, Cmid, Cout, 1, True
        return 4 * Cmid, Cmid, Cout, 1, False

    N, H, W = 2, 8, 8
    key = jax.random.PRNGKey(0)

    # stage-0 block-0 (downsample branch, im2col conv2 path) and
    # stage-0 block-1 (identity branch, accumulating conv2 path forced on).
    # Stride-2 stages are implemented but not exercised here.
    for stage, block, force_accum in [(0, 0, False), (0, 1, True)]:
        Cin, Cmid, Cout, stride, has_ds = block_config(stage, block)
        kx, kp, key = jax.random.split(key, 3)
        x = jax.random.normal(kx, (N, Cin, H, W), jnp.float32)   # NCHW
        params = init_params(kp, Cin, Cmid, Cout, has_downsample=has_ds)

        out = bottleneck_pallas(x, params, stride=stride,
                                has_downsample=has_ds,
                                conv2_accum=force_accum)
        out = jax.block_until_ready(out).astype(jnp.float32)

        ref = ref_forward(jnp.transpose(x, (0, 2, 3, 1)), params, stride,
                          has_ds)
        ref = jnp.transpose(ref, (0, 3, 1, 2))
        ref = ref.astype(jnp.bfloat16).astype(jnp.float32)   # kernel emits bf16
        max_err = float(jnp.max(jnp.abs(out - ref)))
        if not jnp.allclose(out, ref, atol=2e-2, rtol=2e-2):
            raise AssertionError(
                f"stage={stage} block={block}: mismatch vs reference, "
                f"max abs err = {max_err}")

    print("KERNEL_OK")
</pallas_src>

<mosaic_0001>
module attributes {stable_mosaic.version = 11 : i64} {
  func.func @_bottleneck_kernel(%arg0: i32, %arg1: memref<64x64xbf16, #tpu.memory_space<vmem>>, %arg2: memref<64x64xbf16, #tpu.memory_space<vmem>>, %arg3: memref<1x64xf32, #tpu.memory_space<vmem>>, %arg4: memref<576x64xbf16, #tpu.memory_space<vmem>>, %arg5: memref<1x64xf32, #tpu.memory_space<vmem>>, %arg6: memref<64x256xbf16, #tpu.memory_space<vmem>>, %arg7: memref<1x256xf32, #tpu.memory_space<vmem>>, %arg8: memref<64x256xbf16, #tpu.memory_space<vmem>>, %arg9: memref<1x256xf32, #tpu.memory_space<vmem>>, %arg10: memref<64x256xbf16, #tpu.memory_space<vmem>>, %arg11: memref<1x10x10x64xbf16, #tpu.memory_space<vmem>>) attributes {dimension_semantics = [#tpu.dimension_semantics<parallel>], iteration_bounds = array<i64: 2>, scalar_prefetch = 0 : i64, scratch_operands = 1 : i64, tpu.core_type = #tpu.core_type<tc>, window_params = [{transform_indices = @transform_0, window_bounds = array<i64: 64, 64>}, {pipeline_mode = #tpu.pipeline_mode<synchronous>, transform_indices = @transform_1, window_bounds = array<i64: 64, 64>}, {pipeline_mode = #tpu.pipeline_mode<synchronous>, transform_indices = @transform_2, window_bounds = array<i64: 1, 64>}, {pipeline_mode = #tpu.pipeline_mode<synchronous>, transform_indices = @transform_3, window_bounds = array<i64: 576, 64>}, {pipeline_mode = #tpu.pipeline_mode<synchronous>, transform_indices = @transform_4, window_bounds = array<i64: 1, 64>}, {pipeline_mode = #tpu.pipeline_mode<synchronous>, transform_indices = @transform_5, window_bounds = array<i64: 64, 256>}, {pipeline_mode = #tpu.pipeline_mode<synchronous>, transform_indices = @transform_6, window_bounds = array<i64: 1, 256>}, {pipeline_mode = #tpu.pipeline_mode<synchronous>, transform_indices = @transform_7, window_bounds = array<i64: 64, 256>}, {pipeline_mode = #tpu.pipeline_mode<synchronous>, transform_indices = @transform_8, window_bounds = array<i64: 1, 256>}, {transform_indices = @transform_9, window_bounds = array<i64: 64, 256>}]} {
    %cst = arith.constant 0.000000e+00 : bf16
    %0 = vector.broadcast %cst : bf16 to vector<1x1x10x64xbf16>
    %cst_0 = arith.constant 0.000000e+00 : bf16
    %1 = vector.broadcast %cst_0 : bf16 to vector<1x8x1x64xbf16>
    %c0 = arith.constant 0 : index
    %c0_1 = arith.constant 0 : index
    %c0_2 = arith.constant 0 : index
    %c0_3 = arith.constant 0 : index
    %2 = vector.load %arg11[%c0, %c0_1, %c0_2, %c0_3] : memref<1x10x10x64xbf16, #tpu.memory_space<vmem>>, vector<1x1x10x64xbf16>
    tpu.vector_store %arg11[%c0, %c0_1, %c0_2, %c0_3], %0 {strides = array<i32>} : memref<1x10x10x64xbf16, #tpu.memory_space<vmem>>, vector<1x1x10x64xbf16>,
    %c0_4 = arith.constant 0 : index
    %c9 = arith.constant 9 : index
    %c0_5 = arith.constant 0 : index
    %c0_6 = arith.constant 0 : index
    %3 = vector.load %arg11[%c0_4, %c9, %c0_5, %c0_6] : memref<1x10x10x64xbf16, #tpu.memory_space<vmem>>, vector<1x1x10x64xbf16>
    tpu.vector_store %arg11[%c0_4, %c9, %c0_5, %c0_6], %0 {strides = array<i32>} : memref<1x10x10x64xbf16, #tpu.memory_space<vmem>>, vector<1x1x10x64xbf16>,
    %c0_7 = arith.constant 0 : index
    %c1 = arith.constant 1 : index
    %c0_8 = arith.constant 0 : index
    %c0_9 = arith.constant 0 : index
    %4 = vector.load %arg11[%c0_7, %c1, %c0_8, %c0_9] : memref<1x10x10x64xbf16, #tpu.memory_space<vmem>>, vector<1x8x1x64xbf16>
    tpu.vector_store %arg11[%c0_7, %c1, %c0_8, %c0_9], %1 {strides = array<i32>} : memref<1x10x10x64xbf16, #tpu.memory_space<vmem>>, vector<1x8x1x64xbf16>,
    %c0_10 = arith.constant 0 : index
    %c1_11 = arith.constant 1 : index
    %c9_12 = arith.constant 9 : index
    %c0_13 = arith.constant 0 : index
    %5 = vector.load %arg11[%c0_10, %c1_11, %c9_12, %c0_13] : memref<1x10x10x64xbf16, #tpu.memory_space<vmem>>, vector<1x8x1x64xbf16>
    tpu.vector_store %arg11[%c0_10, %c1_11, %c9_12, %c0_13], %1 {strides = array<i32>} : memref<1x10x10x64xbf16, #tpu.memory_space<vmem>>, vector<1x8x1x64xbf16>,
    %c0_14 = arith.constant 0 : index
    %c0_15 = arith.constant 0 : index
    %6 = vector.load %arg1[%c0_14, %c0_15] : memref<64x64xbf16, #tpu.memory_space<vmem>>, vector<64x64xbf16>
    %c0_16 = arith.constant 0 : index
    %c0_17 = arith.constant 0 : index
    %7 = vector.load %arg2[%c0_16, %c0_17] : memref<64x64xbf16, #tpu.memory_space<vmem>>, vector<64x64xbf16>
    %cst_18 = arith.constant dense<0.000000e+00> : vector<64x64xf32>
    %8 = tpu.matmul %6, %7, %cst_18 {dimension_numbers = #tpu.dot_dimension_numbers<[1], [0], [0], [1], [0, 0, 1, 1], [], []>} : vector<64x64xbf16>, vector<64x64xbf16>, vector<64x64xf32> -> vector<64x64xf32>
    %c0_19 = arith.constant 0 : index
    %c0_20 = arith.constant 0 : index
    %9 = vector.load %arg3[%c0_19, %c0_20] : memref<1x64xf32, #tpu.memory_space<vmem>>, vector<1x64xf32>
    %10 = vector.broadcast %9 : vector<1x64xf32> to vector<64x64xf32>
    %11 = arith.addf %8, %10 : vector<64x64xf32>
    %cst_21 = arith.constant 0.000000e+00 : f32
    %12 = vector.broadcast %cst_21 : f32 to vector<64x64xf32>
    %13 = arith.maximumf %11, %12 : vector<64x64xf32>
    %14 = arith.truncf %13 : vector<64x64xf32> to vector<64x64xbf16>
    %15 = vector.shape_cast %14 : vector<64x64xbf16> to vector<1x8x8x64xbf16>
    %c0_22 = arith.constant 0 : index
    %c1_23 = arith.constant 1 : index
    %c1_24 = arith.constant 1 : index
    %c0_25 = arith.constant 0 : index
    %16 = vector.load %arg11[%c0_22, %c1_23, %c1_24, %c0_25] : memref<1x10x10x64xbf16, #tpu.memory_space<vmem>>, vector<1x8x8x64xbf16>
    tpu.vector_store %arg11[%c0_22, %c1_23, %c1_24, %c0_25], %15 {strides = array<i32>} : memref<1x10x10x64xbf16, #tpu.memory_space<vmem>>, vector<1x8x8x64xbf16>,
    %c0_26 = arith.constant 0 : index
    %c0_27 = arith.constant 0 : index
    %c0_28 = arith.constant 0 : index
    %c0_29 = arith.constant 0 : index
    %17 = vector.load %arg11[%c0_26, %c0_27, %c0_28, %c0_29] : memref<1x10x10x64xbf16, #tpu.memory_space<vmem>>, vector<1x8x8x64xbf16>
    %18 = vector.shape_cast %17 : vector<1x8x8x64xbf16> to vector<64x64xbf16>
    %c0_30 = arith.constant 0 : index
    %c0_31 = arith.constant 0 : index
    %c1_32 = arith.constant 1 : index
    %c0_33 = arith.constant 0 : index
    %19 = vector.load %arg11[%c0_30, %c0_31, %c1_32, %c0_33] : memref<1x10x10x64xbf16, #tpu.memory_space<vmem>>, vector<1x8x8x64xbf16>
    %20 = vector.shape_cast %19 : vector<1x8x8x64xbf16> to vector<64x64xbf16>
    %c0_34 = arith.constant 0 : index
    %c0_35 = arith.constant 0 : index
    %c2 = arith.constant 2 : index
    %c0_36 = arith.constant 0 : index
    %21 = vector.load %arg11[%c0_34, %c0_35, %c2, %c0_36] : memref<1x10x10x64xbf16, #tpu.memory_space<vmem>>, vector<1x8x8x64xbf16>
    %22 = vector.shape_cast %21 : vector<1x8x8x64xbf16> to vector<64x64xbf16>
    %c0_37 = arith.constant 0 : index
    %c1_38 = arith.constant 1 : index
    %c0_39 = arith.constant 0 : index
    %c0_40 = arith.constant 0 : index
    %23 = vector.load %arg11[%c0_37, %c1_38, %c0_39, %c0_40] : memref<1x10x10x64xbf16, #tpu.memory_space<vmem>>, vector<1x8x8x64xbf16>
    %24 = vector.shape_cast %23 : vector<1x8x8x64xbf16> to vector<64x64xbf16>
    %c0_41 = arith.constant 0 : index
    %c1_42 = arith.constant 1 : index
    %c1_43 = arith.constant 1 : index
    %c0_44 = arith.constant 0 : index
    %25 = vector.load %arg11[%c0_41, %c1_42, %c1_43, %c0_44] : memref<1x10x10x64xbf16, #tpu.memory_space<vmem>>, vector<1x8x8x64xbf16>
    %26 = vector.shape_cast %25 : vector<1x8x8x64xbf16> to vector<64x64xbf16>
    %c0_45 = arith.constant 0 : index
    %c1_46 = arith.constant 1 : index
    %c2_47 = arith.constant 2 : index
    %c0_48 = arith.constant 0 : index
    %27 = vector.load %arg11[%c0_45, %c1_46, %c2_47, %c0_48] : memref<1x10x10x64xbf16, #tpu.memory_space<vmem>>, vector<1x8x8x64xbf16>
    %28 = vector.shape_cast %27 : vector<1x8x8x64xbf16> to vector<64x64xbf16>
    %c0_49 = arith.constant 0 : index
    %c2_50 = arith.constant 2 : index
    %c0_51 = arith.constant 0 : index
    %c0_52 = arith.constant 0 : index
    %29 = vector.load %arg11[%c0_49, %c2_50, %c0_51, %c0_52] : memref<1x10x10x64xbf16, #tpu.memory_space<vmem>>, vector<1x8x8x64xbf16>
    %30 = vector.shape_cast %29 : vector<1x8x8x64xbf16> to vector<64x64xbf16>
    %c0_53 = arith.constant 0 : index
    %c2_54 = arith.constant 2 : index
    %c1_55 = arith.constant 1 : index
    %c0_56 = arith.constant 0 : index
    %31 = vector.load %arg11[%c0_53, %c2_54, %c1_55, %c0_56] : memref<1x10x10x64xbf16, #tpu.memory_space<vmem>>, vector<1x8x8x64xbf16>
    %32 = vector.shape_cast %31 : vector<1x8x8x64xbf16> to vector<64x64xbf16>
    %c0_57 = arith.constant 0 : index
    %c2_58 = arith.constant 2 : index
    %c2_59 = arith.constant 2 : index
    %c0_60 = arith.constant 0 : index
    %33 = vector.load %arg11[%c0_57, %c2_58, %c2_59, %c0_60] : memref<1x10x10x64xbf16, #tpu.memory_space<vmem>>, vector<1x8x8x64xbf16>
    %34 = vector.shape_cast %33 : vector<1x8x8x64xbf16> to vector<64x64xbf16>
    %35 = tpu.concatenate %18, %20, %22, %24, %26, %28, %30, %32, %34 in 1 : vector<64x64xbf16>, vector<64x64xbf16>, vector<64x64xbf16>, vector<64x64xbf16>, vector<64x64xbf16>, vector<64x64xbf16>, vector<64x64xbf16>, vector<64x64xbf16>, vector<64x64xbf16> -> vector<64x576xbf16>
    %c0_61 = arith.constant 0 : index
    %c0_62 = arith.constant 0 : index
    %36 = vector.load %arg4[%c0_61, %c0_62] : memref<576x64xbf16, #tpu.memory_space<vmem>>, vector<576x64xbf16>
    %cst_63 = arith.constant dense<0.000000e+00> : vector<64x64xf32>
    %37 = tpu.matmul %35, %36, %cst_63 {dimension_numbers = #tpu.dot_dimension_numbers<[1], [0], [0], [1], [0, 0, 1, 1], [], []>} : vector<64x576xbf16>, vector<576x64xbf16>, vector<64x64xf32> -> vector<64x64xf32>
    %c0_64 = arith.constant 0 : index
    %c0_65 = arith.constant 0 : index
    %38 = vector.load %arg5[%c0_64, %c0_65] : memref<1x64xf32, #tpu.memory_space<vmem>>, vector<1x64xf32>
    %39 = vector.broadcast %38 : vector<1x64xf32> to vector<64x64xf32>
    %40 = arith.addf %37, %39 : vector<64x64xf32>
    %cst_66 = arith.constant 0.000000e+00 : f32
    %41 = vector.broadcast %cst_66 : f32 to vector<64x64xf32>
    %42 = arith.maximumf %40, %41 : vector<64x64xf32>
    %43 = arith.truncf %42 : vector<64x64xf32> to vector<64x64xbf16>
    %c0_67 = arith.constant 0 : index
    %c0_68 = arith.constant 0 : index
    %44 = vector.load %arg6[%c0_67, %c0_68] : memref<64x256xbf16, #tpu.memory_space<vmem>>, vector<64x256xbf16>
    %cst_69 = arith.constant dense<0.000000e+00> : vector<64x256xf32>
    %45 = tpu.matmul %43, %44, %cst_69 {dimension_numbers = #tpu.dot_dimension_numbers<[1], [0], [0], [1], [0, 0, 1, 1], [], []>} : vector<64x64xbf16>, vector<64x256xbf16>, vector<64x256xf32> -> vector<64x256xf32>
    %c0_70 = arith.constant 0 : index
    %c0_71 = arith.constant 0 : index
    %46 = vector.load %arg7[%c0_70, %c0_71] : memref<1x256xf32, #tpu.memory_space<vmem>>, vector<1x256xf32>
    %47 = vector.broadcast %46 : vector<1x256xf32> to vector<64x256xf32>
    %48 = arith.addf %45, %47 : vector<64x256xf32>
    %c0_72 = arith.constant 0 : index
    %c0_73 = arith.constant 0 : index
    %49 = vector.load %arg8[%c0_72, %c0_73] : memref<64x256xbf16, #tpu.memory_space<vmem>>, vector<64x256xbf16>
    %cst_74 = arith.constant dense<0.000000e+00> : vector<64x256xf32>
    %50 = tpu.matmul %6, %49, %cst_74 {dimension_numbers = #tpu.dot_dimension_numbers<[1], [0], [0], [1], [0, 0, 1, 1], [], []>} : vector<64x64xbf16>, vector<64x256xbf16>, vector<64x256xf32> -> vector<64x256xf32>
    %c0_75 = arith.constant 0 : index
    %c0_76 = arith.constant 0 : index
    %51 = vector.load %arg9[%c0_75, %c0_76] : memref<1x256xf32, #tpu.memory_space<vmem>>, vector<1x256xf32>
    %52 = vector.broadcast %51 : vector<1x256xf32> to vector<64x256xf32>
    %53 = arith.addf %50, %52 : vector<64x256xf32>
    %54 = arith.addf %48, %53 : vector<64x256xf32>
    %cst_77 = arith.constant 0.000000e+00 : f32
    %55 = vector.broadcast %cst_77 : f32 to vector<64x256xf32>
    %56 = arith.maximumf %54, %55 : vector<64x256xf32>
    %57 = arith.truncf %56 : vector<64x256xf32> to vector<64x256xbf16>
    %c0_78 = arith.constant 0 : index
    %c0_79 = arith.constant 0 : index
    %58 = vector.load %arg10[%c0_78, %c0_79] : memref<64x256xbf16, #tpu.memory_space<vmem>>, vector<64x256xbf16>
    tpu.vector_store %arg10[%c0_78, %c0_79], %57 {strides = array<i32>} : memref<64x256xbf16, #tpu.memory_space<vmem>>, vector<64x256xbf16>,
    return
  }
  func.func @transform_0(%arg0: i32) -> (i32, i32) {
    %c0_i32 = arith.constant 0 : i32
    %c0_i32_0 = arith.constant 0 : i32
    return %arg0, %c0_i32 : i32, i32
  }
  func.func @transform_1(%arg0: i32) -> (i32, i32) {
    %c0_i32 = arith.constant 0 : i32
    %c0_i32_0 = arith.constant 0 : i32
    %c0_i32_1 = arith.constant 0 : i32
    return %c0_i32, %c0_i32_0 : i32, i32
  }
  func.func @transform_2(%arg0: i32) -> (i32, i32) {
    %c0_i32 = arith.constant 0 : i32
    %c0_i32_0 = arith.constant 0 : i32
    %c0_i32_1 = arith.constant 0 : i32
    return %c0_i32, %c0_i32_0 : i32, i32
  }
  func.func @transform_3(%arg0: i32) -> (i32, i32) {
    %c0_i32 = arith.constant 0 : i32
    %c0_i32_0 = arith.constant 0 : i32
    %c0_i32_1 = arith.constant 0 : i32
    return %c0_i32, %c0_i32_0 : i32, i32
  }
  func.func @transform_4(%arg0: i32) -> (i32, i32) {
    %c0_i32 = arith.constant 0 : i32
    %c0_i32_0 = arith.constant 0 : i32
    %c0_i32_1 = arith.constant 0 : i32
    return %c0_i32, %c0_i32_0 : i32, i32
  }
  func.func @transform_5(%arg0: i32) -> (i32, i32) {
    %c0_i32 = arith.constant 0 : i32
    %c0_i32_0 = arith.constant 0 : i32
    %c0_i32_1 = arith.constant 0 : i32
    return %c0_i32, %c0_i32_0 : i32, i32
  }
  func.func @transform_6(%arg0: i32) -> (i32, i32) {
    %c0_i32 = arith.constant 0 : i32
    %c0_i32_0 = arith.constant 0 : i32
    %c0_i32_1 = arith.constant 0 : i32
    return %c0_i32, %c0_i32_0 : i32, i32
  }
  func.func @transform_7(%arg0: i32) -> (i32, i32) {
    %c0_i32 = arith.constant 0 : i32
    %c0_i32_0 = arith.constant 0 : i32
    %c0_i32_1 = arith.constant 0 : i32
    return %c0_i32, %c0_i32_0 : i32, i32
  }
  func.func @transform_8(%arg0: i32) -> (i32, i32) {
    %c0_i32 = arith.constant 0 : i32
    %c0_i32_0 = arith.constant 0 : i32
    %c0_i32_1 = arith.constant 0 : i32
    return %c0_i32, %c0_i32_0 : i32, i32
  }
  func.func @transform_9(%arg0: i32) -> (i32, i32) {
    %c0_i32 = arith.constant 0 : i32
    %c0_i32_0 = arith.constant 0 : i32
    return %arg0, %c0_i32 : i32, i32
  }
}

module attributes {stable_mosaic.version = 11 : i64} {
  func.func @_bottleneck_kernel(%arg0: i32, %arg1: memref<64x64xbf16, #tpu.memory_space<vmem>>, %arg2: memref<64x64xbf16, #tpu.memory_space<vmem>>, %arg3: memref<1x64xf32, #tpu.memory_space<vmem>>, %arg4: memref<576x64xbf16, #tpu.memory_space<vmem>>, %arg5: memref<1x64xf32, #tpu.memory_space<vmem>>, %arg6: memref<64x256xbf16, #tpu.memory_space<vmem>>, %arg7: memref<1x256xf32, #tpu.memory_space<vmem>>, %arg8: memref<64x256xbf16, #tpu.memory_space<vmem>>, %arg9: memref<1x256xf32, #tpu.memory_space<vmem>>, %arg10: memref<64x256xbf16, #tpu.memory_space<vmem>>, %arg11: memref<1x10x10x64xbf16, #tpu.memory_space<vmem>>) attributes {dimension_semantics = [#tpu.dimension_semantics<parallel>], iteration_bounds = array<i64: 2>, scalar_prefetch = 0 : i64, scratch_operands = 1 : i64, tpu.core_type = #tpu.core_type<tc>, window_params = [{transform_indices = @transform_0, window_bounds = array<i64: 64, 64>}, {pipeline_mode = #tpu.pipeline_mode<synchronous>, transform_indices = @transform_1, window_bounds = array<i64: 64, 64>}, {pipeline_mode = #tpu.pipeline_mode<synchronous>, transform_indices = @transform_2, window_bounds = array<i64: 1, 64>}, {pipeline_mode = #tpu.pipeline_mode<synchronous>, transform_indices = @transform_3, window_bounds = array<i64: 576, 64>}, {pipeline_mode = #tpu.pipeline_mode<synchronous>, transform_indices = @transform_4, window_bounds = array<i64: 1, 64>}, {pipeline_mode = #tpu.pipeline_mode<synchronous>, transform_indices = @transform_5, window_bounds = array<i64: 64, 256>}, {pipeline_mode = #tpu.pipeline_mode<synchronous>, transform_indices = @transform_6, window_bounds = array<i64: 1, 256>}, {pipeline_mode = #tpu.pipeline_mode<synchronous>, transform_indices = @transform_7, window_bounds = array<i64: 64, 256>}, {pipeline_mode = #tpu.pipeline_mode<synchronous>, transform_indices = @transform_8, window_bounds = array<i64: 1, 256>}, {transform_indices = @transform_9, window_bounds = array<i64: 64, 256>}]} {
    %cst = arith.constant 0.000000e+00 : bf16
    %0 = vector.broadcast %cst : bf16 to vector<1x1x10x64xbf16>
    %cst_0 = arith.constant 0.000000e+00 : bf16
    %1 = vector.broadcast %cst_0 : bf16 to vector<1x8x1x64xbf16>
    %c0 = arith.constant 0 : index
    %c0_1 = arith.constant 0 : index
    %c0_2 = arith.constant 0 : index
    %c0_3 = arith.constant 0 : index
    %2 = vector.load %arg11[%c0, %c0_1, %c0_2, %c0_3] : memref<1x10x10x64xbf16, #tpu.memory_space<vmem>>, vector<1x1x10x64xbf16>
    tpu.vector_store %arg11[%c0, %c0_1, %c0_2, %c0_3], %0 {strides = array<i32>} : memref<1x10x10x64xbf16, #tpu.memory_space<vmem>>, vector<1x1x10x64xbf16>,
    %c0_4 = arith.constant 0 : index
    %c9 = arith.constant 9 : index
    %c0_5 = arith.constant 0 : index
    %c0_6 = arith.constant 0 : index
    %3 = vector.load %arg11[%c0_4, %c9, %c0_5, %c0_6] : memref<1x10x10x64xbf16, #tpu.memory_space<vmem>>, vector<1x1x10x64xbf16>
    tpu.vector_store %arg11[%c0_4, %c9, %c0_5, %c0_6], %0 {strides = array<i32>} : memref<1x10x10x64xbf16, #tpu.memory_space<vmem>>, vector<1x1x10x64xbf16>,
    %c0_7 = arith.constant 0 : index
    %c1 = arith.constant 1 : index
    %c0_8 = arith.constant 0 : index
    %c0_9 = arith.constant 0 : index
    %4 = vector.load %arg11[%c0_7, %c1, %c0_8, %c0_9] : memref<1x10x10x64xbf16, #tpu.memory_space<vmem>>, vector<1x8x1x64xbf16>
    tpu.vector_store %arg11[%c0_7, %c1, %c0_8, %c0_9], %1 {strides = array<i32>} : memref<1x10x10x64xbf16, #tpu.memory_space<vmem>>, vector<1x8x1x64xbf16>,
    %c0_10 = arith.constant 0 : index
    %c1_11 = arith.constant 1 : index
    %c9_12 = arith.constant 9 : index
    %c0_13 = arith.constant 0 : index
    %5 = vector.load %arg11[%c0_10, %c1_11, %c9_12, %c0_13] : memref<1x10x10x64xbf16, #tpu.memory_space<vmem>>, vector<1x8x1x64xbf16>
    tpu.vector_store %arg11[%c0_10, %c1_11, %c9_12, %c0_13], %1 {strides = array<i32>} : memref<1x10x10x64xbf16, #tpu.memory_space<vmem>>, vector<1x8x1x64xbf16>,
    %c0_14 = arith.constant 0 : index
    %c0_15 = arith.constant 0 : index
    %6 = vector.load %arg1[%c0_14, %c0_15] : memref<64x64xbf16, #tpu.memory_space<vmem>>, vector<64x64xbf16>
    %c0_16 = arith.constant 0 : index
    %c0_17 = arith.constant 0 : index
    %7 = vector.load %arg2[%c0_16, %c0_17] : memref<64x64xbf16, #tpu.memory_space<vmem>>, vector<64x64xbf16>
    %cst_18 = arith.constant dense<0.000000e+00> : vector<64x64xf32>
    %8 = tpu.matmul %6, %7, %cst_18 {dimension_numbers = #tpu.dot_dimension_numbers<[1], [0], [0], [1], [0, 0, 1, 1], [], []>} : vector<64x64xbf16>, vector<64x64xbf16>, vector<64x64xf32> -> vector<64x64xf32>
    %c0_19 = arith.constant 0 : index
    %c0_20 = arith.constant 0 : index
    %9 = vector.load %arg3[%c0_19, %c0_20] : memref<1x64xf32, #tpu.memory_space<vmem>>, vector<1x64xf32>
    %10 = vector.broadcast %9 : vector<1x64xf32> to vector<64x64xf32>
    %11 = arith.addf %8, %10 : vector<64x64xf32>
    %cst_21 = arith.constant 0.000000e+00 : f32
    %12 = vector.broadcast %cst_21 : f32 to vector<64x64xf32>
    %13 = arith.maximumf %11, %12 : vector<64x64xf32>
    %14 = arith.truncf %13 : vector<64x64xf32> to vector<64x64xbf16>
    %15 = vector.shape_cast %14 : vector<64x64xbf16> to vector<1x8x8x64xbf16>
    %c0_22 = arith.constant 0 : index
    %c1_23 = arith.constant 1 : index
    %c1_24 = arith.constant 1 : index
    %c0_25 = arith.constant 0 : index
    %16 = vector.load %arg11[%c0_22, %c1_23, %c1_24, %c0_25] : memref<1x10x10x64xbf16, #tpu.memory_space<vmem>>, vector<1x8x8x64xbf16>
    tpu.vector_store %arg11[%c0_22, %c1_23, %c1_24, %c0_25], %15 {strides = array<i32>} : memref<1x10x10x64xbf16, #tpu.memory_space<vmem>>, vector<1x8x8x64xbf16>,
    %c0_26 = arith.constant 0 : index
    %c0_27 = arith.constant 0 : index
    %c0_28 = arith.constant 0 : index
    %c0_29 = arith.constant 0 : index
    %17 = vector.load %arg11[%c0_26, %c0_27, %c0_28, %c0_29] : memref<1x10x10x64xbf16, #tpu.memory_space<vmem>>, vector<1x8x8x64xbf16>
    %18 = vector.shape_cast %17 : vector<1x8x8x64xbf16> to vector<64x64xbf16>
    %c0_30 = arith.constant 0 : index
    %c0_31 = arith.constant 0 : index
    %c1_32 = arith.constant 1 : index
    %c0_33 = arith.constant 0 : index
    %19 = vector.load %arg11[%c0_30, %c0_31, %c1_32, %c0_33] : memref<1x10x10x64xbf16, #tpu.memory_space<vmem>>, vector<1x8x8x64xbf16>
    %20 = vector.shape_cast %19 : vector<1x8x8x64xbf16> to vector<64x64xbf16>
    %c0_34 = arith.constant 0 : index
    %c0_35 = arith.constant 0 : index
    %c2 = arith.constant 2 : index
    %c0_36 = arith.constant 0 : index
    %21 = vector.load %arg11[%c0_34, %c0_35, %c2, %c0_36] : memref<1x10x10x64xbf16, #tpu.memory_space<vmem>>, vector<1x8x8x64xbf16>
    %22 = vector.shape_cast %21 : vector<1x8x8x64xbf16> to vector<64x64xbf16>
    %c0_37 = arith.constant 0 : index
    %c1_38 = arith.constant 1 : index
    %c0_39 = arith.constant 0 : index
    %c0_40 = arith.constant 0 : index
    %23 = vector.load %arg11[%c0_37, %c1_38, %c0_39, %c0_40] : memref<1x10x10x64xbf16, #tpu.memory_space<vmem>>, vector<1x8x8x64xbf16>
    %24 = vector.shape_cast %23 : vector<1x8x8x64xbf16> to vector<64x64xbf16>
    %c0_41 = arith.constant 0 : index
    %c1_42 = arith.constant 1 : index
    %c1_43 = arith.constant 1 : index
    %c0_44 = arith.constant 0 : index
    %25 = vector.load %arg11[%c0_41, %c1_42, %c1_43, %c0_44] : memref<1x10x10x64xbf16, #tpu.memory_space<vmem>>, vector<1x8x8x64xbf16>
    %26 = vector.shape_cast %25 : vector<1x8x8x64xbf16> to vector<64x64xbf16>
    %c0_45 = arith.constant 0 : index
    %c1_46 = arith.constant 1 : index
    %c2_47 = arith.constant 2 : index
    %c0_48 = arith.constant 0 : index
    %27 = vector.load %arg11[%c0_45, %c1_46, %c2_47, %c0_48] : memref<1x10x10x64xbf16, #tpu.memory_space<vmem>>, vector<1x8x8x64xbf16>
    %28 = vector.shape_cast %27 : vector<1x8x8x64xbf16> to vector<64x64xbf16>
    %c0_49 = arith.constant 0 : index
    %c2_50 = arith.constant 2 : index
    %c0_51 = arith.constant 0 : index
    %c0_52 = arith.constant 0 : index
    %29 = vector.load %arg11[%c0_49, %c2_50, %c0_51, %c0_52] : memref<1x10x10x64xbf16, #tpu.memory_space<vmem>>, vector<1x8x8x64xbf16>
    %30 = vector.shape_cast %29 : vector<1x8x8x64xbf16> to vector<64x64xbf16>
    %c0_53 = arith.constant 0 : index
    %c2_54 = arith.constant 2 : index
    %c1_55 = arith.constant 1 : index
    %c0_56 = arith.constant 0 : index
    %31 = vector.load %arg11[%c0_53, %c2_54, %c1_55, %c0_56] : memref<1x10x10x64xbf16, #tpu.memory_space<vmem>>, vector<1x8x8x64xbf16>
    %32 = vector.shape_cast %31 : vector<1x8x8x64xbf16> to vector<64x64xbf16>
    %c0_57 = arith.constant 0 : index
    %c2_58 = arith.constant 2 : index
    %c2_59 = arith.constant 2 : index
    %c0_60 = arith.constant 0 : index
    %33 = vector.load %arg11[%c0_57, %c2_58, %c2_59, %c0_60] : memref<1x10x10x64xbf16, #tpu.memory_space<vmem>>, vector<1x8x8x64xbf16>
    %34 = vector.shape_cast %33 : vector<1x8x8x64xbf16> to vector<64x64xbf16>
    %35 = tpu.concatenate %18, %20, %22, %24, %26, %28, %30, %32, %34 in 1 : vector<64x64xbf16>, vector<64x64xbf16>, vector<64x64xbf16>, vector<64x64xbf16>, vector<64x64xbf16>, vector<64x64xbf16>, vector<64x64xbf16>, vector<64x64xbf16>, vector<64x64xbf16> -> vector<64x576xbf16>
    %c0_61 = arith.constant 0 : index
    %c0_62 = arith.constant 0 : index
    %36 = vector.load %arg4[%c0_61, %c0_62] : memref<576x64xbf16, #tpu.memory_space<vmem>>, vector<576x64xbf16>
    %cst_63 = arith.constant dense<0.000000e+00> : vector<64x64xf32>
    %37 = tpu.matmul %35, %36, %cst_63 {dimension_numbers = #tpu.dot_dimension_numbers<[1], [0], [0], [1], [0, 0, 1, 1], [], []>} : vector<64x576xbf16>, vector<576x64xbf16>, vector<64x64xf32> -> vector<64x64xf32>
    %c0_64 = arith.constant 0 : index
    %c0_65 = arith.constant 0 : index
    %38 = vector.load %arg5[%c0_64, %c0_65] : memref<1x64xf32, #tpu.memory_space<vmem>>, vector<1x64xf32>
    %39 = vector.broadcast %38 : vector<1x64xf32> to vector<64x64xf32>
    %40 = arith.addf %37, %39 : vector<64x64xf32>
    %cst_66 = arith.constant 0.000000e+00 : f32
    %41 = vector.broadcast %cst_66 : f32 to vector<64x64xf32>
    %42 = arith.maximumf %40, %41 : vector<64x64xf32>
    %43 = arith.truncf %42 : vector<64x64xf32> to vector<64x64xbf16>
    %c0_67 = arith.constant 0 : index
    %c0_68 = arith.constant 0 : index
    %44 = vector.load %arg6[%c0_67, %c0_68] : memref<64x256xbf16, #tpu.memory_space<vmem>>, vector<64x256xbf16>
    %cst_69 = arith.constant dense<0.000000e+00> : vector<64x256xf32>
    %45 = tpu.matmul %43, %44, %cst_69 {dimension_numbers = #tpu.dot_dimension_numbers<[1], [0], [0], [1], [0, 0, 1, 1], [], []>} : vector<64x64xbf16>, vector<64x256xbf16>, vector<64x256xf32> -> vector<64x256xf32>
    %c0_70 = arith.constant 0 : index
    %c0_71 = arith.constant 0 : index
    %46 = vector.load %arg7[%c0_70, %c0_71] : memref<1x256xf32, #tpu.memory_space<vmem>>, vector<1x256xf32>
    %47 = vector.broadcast %46 : vector<1x256xf32> to vector<64x256xf32>
    %48 = arith.addf %45, %47 : vector<64x256xf32>
    %c0_72 = arith.constant 0 : index
    %c0_73 = arith.constant 0 : index
    %49 = vector.load %arg8[%c0_72, %c0_73] : memref<64x256xbf16, #tpu.memory_space<vmem>>, vector<64x256xbf16>
    %cst_74 = arith.constant dense<0.000000e+00> : vector<64x256xf32>
    %50 = tpu.matmul %6, %49, %cst_74 {dimension_numbers = #tpu.dot_dimension_numbers<[1], [0], [0], [1], [0, 0, 1, 1], [], []>} : vector<64x64xbf16>, vector<64x256xbf16>, vector<64x256xf32> -> vector<64x256xf32>
    %c0_75 = arith.constant 0 : index
    %c0_76 = arith.constant 0 : index
    %51 = vector.load %arg9[%c0_75, %c0_76] : memref<1x256xf32, #tpu.memory_space<vmem>>, vector<1x256xf32>
    %52 = vector.broadcast %51 : vector<1x256xf32> to vector<64x256xf32>
    %53 = arith.addf %50, %52 : vector<64x256xf32>
    %54 = arith.addf %48, %53 : vector<64x256xf32>
    %cst_77 = arith.constant 0.000000e+00 : f32
    %55 = vector.broadcast %cst_77 : f32 to vector<64x256xf32>
    %56 = arith.maximumf %54, %55 : vector<64x256xf32>
    %57 = arith.truncf %56 : vector<64x256xf32> to vector<64x256xbf16>
    %c0_78 = arith.constant 0 : index
    %c0_79 = arith.constant 0 : index
    %58 = vector.load %arg10[%c0_78, %c0_79] : memref<64x256xbf16, #tpu.memory_space<vmem>>, vector<64x256xbf16>
    tpu.vector_store %arg10[%c0_78, %c0_79], %57 {strides = array<i32>} : memref<64x256xbf16, #tpu.memory_space<vmem>>, vector<64x256xbf16>,
    return
  }
  func.func @transform_0(%arg0: i32) -> (i32, i32) {
    %c0_i32 = arith.constant 0 : i32
    %c0_i32_0 = arith.constant 0 : i32
    return %arg0, %c0_i32 : i32, i32
  }
  func.func @transform_1(%arg0: i32) -> (i32, i32) {
    %c0_i32 = arith.constant 0 : i32
    %c0_i32_0 = arith.constant 0 : i32
    %c0_i32_1 = arith.constant 0 : i32
    return %c0_i32, %c0_i32_0 : i32, i32
  }
  func.func @transform_2(%arg0: i32) -> (i32, i32) {
    %c0_i32 = arith.constant 0 : i32
    %c0_i32_0 = arith.constant 0 : i32
    %c0_i32_1 = arith.constant 0 : i32
    return %c0_i32, %c0_i32_0 : i32, i32
  }
  func.func @transform_3(%arg0: i32) -> (i32, i32) {
    %c0_i32 = arith.constant 0 : i32
    %c0_i32_0 = arith.constant 0 : i32
    %c0_i32_1 = arith.constant 0 : i32
    return %c0_i32, %c0_i32_0 : i32, i32
  }
  func.func @transform_4(%arg0: i32) -> (i32, i32) {
    %c0_i32 = arith.constant 0 : i32
    %c0_i32_0 = arith.constant 0 : i32
    %c0_i32_1 = arith.constant 0 : i32
    return %c0_i32, %c0_i32_0 : i32, i32
  }
  func.func @transform_5(%arg0: i32) -> (i32, i32) {
    %c0_i32 = arith.constant 0 : i32
    %c0_i32_0 = arith.constant 0 : i32
    %c0_i32_1 = arith.constant 0 : i32
    return %c0_i32, %c0_i32_0 : i32, i32
  }
  func.func @transform_6(%arg0: i32) -> (i32, i32) {
    %c0_i32 = arith.constant 0 : i32
    %c0_i32_0 = arith.constant 0 : i32
    %c0_i32_1 = arith.constant 0 : i32
    return %c0_i32, %c0_i32_0 : i32, i32
  }
  func.func @transform_7(%arg0: i32) -> (i32, i32) {
    %c0_i32 = arith.constant 0 : i32
    %c0_i32_0 = arith.constant 0 : i32
    %c0_i32_1 = arith.constant 0 : i32
    return %c0_i32, %c0_i32_0 : i32, i32
  }
  func.func @transform_8(%arg0: i32) -> (i32, i32) {
    %c0_i32 = arith.constant 0 : i32
    %c0_i32_0 = arith.constant 0 : i32
    %c0_i32_1 = arith.constant 0 : i32
    return %c0_i32, %c0_i32_0 : i32, i32
  }
  func.func @transform_9(%arg0: i32) -> (i32, i32) {
    %c0_i32 = arith.constant 0 : i32
    %c0_i32_0 = arith.constant 0 : i32
    return %arg0, %c0_i32 : i32, i32
  }
}

</mosaic_0001>

<bundles_post_ra>
// kernel: tpu_custom_call.1
= control target key start
LH: loop header
LB: loop body
LE: loop exit
PB: predicated region body
PF: predicated region fallthrough
CT: control target
= control target key end

     0   :  { %s4686_s0 = inlined_call_operand.hbm [shape: bf16[128,64], index: 0, kind: input, shape index: {}]   ;;  %s4687_s1 = inlined_call_operand.hbm [shape: bf16[64,64], index: 1, kind: input, shape index: {}]   ;;  %s4688_s2 = inlined_call_operand.hbm [shape: f32[1,64], index: 2, kind: input, shape index: {}]   ;;  %s4689_s3 = inlined_call_operand.hbm [shape: bf16[576,64], index: 3, kind: input, shape index: {}]   ;;  %s4690_s4 = inlined_call_operand.hbm [shape: f32[1,64], index: 4, kind: input, shape index: {}]   ;;  %s4691_s5 = inlined_call_operand.hbm [shape: bf16[64,256], index: 5, kind: input, shape index: {}]   ;;  %s4692_s6 = inlined_call_operand.hbm [shape: f32[1,256], index: 6, kind: input, shape index: {}]   ;;  %s4693_s7 = inlined_call_operand.hbm [shape: bf16[64,256], index: 7, kind: input, shape index: {}]   ;;  %s4694_s8 = inlined_call_operand.hbm [shape: f32[1,256], index: 8, kind: input, shape index: {}]   ;;  %s4695_s9 = inlined_call_operand.hbm [shape: bf16[128,256], index: 9, kind: output, shape index: {}]  }
   0x1   :  { %4713 = sst [smem:[#allocation35_spill]] %s4687_s1 }
   0x2   :  { %4714 = sst [smem:[#allocation36_spill]] %s4689_s3 }
   0x3   :  { %4715 = sst [smem:[#allocation37_spill]] %s4695_s9 }
   0x4   :  { %14 = vsyncpa [#allocation4], 0 }
   0x5   :  { %16 = vsyncpa [#allocation4 + $0x1], 0 }
   0x6   :  { %17 = vsyncpa [#allocation7], 0 }
   0x7   :  { %18 = vsyncpa [#allocation10], 0 }
   0x8   :  { %19 = vsyncpa [#allocation13], 0 }
   0x9   :  { %20 = vsyncpa [#allocation16], 0 }
   0xa   :  { %21 = vsyncpa [#allocation5], 0 }
   0xb   :  { %23 = vsyncpa [#allocation5 + $0x1], 0  ;;  %s3668_s30 = smov 0   ;;  %s3670_s10 = smov 0  }
   0xc   :  { %s3672_s11 = smov 0   ;;  %s3674_s12 = smov 0  }
   0xd LB: > { %s3600_s13 = smov [#allocation6]   ;;  %s3689_s15 = sadd.s32 4294967295, %s3598_s12   ;;  %s3598_s12 = sphi %s3674_s12, %s4787_s12   ;;  %s3594_s11 = sphi %s3672_s11, %s4786_s11   ;;  %s3590_s10 = sphi %s3670_s10, %s4785_s10   ;;  %s3586_s30 = sphi %s3668_s30, %s4784_s30  }
   0xe   : > { %s266_s14 = sshll.u32 %s3600_s13, 4  ;;  %p2662_p0 = scmp.ge.s32.totalorder %s3598_s12, 1  ;;  %s3694_s14 = int_to_ptr.vmem [resolvable:$true] %s266_s14 }
   0xf   : > { %p4699_p1 = scmp.eq.s32.totalorder %s3689_s15, 0  ;;  %p254_p2 = scmp.lt.s32.totalorder %s3598_s12, 3 }
  0x10   : > { %s3601_s17 = smov [#allocation9]   ;;  %s3602_s20 = smov [#allocation12]  }
  0x11   : > { %p3696_p3 = pnand %p2662_p0, %p254_p2  ;;  %s290_s18 = sshll.u32 %s3601_s17, 4  ;;  %s3709_s18 = int_to_ptr.vmem [resolvable:$true] %s290_s18 }
  0x12   : > { %s314_s21 = sshll.u32 %s3602_s20, 4  ;;  %s4718_s1 = sld [smem:[#allocation35_spill]]  ;;  %s3711_s21 = int_to_ptr.vmem [resolvable:$true] %s314_s21 }
  0x13   : > { %s4716_s16 = scalar_select %p3696_p3, 1, 0 }
  0x14   : > { %p3077_p5 = pneg %p3696_p3 }
  0x16   : > { %p3705_p6 = pnand %p3077_p5, %p4699_p1 }
  0x18   : > { %s3262_s24 = scalar_lea.hbm %s4718_s1, 512  ;;  %p3721_p8 = pneg %p3705_p6 }
  0x19   : > { %p3263_p7 = scmp.ne.s32.totalorder %s4718_s1, %s3262_s24  ;;  %p3269_p11 = scmp.lt.u32.totalorder %s3262_s24, %s4718_s1 }
  0x1b   : > { %p3265_p9 = pnand %p3721_p8, %p3263_p7 }
  0x1d   : > { %p3266_p10 = pneg %p3265_p9 }
  0x1f   : > { %p3271_p12 = pnand %p3269_p11, %p3266_p10 }
  0x21   : > { %3274 = shalt.err (!%p3271_p12)
}
  0x22   : > { %s3275_s13 = scalar_lea.vmem %s3694_s14, 512  ;;  %p3283_p5 = scmp.lt.s32.totalorder %s3694_s14, %s3694_s14 }
  0x23   : > { %p3276_p13 = scmp.ne.s32.totalorder %s3694_s14, %s3275_s13  ;;  %p3284_p4 = scmp.lt.s32.totalorder %s3275_s13, %s3275_s13 }
  0x25   : > { %p3278_p0 = pnand %p3276_p13, %p3721_p8  ;;  %p3285_p7 = por %p3284_p4, %p3283_p5 }
  0x27   : > { %p3279_p2 = pneg %p3278_p0 }
  0x29   : > { %p3286_p9 = pnand %p3285_p7, %p3279_p2 }
  0x2b   : > { %3289 = shalt.err (!%p3286_p9)
}
  0x2c   : > { %s4697_s17 = smov 64   ;;  %s4698_s20 = smov 4  }
  0x2d   : > { %3080 = dma.hbm_to_vmem [thread:$0]  (!%p3705_p6), %s4718_s1, 512, %s3694_s14, [#allocation7], %s4697_s17, %s4697_s17, %s4698_s20  }
  0x2e   : > { %s4720_s3 = sld [smem:[#allocation36_spill]] }
  0x34   : > { %s3290_s26 = scalar_lea.hbm %s4720_s3, 4608 }
  0x35   : > { %p3291_p4 = scmp.ne.s32.totalorder %s4720_s3, %s3290_s26  ;;  %p3297_p12 = scmp.lt.u32.totalorder %s3290_s26, %s4720_s3 }
  0x37   : > { %p3293_p10 = pnand %p3291_p4, %p3721_p8 }
  0x39   : > { %p3294_p11 = pneg %p3293_p10 }
  0x3b   : > { %p3299_p13 = pnand %p3297_p12, %p3294_p11 }
  0x3d   : > { %3302 = shalt.err (!%p3299_p13)
}
  0x3e   : > { %s3303_s14 = scalar_lea.vmem %s3709_s18, 4608  ;;  %p3311_p7 = scmp.lt.s32.totalorder %s3709_s18, %s3709_s18 }
  0x3f   : > { %p3304_p0 = scmp.ne.s32.totalorder %s3709_s18, %s3303_s14  ;;  %p3312_p9 = scmp.lt.s32.totalorder %s3303_s14, %s3303_s14 }
  0x41   : > { %p3306_p2 = pnand %p3304_p0, %p3721_p8  ;;  %p3313_p4 = por %p3312_p9, %p3311_p7 }
  0x43   : > { %p3307_p5 = pneg %p3306_p2 }
  0x45   : > { %p3314_p10 = pnand %p3313_p4, %p3307_p5 }
  0x47   : > { %3317 = shalt.err (!%p3314_p10)
}
  0x48   : > { %3086 = dma.hbm_to_vmem [thread:$0]  (!%p3705_p6), %s4720_s3, 4608, %s3709_s18, [#allocation10], %s4697_s17, %s4697_s17, %s4698_s20  }
  0x49   : > { %s3318_s25 = scalar_lea.hbm %s4691_s5, 1024 }
  0x4a   : > { %p3319_p11 = scmp.ne.s32.totalorder %s4691_s5, %s3318_s25  ;;  %p3325_p0 = scmp.lt.u32.totalorder %s3318_s25, %s4691_s5 }
  0x4c   : > { %p3321_p12 = pnand %p3319_p11, %p3721_p8 }
  0x4e   : > { %p3322_p13 = pneg %p3321_p12 }
  0x50   : > { %p3327_p2 = pnand %p3325_p0, %p3322_p13 }
  0x52   : > { %3330 = shalt.err (!%p3327_p2)
}
  0x53   : > { %s3331_s18 = scalar_lea.vmem %s3711_s21, 1024  ;;  %p3339_p4 = scmp.lt.s32.totalorder %s3711_s21, %s3711_s21 }
  0x54   : > { %p3332_p5 = scmp.ne.s32.totalorder %s3711_s21, %s3331_s18  ;;  %p3340_p10 = scmp.lt.s32.totalorder %s3331_s18, %s3331_s18 }
  0x56   : > { %p3334_p7 = pnand %p3332_p5, %p3721_p8  ;;  %p3341_p11 = por %p3340_p10, %p3339_p4 }
  0x58   : > { %p3335_p9 = pneg %p3334_p7 }
  0x5a   : > { %p3342_p12 = pnand %p3341_p11, %p3335_p9 }
  0x5c   : > { %3345 = shalt.err (!%p3342_p12)
}
  0x5d   : > { %s3605_s14 = smov 128   ;;  %s3606_s9 = smov 8  }
  0x5e   : > { %3092 = dma.hbm_to_vmem [thread:$0]  (!%p3705_p6), %s4691_s5, 1024, %s3711_s21, [#allocation13], %s3605_s14, %s3605_s14, %s3606_s9  }
  0x5f   : > { %s3607_s24 = smov [#allocation15]   ;;  %s3608_s26 = smov [#allocation8]  }
  0x60   : > { %s338_s25 = sshll.u32 %s3607_s24, 4  ;;  %s280_s28 = sshll.u32 %s3608_s26, 4  ;;  %s339_s25 = int_to_ptr.vmem [resolvable:$true] %s338_s25  ;;  %s281_s28 = int_to_ptr.vmem [resolvable:$true] %s280_s28 }
  0x61   : > { %s3346_s18 = scalar_lea.hbm %s4693_s7, 1024 }
  0x62   : > { %p3347_p13 = scmp.ne.s32.totalorder %s4693_s7, %s3346_s18  ;;  %p3353_p5 = scmp.lt.u32.totalorder %s3346_s18, %s4693_s7 }
  0x64   : > { %p3349_p0 = pnand %p3347_p13, %p3721_p8 }
  0x66   : > { %p3350_p2 = pneg %p3349_p0 }
  0x68   : > { %p3355_p7 = pnand %p3353_p5, %p3350_p2 }
  0x6a   : > { %3358 = shalt.err (!%p3355_p7)
}
  0x6b   : > { %s3359_s21 = scalar_lea.vmem %s339_s25, 1024  ;;  %p3367_p11 = scmp.lt.s32.totalorder %s339_s25, %s339_s25 }
  0x6c   : > { %p3360_p9 = scmp.ne.s32.totalorder %s339_s25, %s3359_s21  ;;  %p3368_p12 = scmp.lt.s32.totalorder %s3359_s21, %s3359_s21 }
  0x6e   : > { %p3362_p4 = pnand %p3360_p9, %p3721_p8  ;;  %p3369_p1 = por %p3368_p12, %p3367_p11 }
  0x70   : > { %p3363_p10 = pneg %p3362_p4 }
  0x72   : > { %p3370_p3 = pnand %p3369_p1, %p3363_p10 }
  0x74   : > { %3373 = shalt.err (!%p3370_p3)
}
  0x75   : > { %3098 = dma.hbm_to_vmem [thread:$0]  (!%p3705_p6), %s4693_s7, 1024, %s339_s25, [#allocation16], %s3605_s14, %s3605_s14, %s3606_s9  }
  0x76   : > { %s3374_s22 = scalar_lea.hbm %s4688_s2, 16 }
  0x77   : > { %p3375_p13 = scmp.ne.s32.totalorder %s4688_s2, %s3374_s22  ;;  %p3381_p3 = scmp.lt.u32.totalorder %s3374_s22, %s4688_s2 }
  0x79   : > { %p3377_p0 = pnand %p3375_p13, %p3721_p8 }
  0x7b   : > { %p3378_p1 = pneg %p3377_p0 }
  0x7d   : > { %p3383_p2 = pnand %p3381_p3, %p3378_p1 }
  0x7f   : > { %3386 = shalt.err (!%p3383_p2)
}
  0x80   : > { %s3387_s13 = scalar_lea.vmem %s281_s28, 16  ;;  %s3394_s14 = scalar_lea.vmem %s281_s28, 32 }
  0x81   : > { %p3388_p5 = scmp.ne.s32.totalorder %s281_s28, %s3387_s13  ;;  %p3395_p4 = scmp.lt.s32.totalorder %s281_s28, %s281_s28 }
  0x82   : > { %p3396_p10 = scmp.lt.s32.totalorder %s3394_s14, %s3387_s13 }
  0x83   : > { %p3390_p7 = pnand %p3388_p5, %p3721_p8 }
  0x84   : > { %p3397_p11 = por %p3396_p10, %p3395_p4 }
  0x85   : > { %p3391_p9 = pneg %p3390_p7 }
  0x87   : > { %p3398_p12 = pnand %p3397_p11, %p3391_p9 }
  0x89   : > { %3401 = shalt.err (!%p3398_p12)
}
  0x8a   : > { %3083 = dma.hbm_to_vmem [thread:$0]  (!%p3705_p6), %s4688_s2, 16, %s281_s28, [#allocation7]  }
  0x8b   : > { %s3609_s18 = smov [#allocation11]   ;;  %s3610_s17 = smov [#allocation14]  }
  0x8c   : > { %s304_s21 = sshll.u32 %s3609_s18, 4  ;;  %s328_s20 = sshll.u32 %s3610_s17, 4  ;;  %s305_s21 = int_to_ptr.vmem [resolvable:$true] %s304_s21  ;;  %s329_s20 = int_to_ptr.vmem [resolvable:$true] %s328_s20 }
  0x8d   : > { %s3402_s22 = scalar_lea.hbm %s4690_s4, 16 }
  0x8e   : > { %p3403_p13 = scmp.ne.s32.totalorder %s4690_s4, %s3402_s22  ;;  %p3409_p3 = scmp.lt.u32.totalorder %s3402_s22, %s4690_s4 }
  0x90   : > { %p3405_p0 = pnand %p3403_p13, %p3721_p8 }
  0x92   : > { %p3406_p1 = pneg %p3405_p0 }
  0x94   : > { %p3411_p2 = pnand %p3409_p3, %p3406_p1 }
  0x96   : > { %3414 = shalt.err (!%p3411_p2)
}
  0x97   : > { %s3415_s28 = scalar_lea.vmem %s305_s21, 16  ;;  %s3422_s13 = scalar_lea.vmem %s305_s21, 32 }
  0x98   : > { %p3416_p5 = scmp.ne.s32.totalorder %s305_s21, %s3415_s28  ;;  %p3423_p4 = scmp.lt.s32.totalorder %s305_s21, %s305_s21 }
  0x99   : > { %p3424_p10 = scmp.lt.s32.totalorder %s3422_s13, %s3415_s28 }
  0x9a   : > { %p3418_p7 = pnand %p3416_p5, %p3721_p8 }
  0x9b   : > { %p3425_p11 = por %p3424_p10, %p3423_p4 }
  0x9c   : > { %p3419_p9 = pneg %p3418_p7 }
  0x9e   : > { %p3426_p12 = pnand %p3425_p11, %p3419_p9 }
  0xa0   : > { %3429 = shalt.err (!%p3426_p12)
}
  0xa1   : > { %3089 = dma.hbm_to_vmem [thread:$0]  (!%p3705_p6), %s4690_s4, 16, %s305_s21, [#allocation10]  }
  0xa2   : > { %s3430_s17 = scalar_lea.hbm %s4692_s6, 32 }
  0xa3   : > { %p3431_p13 = scmp.ne.s32.totalorder %s4692_s6, %s3430_s17  ;;  %p3437_p3 = scmp.lt.u32.totalorder %s3430_s17, %s4692_s6 }
  0xa5   : > { %p3433_p0 = pnand %p3431_p13, %p3721_p8 }
  0xa7   : > { %p3434_p1 = pneg %p3433_p0 }
  0xa9   : > { %p3439_p2 = pnand %p3437_p3, %p3434_p1 }
  0xab   : > { %3442 = shalt.err (!%p3439_p2)
}
  0xac   : > { %s3443_s24 = scalar_lea.vmem %s329_s20, 32  ;;  %p3451_p4 = scmp.lt.s32.totalorder %s329_s20, %s329_s20 }
  0xad   : > { %p3444_p5 = scmp.ne.s32.totalorder %s329_s20, %s3443_s24  ;;  %p3452_p10 = scmp.lt.s32.totalorder %s3443_s24, %s3443_s24 }
  0xaf   : > { %p3446_p7 = pnand %p3444_p5, %p3721_p8  ;;  %p3453_p11 = por %p3452_p10, %p3451_p4 }
  0xb1   : > { %p3447_p9 = pneg %p3446_p7 }
  0xb3   : > { %p3454_p12 = pnand %p3453_p11, %p3447_p9 }
  0xb5   : > { %3457 = shalt.err (!%p3454_p12)
}
  0xb6   : > { %3095 = dma.hbm_to_vmem [thread:$0]  (!%p3705_p6), %s4692_s6, 32, %s329_s20, [#allocation13]  }
  0xb7   : > { %s3611_s29 = smov [#allocation17]   ;;  %s3458_s9 = scalar_lea.hbm %s4694_s8, 32 }
  0xb8   : > { %s352_s28 = sshll.u32 %s3611_s29, 4  ;;  %p3459_p13 = scmp.ne.s32.totalorder %s4694_s8, %s3458_s9  ;;  %s353_s28 = int_to_ptr.vmem [resolvable:$true] %s352_s28 }
  0xb9   : > { %p3465_p3 = scmp.lt.u32.totalorder %s3458_s9, %s4694_s8 }
  0xba   : > { %p3461_p0 = pnand %p3459_p13, %p3721_p8 }
  0xbc   : > { %p3462_p1 = pneg %p3461_p0 }
  0xbe   : > { %p3467_p2 = pnand %p3465_p3, %p3462_p1 }
  0xc0   : > { %3470 = shalt.err (!%p3467_p2)
}
  0xc1   : > { %s3471_s20 = scalar_lea.vmem %s353_s28, 32  ;;  %p3479_p4 = scmp.lt.s32.totalorder %s353_s28, %s353_s28 }
  0xc2   : > { %p3472_p5 = scmp.ne.s32.totalorder %s353_s28, %s3471_s20  ;;  %p3480_p10 = scmp.lt.s32.totalorder %s3471_s20, %s3471_s20 }
  0xc4   : > { %p3474_p7 = pnand %p3472_p5, %p3721_p8  ;;  %p3481_p11 = por %p3480_p10, %p3479_p4 }
  0xc6   : > { %p3475_p9 = pneg %p3474_p7 }
  0xc8   : > { %p3482_p12 = pnand %p3481_p11, %p3475_p9 }
  0xca   : > { %3485 = shalt.err (!%p3482_p12)
}
  0xcb   : > { %3101 = dma.hbm_to_vmem [thread:$0]  (!%p3705_p6), %s4694_s8, 32, %s353_s28, [#allocation16]  }
  0xcc   : > { %s2661_s27 = sadd.s32 4294967294, %s3598_s12   ;;  %s3886_s19 = sadd.s32 1, %s3598_s12  }
  0xcd   : > { %s33_s23 = ssub.s32 %s3598_s12, %s3886_s19  ;;  %s36_s24 = sadd.s32 1, %s3594_s11 }
  0xce   : > { %p34_p8 = scmp.eq.s32.totalorder %s33_s23, 0  ;;  %p43_p13 = scmp.ne.s32.totalorder %s3594_s11, %s3590_s10 }
  0xcf   : > { %p44_p0 = scmp.eq.s32.totalorder %s3598_s12, 0  ;;  %p49_p1 = scmp.ne.s32.totalorder %s3590_s10, %s3586_s30 }
  0xd0   : > { %s3897_s21 = scalar_select %p34_p8, %s3594_s11, %s36_s24  }
  0xd1   : > { %p3899_p3 = por %p44_p0, %p43_p13  ;;  %p4722_p2 = scmp.eq.s32.totalorder %s3689_s15, 0 }
  0xd2   : > { %p241_p5 = scmp.eq.s32.totalorder %s3689_s15, 1  ;;  %p247_p7 = scmp.eq.s32.totalorder %s2661_s27, 1 }
  0xd3   : > { %p3905_p6 = por %p4722_p2, %p49_p1  ;;  %p3118_p9 = scmp.lt.s32.totalorder %s3598_s12, 2 }
  0xd4   : > { %s363_s28 = sand.u32 1, %s3594_s11   ;;  %p3912_p4 = por %p241_p5, %p43_p13 }
  0xd5   : > { %p3916_p10 = por %p247_p7, %p49_p1  ;;  %s2672_s9 = sshll.u32 %s363_s28, 5 }
  0xd6   : > { %s4724_s13 = scalar_select %p3912_p4, 1, 0 }
  0xd7   : > { %s4725_s14 = scalar_select %p3916_p10, 1, 0 }
  0xd8   : > { %s2846_s25 = sshll.u32 %s3598_s12, 9  ;;  %s367_s20 = scalar_lea.vmem [#allocation3], %s2672_s9 }
  0xd9   : > { %s3924_s1 = scalar_lea.hbm %s4686_s0, %s2846_s25  ;;  %s374_s3 = sshll.u32 %s367_s20, 4  ;;  %s3926_s3 = int_to_ptr.vmem [resolvable:$true] %s374_s3 }
  0xda   : > { %p3930_p11 = pnand %p3118_p9, %p3899_p3  ;;  %s3934_s27 = scalar_lea.sflag [#allocation4], %s363_s28 }
  0xdb   : > { %s3486_s23 = scalar_lea.hbm %s3924_s1, 512  ;;  %s3491_s26 = scalar_lea.hbm %s4686_s0, 1024 }
  0xdc   : > { %p3487_p12 = scmp.ne.s32.totalorder %s3924_s1, %s3486_s23  ;;  %p3488_p8 = pneg %p3930_p11 }
  0xdd   : > { %p3492_p1 = scmp.lt.u32.totalorder %s3924_s1, %s4686_s0  ;;  %p3493_p3 = scmp.lt.u32.totalorder %s3491_s26, %s3486_s23 }
  0xde   : > { %p3489_p13 = pnand %p3488_p8, %p3487_p12  ;;  %p3495_p5 = scmp.lt.u32.totalorder %s3486_s23, %s3924_s1 }
  0xdf   : > { %p3494_p2 = por %p3493_p3, %p3492_p1 }
  0xe0   : > { %p3490_p0 = pneg %p3489_p13 }
  0xe1   : > { %p3496_p7 = por %p3495_p5, %p3494_p2 }
  0xe3   : > { %p3497_p9 = pnand %p3496_p7, %p3490_p0 }
  0xe5   : > { %3500 = shalt.err (!%p3497_p9)
}
  0xe6   : > { %s3501_s28 = scalar_lea.vmem %s3926_s3, 512  ;;  %s3612_s17 = smov [#allocation3]  }
  0xe7   : > { %p3502_p12 = scmp.ne.s32.totalorder %s3926_s3, %s3501_s28  ;;  %s3506_s20 = sshll.u32 %s3612_s17, 4  ;;  %s3507_s20 = int_to_ptr.vmem [resolvable:$false] %s3506_s20 }
  0xe8   : > { %s3508_s24 = scalar_lea.vmem %s3507_s20, 1024  ;;  %p3509_p4 = scmp.lt.s32.totalorder %s3926_s3, %s3507_s20 }
  0xe9   : > { %p3504_p13 = pnand %p3502_p12, %p3488_p8  ;;  %p3510_p1 = scmp.lt.s32.totalorder %s3508_s24, %s3501_s28 }
  0xeb   : > { %p3505_p10 = pneg %p3504_p13  ;;  %p3511_p3 = por %p3510_p1, %p3509_p4 }
  0xed   : > { %p3512_p2 = pnand %p3511_p3, %p3505_p10 }
  0xef   : > { %3515 = shalt.err (!%p3512_p2)
}
  0xf0   : > { %s4727_s23 = smov 4   ;;  %s4728_s9 = smov 64  }
  0xf1   : > { %3105 = dma.hbm_to_vmem [thread:$0]  (!%p3930_p11), %s3924_s1, 512, %s3926_s3, %s3934_s27, %s4728_s9, %s4728_s9, %s4727_s23  }
  0xf2   : > { %p4729_p8 = scmp.ne.s32.totalorder %s4716_s16, 0 }
  0xf4   : > { %386 = sbr.rel (%p4729_p8) target bundleno = 1232 (0x4d0), region = 56 }
  0xfb   : > { %s3968_s26 = sand.u32 1, %s3590_s10  }
  0xfc   : > { %s2676_s25 = sshll.u32 %s3968_s26, 5  ;;  %s389_s18 = scalar_lea.sflag [#allocation4], %s3968_s26 }
  0xfd   : > { %s3972_s28 = scalar_lea.vmem [#allocation3], %s2676_s25 }
  0xfe   : > { %3561 = dma.done.wait (%p3905_p6), %s389_s18, 512  }
  0xff   : > { %3563 = vsyncadd (%p3905_p6), %s389_s18, 4294966784  ;;  %p4730_p4 = scmp.eq.s32.totalorder %s3689_s15, 0 }
 0x101   : > { %3565 = dma.done.wait (%p4730_p4), [#allocation7], 528   ;;  %p4731_p10 = pmov %p4730_p4 }
 0x102   : > { %p4732_p11 = pmov %p4730_p4 }
 0x103   : > { %3567 = vsyncadd (%p4731_p10), [#allocation7], 4294966768 }
 0x104   : > { %3569 = dma.done.wait (%p4732_p11), [#allocation10], 4624   ;;  %p4733_p0 = pmov %p4730_p4 }
 0x106   : > { %3571 = vsyncadd (%p4733_p0), [#allocation10], 4294962672  ;;  %p4734_p5 = pmov %p4733_p0 }
 0x107   : > { %p4735_p7 = pmov %p4733_p0 }
 0x108   : > { %3573 = dma.done.wait (%p4734_p5), [#allocation13], 1056  }
 0x109   : > { %3575 = vsyncadd (%p4735_p7), [#allocation13], 4294966240  ;;  %p4736_p6 = pmov %p4733_p0 }
 0x10a   : > { %p4737_p9 = pmov %p4733_p0 }
 0x10b   : > { %3577 = dma.done.wait (%p4736_p6), [#allocation16], 1056  }
 0x10c   : > { %3579 = vsyncadd (%p4737_p9), [#allocation16], 4294966240  ;;  %vm462_vm0 = vcmask 519168   ;;  %vm464_vm1 = vcmask 516096   ;;  %v4702_v0 = vmov 0   ;;  %v3176_v1 = vld [vmem:[#allocation6] sm:$0xff]  }
 0x10d   : > { %463 = vst.msk [vmem:[#allocation2] sm:$0xf] %vm462_vm0, %v4702_v0  ;;  %467 = vst.msk [vmem:[#allocation2 + $0x48] sm:$0xf] %vm462_vm0, %v4702_v0  ;;  %vm471_vm2 = vsmask.f32 256  ;;  %2961 = vmatprep.subr.bf16.mxu0 %v3176_v1 }
 0x10e   : > { %465 = vst.msk [vmem:[#allocation2 + $0x4] sm:$0x1] %vm464_vm1, %v4702_v0  ;;  %468 = vst.msk [vmem:[#allocation2 + $0x4c] sm:$0x1] %vm464_vm1, %v4702_v0  ;;  %v3177_v2 = vld [vmem:[#allocation6 + $0x8] sm:$0xff]   ;;  %2962 = vmatpush3.bf16.msra.mxu0 %v3176_v1  ;;  %v3178_v3 = vld [vmem:[#allocation6 + $0x10] sm:$0xff]  }
 0x10f   : > { %vm497_vm3 = vsmask.f32 7938  ;;  %vm590_vm4 = vcmask 523264   ;;  %2963 = vmatprep.subr.bf16.mxu0 %v3177_v2  ;;  %v3180_v4 = vld [vmem:[%s3972_s28] sm:$0xff]   ;;  %vm4004_vm5 = vmand %vm464_vm1, %vm471_vm2  ;;  %v3179_v7 = vld [vmem:[#allocation6 + $0x18] sm:$0xff]   ;;  %vm985_vm9 = vcmask 1042432  }
 0x110   : > { %2969 = vmatprep.mubr.msk.bf16.mxu0 %vm590_vm4, %v3180_v4  ;;  %vm4011_vm6 = vmand %vm464_vm1, %vm497_vm3  ;;  %v479_v8 = vld [vmem:[#allocation2 + $0x18] sm:$0x1]  ;;  %v505_v9 = vld [vmem:[#allocation2 + $0x1c] sm:$0x1]  ;;  %vm846_vm7 = vsmask.f32 3328 }
 0x111   : > { %v480_v10 = vsel %vm4004_vm5, 0, %v479_v8  ;;  %v506_v11 = vsel %vm4011_vm6, 0, %v505_v9  ;;  %v3181_v12 = vld [vmem:[%s3972_s28 + $0x8] sm:$0xff]   ;;  %v3182_v13 = vld [vmem:[%s3972_s28 + $0x10] sm:$0xff]   ;;  %v3183_v14 = vld [vmem:[%s3972_s28 + $0x18] sm:$0xff]   ;;  %vm986_vm10 = vcmask 1046532  }
 0x112   : > { %2964 = vmatpush3.bf16.msra.mxu0 %v3177_v2  ;;  %481 = vst [vmem:[#allocation2 + $0x18] sm:$0x1] %v480_v10  ;;  %507 = vst [vmem:[#allocation2 + $0x1c] sm:$0x1] %v506_v11  ;;  %v473_v15 = vld [vmem:[#allocation2 + $0x8] sm:$0x1] }
 0x113   : > { %2965 = vmatprep.subr.bf16.mxu0 %v3178_v3  ;;  %v499_v16 = vld [vmem:[#allocation2 + $0xc] sm:$0x1]  ;;  %v474_v17 = vsel %vm4004_vm5, 0, %v473_v15  ;;  %v482_v19 = vld [vmem:[#allocation2 + $0x20] sm:$0x1]  ;;  %v3188_v43 = vld [vmem:[#allocation9 + $0x40] sm:$0xff]  }
 0x114   : > { %v500_v18 = vsel %vm4011_vm6, 0, %v499_v16  ;;  %v508_v20 = vld [vmem:[#allocation2 + $0x24] sm:$0x1]  ;;  %475 = vst [vmem:[#allocation2 + $0x8] sm:$0x1] %v474_v17  ;;  %v483_v21 = vsel %vm4004_vm5, 0, %v482_v19  ;;  %2873 = vmatprep.subr.bf16.mxu1 %v3188_v43  ;;  %vm4083_vm11 = vmand %vm462_vm0, %vm497_vm3 }
 0x115   : > { %501 = vst [vmem:[#allocation2 + $0xc] sm:$0x1] %v500_v18  ;;  %v509_v22 = vsel %vm4011_vm6, 0, %v508_v20  ;;  %v476_v23 = vld [vmem:[#allocation2 + $0x10] sm:$0x1]  ;;  %v3189_v44 = vld [vmem:[#allocation9] sm:$0xff]   ;;  %vm4108_vm13 = vmor %vm985_vm9, %vm986_vm10 }
 0x116   : > { %2966 = vmatpush3.bf16.msra.mxu0 %v3178_v3  ;;  %v502_v24 = vld [vmem:[#allocation2 + $0x14] sm:$0x1]  ;;  %484 = vst [vmem:[#allocation2 + $0x20] sm:$0x1] %v483_v21  ;;  %510 = vst [vmem:[#allocation2 + $0x24] sm:$0x1] %v509_v22  ;;  %2874 = vmatpush3.bf16.msra.mxu1 %v3189_v44 }
 0x117   : > { %2967 = vmatprep.subr.bf16.mxu0 %v3179_v7  ;;  %v477_v25 = vsel %vm4004_vm5, 0, %v476_v23  ;;  %v503_v26 = vsel %vm4011_vm6, 0, %v502_v24  ;;  %v485_v27 = vld [vmem:[#allocation2 + $0x28] sm:$0x1]  ;;  %v511_v28 = vld [vmem:[#allocation2 + $0x2c] sm:$0x1] }
 0x118   : > { %478 = vst [vmem:[#allocation2 + $0x10] sm:$0x1] %v477_v25  ;;  %504 = vst [vmem:[#allocation2 + $0x14] sm:$0x1] %v503_v26  ;;  %v486_v29 = vsel %vm4004_vm5, 0, %v485_v27  ;;  %v512_v30 = vsel %vm4011_vm6, 0, %v511_v28 }
 0x119   : > { %487 = vst [vmem:[#allocation2 + $0x28] sm:$0x1] %v486_v29  ;;  %513 = vst [vmem:[#allocation2 + $0x2c] sm:$0x1] %v512_v30  ;;  %v491_v31 = vld [vmem:[#allocation2 + $0x38] sm:$0x1] }
 0x11a   : > { %2968 = vmatpush3.bf16.msra.mxu0 %v3179_v7  ;;  %v492_v32 = vsel %vm4004_vm5, 0, %v491_v31  ;;  %v494_v33 = vld [vmem:[#allocation2 + $0x40] sm:$0x1]  ;;  %v517_v34 = vld [vmem:[#allocation2 + $0x3c] sm:$0x1]  ;;  %v3192_v47 = vld [vmem:[#allocation9 + $0x50] sm:$0xff]  }
 0x11b   : > { %493 = vst [vmem:[#allocation2 + $0x38] sm:$0x1] %v492_v32  ;;  %v495_v35 = vsel %vm4004_vm5, 0, %v494_v33  ;;  %v518_v36 = vsel %vm4011_vm6, 0, %v517_v34  ;;  %v520_v37 = vld [vmem:[#allocation2 + $0x44] sm:$0x1] }
 0x11c   : > { %496 = vst [vmem:[#allocation2 + $0x40] sm:$0x1] %v495_v35  ;;  %v488_v38 = vld [vmem:[#allocation2 + $0x30] sm:$0x1]  ;;  %519 = vst [vmem:[#allocation2 + $0x3c] sm:$0x1] %v518_v36 }
 0x11d   : > { %2970 = vmatmul.mubr.msk.bf16.vlgmr.msra.gmra.mrb[0].mxu0 %vm590_vm4, %v3181_v12  ;;  %v521_v39 = vsel %vm4011_vm6, 0, %v520_v37  ;;  %v489_v40 = vsel %vm4004_vm5, 0, %v488_v38  ;;  %v514_v41 = vld [vmem:[#allocation2 + $0x34] sm:$0x1]  ;;  %v3190_v45 = vld [vmem:[#allocation9 + $0x48] sm:$0xff]   ;;  %v3193_v48 = vld [vmem:[#allocation9 + $0x10] sm:$0xff]  }
 0x11e   : > { %2973 = vmatprep.mubr.msk.bf16.mxu0 %vm590_vm4, %v3182_v13  ;;  %522 = vst [vmem:[#allocation2 + $0x44] sm:$0x1] %v521_v39  ;;  %490 = vst [vmem:[#allocation2 + $0x30] sm:$0x1] %v489_v40  ;;  %v515_v42 = vsel %vm4011_vm6, 0, %v514_v41  ;;  %v3191_v46 = vld [vmem:[#allocation9 + $0x8] sm:$0xff]   ;;  %2875 = vmatprep.subr.bf16.mxu1 %v3190_v45 }
 0x11f   : > { %516 = vst [vmem:[#allocation2 + $0x34] sm:$0x1] %v515_v42  ;;  %2876 = vmatpush3.bf16.msra.mxu1 %v3191_v46  ;;  %v3194_v49 = vld [vmem:[#allocation9 + $0x58] sm:$0xff]   ;;  %v3196_v51 = vld [vmem:[#allocation9 + $0x60] sm:$0xff]   ;;  %v3198_v53 = vld [vmem:[#allocation9 + $0x68] sm:$0xff]   ;;  %s3614_s16 = smov 64  }
 0x120   : > { %2877 = vmatprep.subr.bf16.mxu1 %v3192_v47  ;;  %v3195_v50 = vld [vmem:[#allocation9 + $0x18] sm:$0xff]   ;;  %v3197_v52 = vld [vmem:[#allocation9 + $0x20] sm:$0xff]   ;;  %v3199_v54 = vld [vmem:[#allocation9 + $0x28] sm:$0xff]   ;;  %vm847_vm8 = vsmask.f32 7440  ;;  %s2685_s29 = sshll.u32 %s3968_s26, 6 }
 0x121   : > { %v830_v55 = vld [vmem:[#allocation2] sm:$0xf]  ;;  %v1212_v60 = vld [vmem:[#allocation2 + $0x48] sm:$0xf]  ;;  %v4054_v61 = vld [vmem:[#allocation8] ss:$0 sm:$0xff] }
 0x122   : > { %v850_v56 = vshrl.u32 %v830_v55, 16  ;;  %v853_v57 = vshll.u32 %v830_v55, 16  ;;  %v4056_v62 = vld [vmem:[#allocation2 + $0x4] sm:$0x1]  ;;  %v1320_v63 = vshrl.u32 %v1212_v60, 16  ;;  %v1323_v1 = vshll.u32 %v1212_v60, 16  ;;  %vm4098_vm12 = vmor %vm846_vm7, %vm847_vm8 }
 0x123   : > { %2878 = vmatpush3.bf16.msra.mxu1 %v3193_v48  ;;  %v859_v4 = vshll.u32 %v4056_v62, 16  ;;  %v4066_v15 = vld [vmem:[#allocation2] sm:$0xe]  ;;  %v4073_v24 = vld [vmem:[#allocation2 + $0x4c] sm:$0x1]  ;;  %v990_v26 = vrot.slane %v4056_v62, 5 }
 0x124   : > { %2879 = vmatprep.subr.bf16.mxu1 %v3194_v49  ;;  %v852_v58 = vrot.slane %v850_v56, 4  ;;  %v855_v59 = vrot.slane %v853_v57, 5  ;;  %v4062_v13 = vrot.slane %v1320_v63, 4  ;;  %v2707_v25 = vrot.slane %v4066_v15, 9  ;;  %v794_v32 = vld [vmem:[#allocation2 + $0x18] sm:$0xf] }
 0x125   : > { %2974 = vmatmul.mubr.msk.bf16.gmra.mrb[4].mxu0 %vm590_vm4, %v3183_v14  ;;  %v4064_v14 = vrot.slane %v1323_v1, 5  ;;  %v4071_v19 = vrot.slane %v859_v4, 5  ;;  %v1329_v30 = vshll.u32 %v4073_v24, 16  ;;  %v797_v33 = vld [vmem:[#allocation2 + $0x1c] sm:$0x1]  ;;  %v3202_v15 = vld [vmem:[#allocation9 + $0x78] sm:$0xff]  }
 0x126   : > { %2235 = vmatprep.mubr.bf16.mxu0 %v4702_v0  ;;  %v856_v3 = vor.u32 %v855_v59, %v852_v58  ;;  %v782_v39 = vld [vmem:[#allocation2 + $0x8] sm:$0xf]  ;;  %v785_v46 = vld [vmem:[#allocation2 + $0xc] sm:$0x1]  ;;  %v803_v59 = vld [vmem:[#allocation2 + $0x24] sm:$0x1] }
 0x127   : > { %2880 = vmatpush3.bf16.msra.mxu1 %v3195_v50  ;;  %v1326_v29 = vor.u32 %v4064_v14, %v4062_v13  ;;  %v4140_v62 = vrot.slane %v1329_v30, 5  ;;  %s4625_s1 = scalar_lea.vmem [#allocation18], %s2685_s29  ;;  %s2864_s22 = sshll.u32 %s3689_s15, 10 }
 0x128   : > { %2881 = vmatprep.subr.bf16.mxu1 %v3196_v51  ;;  %v4069_v18 = vrot.slane %v856_v3, 4  ;;  %s2512_s3 = sshll.u32 %s4625_s1, 4  ;;  %s4780_s20 = sld [smem:[#allocation37_spill]]  ;;  %s4635_s3 = int_to_ptr.vmem [resolvable:$true] %s2512_s3 }
 0x129   : > { %s2498_s23 = scalar_lea.sflag [#allocation5], %s3968_s26  ;;  %s3516_s9 = scalar_lea.vmem %s4635_s3, 1024 }
 0x12a   : > { %p3517_p12 = scmp.ne.s32.totalorder %s4635_s3, %s3516_s9  ;;  %p4781_p13 = scmp.ne.s32.totalorder %s4724_s13, 0 }
 0x12b   : > { %2882 = vmatpush3.bf16.msra.mxu1 %v3197_v52  ;;  %s3615_s15 = smov [#allocation18]  }
 0x12c   : > { %2883 = vmatprep.subr.bf16.mxu1 %v3198_v53  ;;  %p3518_p1 = pnand %p3517_p12, %p4781_p13  ;;  %s3520_s25 = sshll.u32 %s3615_s15, 4  ;;  %s3521_s25 = int_to_ptr.vmem [resolvable:$false] %s3520_s25 }
 0x12d   : > { %s3522_s18 = scalar_lea.vmem %s3521_s25, 2048  ;;  %p3523_p2 = scmp.lt.s32.totalorder %s4635_s3, %s3521_s25 }
 0x12e   : > { %s4640_s24 = scalar_lea.hbm %s4780_s20, %s2864_s22  ;;  %p3519_p3 = pneg %p3518_p1 }
 0x12f   : > { %2884 = vmatpush3.bf16.msra.mxu1 %v3199_v54  ;;  %v800_v54 = vld [vmem:[#allocation2 + $0x20] sm:$0xf]  ;;  %p3524_p8 = scmp.lt.s32.totalorder %s3522_s18, %s3516_s9 }
 0x131   : > { %p3525_p4 = por %p3524_p8, %p3523_p2 }
 0x133   : > { %p3526_p10 = pnand %p3525_p4, %p3519_p3 }
 0x1f0   : > { %v2971_v2 = vpop.f32.mrb[0].mxu0 }
 0x1f1   : > { %v646_v6 = vadd.f32 %v2971_v2, %v4054_v61  ;;  %v637_v7 = vpop.f32.mrb[1].mxu0 }
 0x1f2   : > { %v638_v8 = vadd.f32 %v4054_v61, %v637_v7  ;;  %v2972_v9 = vpop.f32.mrb[2].mxu0  ;;  %v791_v7 = vld [vmem:[#allocation2 + $0x14] sm:$0x1] }
 0x1f3   : > { %v670_v10 = vmax.f32 %v646_v6, 0.0  ;;  %v649_v11 = vadd.f32 %v2972_v9, %v4054_v61  ;;  %v640_v12 = vpop.f32.mrb[3].mxu0  ;;  %v788_v6 = vld [vmem:[#allocation2 + $0x10] sm:$0xf] }
 0x1f4   : > { %v668_v16 = vmax.f32 %v638_v8, 0.0  ;;  %v641_v17 = vadd.f32 %v4054_v61, %v640_v12  ;;  %v3200_v8 = vld [vmem:[#allocation9 + $0x70] sm:$0xff]  }
 0x1f5   : > { %v2849_v20 = vpack.c.bf16 %v670_v10, %v670_v10  ;;  %v671_v21 = vmax.f32 %v649_v11, 0.0  ;;  %2885 = vmatprep.subr.bf16.mxu1 %v3200_v8 }
 0x1f6   : > { %v2847_v22 = vpack.c.bf16 %v668_v16, %v668_v16  ;;  %v669_v23 = vmax.f32 %v641_v17, 0.0 }
 0x1f7   : > { %v717_v27 = vshrl.u32 %v2849_v20, 16  ;;  %v2850_v28 = vpack.c.bf16 %v671_v21, %v671_v21  ;;  %v720_v31 = vshll.u32 %v2849_v20, 16 }
 0x1f8   : > { %v701_v34 = vshrl.u32 %v2847_v22, 16  ;;  %v704_v35 = vshll.u32 %v2847_v22, 16  ;;  %v2848_v36 = vpack.c.bf16 %v669_v23, %v669_v23  ;;  %v2975_v37 = vpop.f32.mrb[4].mxu0 }
 0x1f9   : > { %v719_v38 = vrot.slane %v717_v27, 7  ;;  %v725_v40 = vshrl.u32 %v2850_v28, 16  ;;  %v728_v41 = vshll.u32 %v2850_v28, 16  ;;  %v662_v42 = vadd.f32 %v2975_v37, %v4054_v61  ;;  %v653_v43 = vpop.f32.mrb[5].mxu0  ;;  %v4118_v37 = vld [vmem:[#allocation2 + $0x48] sm:$0xe] }
 0x1fa   : > { %v703_v45 = vrot.slane %v701_v34, 7  ;;  %v709_v47 = vshrl.u32 %v2848_v36, 16  ;;  %v712_v48 = vshll.u32 %v2848_v36, 16  ;;  %v654_v49 = vadd.f32 %v4054_v61, %v653_v43  ;;  %v2976_v50 = vpop.f32.mrb[6].mxu0  ;;  %v3201_v43 = vld [vmem:[#allocation9 + $0x30] sm:$0xff]  }
 0x1fb   : > { %v722_v51 = vor.u32 %v720_v31, %v719_v38  ;;  %v723_v52 = vrot.slane %v719_v38, 4  ;;  %v727_v53 = vrot.slane %v725_v40, 7  ;;  %v674_v55 = vmax.f32 %v662_v42, 0.0  ;;  %v656_v56 = vpop.f32.mrb[7].mxu0  ;;  %v806_v38 = vld [vmem:[#allocation2 + $0x28] sm:$0xf]  ;;  %2886 = vmatpush3.bf16.msra.mxu1 %v3201_v43 }
 0x1fc   : > { %v706_v57 = vor.u32 %v704_v35, %v703_v45  ;;  %v707_v58 = vrot.slane %v703_v45, 4  ;;  %v711_v60 = vrot.slane %v709_v47, 7  ;;  %v672_v63 = vmax.f32 %v654_v49, 0.0  ;;  %2887 = vmatprep.subr.bf16.mxu1 %v3202_v15 }
 0x1fd   : > { %v795_v1 = vsel %vm4083_vm11, %v722_v51, %v794_v32  ;;  %v798_v2 = vsel %vm4004_vm5, %v723_v52, %v797_v33  ;;  %v730_v3 = vor.u32 %v728_v41, %v727_v53  ;;  %v731_v4 = vrot.slane %v727_v53, 4 }
 0x1fe   : > { %796 = vst [vmem:[#allocation2 + $0x18] sm:$0xf] %v795_v1  ;;  %799 = vst [vmem:[#allocation2 + $0x1c] sm:$0x1] %v798_v2  ;;  %v783_v9 = vsel %vm4083_vm11, %v706_v57, %v782_v39  ;;  %v786_v10 = vsel %vm4004_vm5, %v707_v58, %v785_v46  ;;  %v714_v11 = vor.u32 %v712_v48, %v711_v60  ;;  %v715_v12 = vrot.slane %v711_v60, 4 }
 0x1ff   : > { %784 = vst [vmem:[#allocation2 + $0x8] sm:$0xf] %v783_v9  ;;  %787 = vst [vmem:[#allocation2 + $0xc] sm:$0x1] %v786_v10  ;;  %v801_v17 = vsel %vm4083_vm11, %v730_v3, %v800_v54  ;;  %v804_v20 = vsel %vm4004_vm5, %v731_v4, %v803_v59  ;;  %v2853_v21 = vpack.c.bf16 %v674_v55, %v674_v55  ;;  %v809_v39 = vld [vmem:[#allocation2 + $0x2c] sm:$0x1] }
 0x200   : > { %v2851_v22 = vpack.c.bf16 %v672_v63, %v672_v63  ;;  %802 = vst [vmem:[#allocation2 + $0x20] sm:$0xf] %v801_v17  ;;  %805 = vst [vmem:[#allocation2 + $0x24] sm:$0x1] %v804_v20  ;;  %v789_v27 = vsel %vm4083_vm11, %v714_v11, %v788_v6  ;;  %v792_v28 = vsel %vm4004_vm5, %v715_v12, %v791_v7  ;;  %v818_v46 = vld [vmem:[#allocation2 + $0x38] sm:$0xf] }
 0x201   : > { %v665_v31 = vadd.f32 %v2976_v50, %v4054_v61  ;;  %v657_v32 = vadd.f32 %v4054_v61, %v656_v56  ;;  %790 = vst [vmem:[#allocation2 + $0x10] sm:$0xf] %v789_v27  ;;  %793 = vst [vmem:[#allocation2 + $0x14] sm:$0x1] %v792_v28  ;;  %v749_v33 = vshrl.u32 %v2853_v21, 16  ;;  %v752_v34 = vshll.u32 %v2853_v21, 16 }
 0x202   : > { %v733_v35 = vshrl.u32 %v2851_v22, 16  ;;  %v736_v36 = vshll.u32 %v2851_v22, 16  ;;  %v862_v42 = vsel %vm4098_vm12, %v4069_v18, %v4071_v19  ;;  %v4130_v61 = vsel %vm4108_vm13, %v2707_v25, %v990_v26  ;;  %v821_v50 = vld [vmem:[#allocation2 + $0x3c] sm:$0x1]  ;;  %v3203_v25 = vld [vmem:[#allocation9 + $0x38] sm:$0xff]  }
 0x203   : > { %v675_v40 = vmax.f32 %v665_v31, 0.0  ;;  %v673_v41 = vmax.f32 %v657_v32, 0.0  ;;  %v751_v45 = vrot.slane %v749_v33, 7  ;;  %v4135_v48 = vrot.slane %v1326_v29, 4  ;;  %v824_v1 = vld [vmem:[#allocation2 + $0x40] sm:$0xf]  ;;  %2888 = vmatpush3.bf16.msra.mxu1 %v3203_v25 }
 0x204   : > { %v735_v47 = vrot.slane %v733_v35, 7  ;;  %v1387_v49 = vrot.slane %v4073_v24, 5  ;;  %v2730_v26 = vrot.slane %v4118_v37, 9  ;;  %v827_v2 = vld [vmem:[#allocation2 + $0x44] sm:$0x1] }
 0x205   : > { %v2854_v51 = vpack.c.bf16 %v675_v40, %v675_v40  ;;  %v2852_v52 = vpack.c.bf16 %v673_v41, %v673_v41  ;;  %v754_v53 = vor.u32 %v752_v34, %v751_v45  ;;  %v755_v54 = vrot.slane %v751_v45, 4  ;;  %v1022_v58 = vld [vmem:[#allocation2 + $0x18] sm:$0xf]  ;;  %v812_v3 = vld [vmem:[#allocation2 + $0x30] sm:$0xf] }
 0x206   : > { %v738_v55 = vor.u32 %v736_v36, %v735_v47  ;;  %v739_v13 = vrot.slane %v735_v47, 4  ;;  %v815_v11 = vld [vmem:[#allocation2 + $0x34] sm:$0x1]  ;;  %v1065_v17 = vshrl.u32 %v1022_v58, 16  ;;  %v1068_v20 = vshll.u32 %v1022_v58, 16 }
 0x207   : > { %v757_v14 = vshrl.u32 %v2854_v51, 16  ;;  %v760_v29 = vshll.u32 %v2854_v51, 16  ;;  %v741_v56 = vshrl.u32 %v2852_v52, 16  ;;  %v744_v57 = vshll.u32 %v2852_v52, 16  ;;  %v1023_v4 = vld [vmem:[#allocation2 + $0x20] sm:$0xf] }
 0x208   : > { %v819_v59 = vsel %vm4083_vm11, %v754_v53, %v818_v46  ;;  %v822_v30 = vsel %vm4004_vm5, %v755_v54, %v821_v50  ;;  %v807_v60 = vsel %vm4083_vm11, %v738_v55, %v806_v38  ;;  %v810_v63 = vsel %vm4004_vm5, %v739_v13, %v809_v39  ;;  %v1021_v10 = vld [vmem:[#allocation2 + $0x10] sm:$0xf]  ;;  %v1020_v32 = vld [vmem:[#allocation2 + $0x8] sm:$0xf]  ;;  %v4162_v51 = vld [vmem:[#allocation2 + $0xc] sm:$0x1] }
 0x209   : > { %820 = vst [vmem:[#allocation2 + $0x38] sm:$0xf] %v819_v59  ;;  %823 = vst [vmem:[#allocation2 + $0x3c] sm:$0x1] %v822_v30  ;;  %v759_v6 = vrot.slane %v757_v14, 7  ;;  %v743_v7 = vrot.slane %v741_v56, 7  ;;  %v2744_v12 = vcombine.low %v1022_v58, %v1023_v4  ;;  %v2743_v52 = vcombine.low %v1020_v32, %v1021_v10 }
 0x20a   : > { %808 = vst [vmem:[#allocation2 + $0x28] sm:$0xf] %v807_v60  ;;  %811 = vst [vmem:[#allocation2 + $0x2c] sm:$0x1] %v810_v63  ;;  %v1079_v8 = vshrl.u32 %v1023_v4, 16  ;;  %v1082_v9 = vshll.u32 %v1023_v4, 16 }
 0x20b   : > { %v1051_v21 = vshrl.u32 %v1021_v10, 16  ;;  %v762_v22 = vor.u32 %v760_v29, %v759_v6  ;;  %v763_v27 = vrot.slane %v759_v6, 4  ;;  %v746_v28 = vor.u32 %v744_v57, %v743_v7  ;;  %1463 = vrot.lane.b32.xlu1 %v2744_v12, %s3614_s16  ;;  %v4152_v38 = vld [vmem:[#allocation2 + $0x8] sm:$0xf]  ;;  %v4165_v44 = vld [vmem:[#allocation2 + $0x10] sm:$0xf]  ;;  %1461 = vrot.lane.b32.xlu0 %v2743_v52, %s3614_s16 }
 0x20c   : > { %v747_v31 = vrot.slane %v743_v7, 4  ;;  %v1081_v33 = vrot.slane %v1079_v8, 4  ;;  %v1084_v34 = vrot.slane %v1082_v9, 5  ;;  %v1067_v35 = vrot.slane %v1065_v17, 4  ;;  %4748 = vst [vmem:[#allocation25_spill] sm:$0xff] %v4152_v38  ;;  %v3204_v54 = vld [vmem:[#allocation9 + $0xc0] sm:$0xff]  }
 0x20d   : > { %v1070_v36 = vrot.slane %v1068_v20, 5  ;;  %v825_v39 = vsel %vm4083_vm11, %v762_v22, %v824_v1  ;;  %v828_v40 = vsel %vm4004_vm5, %v763_v27, %v827_v2  ;;  %v813_v41 = vsel %vm4083_vm11, %v746_v28, %v812_v3  ;;  %v4168_v13 = vld [vmem:[#allocation2 + $0x18] sm:$0xf]  ;;  %v4184_v30 = vld [vmem:[#allocation2 + $0x14] sm:$0x1]  ;;  %2913 = vmatprep.subr.bf16.mxu1 %v3204_v54 }
 0x20e   : > { %v816_v43 = vsel %vm4004_vm5, %v747_v31, %v815_v11  ;;  %826 = vst [vmem:[#allocation2 + $0x40] sm:$0xf] %v825_v39  ;;  %829 = vst [vmem:[#allocation2 + $0x44] sm:$0x1] %v828_v40  ;;  %v1085_v45 = vor.u32 %v1084_v34, %v1081_v33  ;;  %v1053_v47 = vrot.slane %v1051_v21, 4  ;;  %v1054_v50 = vshll.u32 %v1021_v10, 16 }
 0x20f   : > { %814 = vst [vmem:[#allocation2 + $0x30] sm:$0xf] %v813_v41  ;;  %817 = vst [vmem:[#allocation2 + $0x34] sm:$0x1] %v816_v43  ;;  %v1071_v46 = vor.u32 %v1070_v36, %v1067_v35  ;;  %v1037_v15 = vshrl.u32 %v1020_v32, 16  ;;  %v1040_v25 = vshll.u32 %v1020_v32, 16  ;;  %v4180_v29 = vsel %vm4108_vm13, %v2730_v26, %v1387_v49 }
 0x210   : > { %v864_v53 = vshrl.u32 %v4152_v38, 16  ;;  %v1056_v5 = vrot.slane %v1054_v50, 5  ;;  %v867_v55 = vshll.u32 %v4152_v38, 16  ;;  %4749 = vst [vmem:[#allocation26_spill] sm:$0xff] %v4180_v29  ;;  %v873_v59 = vshll.u32 %v4162_v51, 16 }
 0x211   : > { %v1039_v56 = vrot.slane %v1037_v15, 4  ;;  %v1042_v57 = vrot.slane %v1040_v25, 5  ;;  %v4186_v1 = vld [vmem:[#allocation2 + $0x1c] sm:$0x1]  ;;  %v878_v24 = vshrl.u32 %v4165_v44, 16  ;;  %v881_v37 = vshll.u32 %v4165_v44, 16 }
 0x212   : > { %v866_v58 = vrot.slane %v864_v53, 4  ;;  %v1057_v60 = vor.u32 %v1056_v5, %v1053_v47  ;;  %v869_v63 = vrot.slane %v867_v55, 5  ;;  %v4190_v49 = vrot.slane %v1085_v45, 4  ;;  %v1024_v4 = vld [vmem:[#allocation2 + $0x28] sm:$0xf] }
 0x213   : > { %v4192_v26 = vrot.slane %v1071_v46, 4  ;;  %v1043_v2 = vor.u32 %v1042_v57, %v1039_v56  ;;  %v892_v3 = vshrl.u32 %v4168_v13, 16  ;;  %v880_v7 = vrot.slane %v878_v24, 4  ;;  %v4200_v35 = vld [vmem:[#allocation2 + $0x20] sm:$0xf] }
 0x214   : > { %v870_v6 = vor.u32 %v869_v63, %v866_v58  ;;  %v883_v8 = vrot.slane %v881_v37, 5  ;;  %v887_v9 = vshll.u32 %v4184_v30, 16  ;;  %v4196_v10 = vrot.slane %v1057_v60, 4  ;;  %v4204_v43 = vld [vmem:[#allocation2 + $0x24] sm:$0x1] }
 0x215   : > { %v875_v11 = vrot.slane %v873_v59, 5  ;;  %v894_v12 = vrot.slane %v892_v3, 4  ;;  %v895_v17 = vshll.u32 %v4168_v13, 16  ;;  %v901_v27 = vshll.u32 %v4186_v1, 16  ;;  %v4211_v52 = vld [vmem:[#allocation2 + $0x28] sm:$0xf] }
 0x216   : > { %v1025_v20 = vld [vmem:[#allocation2 + $0x30] sm:$0xf]  ;;  %v871_v21 = vrot.slane %v870_v6, 4  ;;  %v884_v22 = vor.u32 %v883_v8, %v880_v7  ;;  %v1093_v28 = vshrl.u32 %v1024_v4, 16  ;;  %v1096_v32 = vshll.u32 %v1024_v4, 16 }
 0x217   : > { %v897_v31 = vrot.slane %v895_v17, 5  ;;  %v1107_v33 = vshrl.u32 %v1025_v20, 16  ;;  %v1110_v34 = vshll.u32 %v1025_v20, 16  ;;  %v889_v40 = vrot.slane %v887_v9, 5  ;;  %v1026_v59 = vld [vmem:[#allocation2 + $0x38] sm:$0xf] }
 0x218   : > { %v876_v36 = vsel %vm4098_vm12, %v871_v21, %v875_v11  ;;  %v885_v39 = vrot.slane %v884_v22, 4  ;;  %v1095_v41 = vrot.slane %v1093_v28, 4  ;;  %v1098_v47 = vrot.slane %v1096_v32, 5  ;;  %v1027_v3 = vld [vmem:[#allocation2 + $0x40] sm:$0xf] }
 0x219   : > { %v2735_v45 = vcombine.low %v862_v42, %v876_v36  ;;  %v898_v46 = vor.u32 %v897_v31, %v894_v12  ;;  %v1109_v50 = vrot.slane %v1107_v33, 4  ;;  %v903_v25 = vrot.slane %v901_v27, 5  ;;  %v4225_v6 = vld [vmem:[#allocation2 + $0x2c] sm:$0x1]  ;;  %v4232_v36 = vld [vmem:[#allocation2 + $0x38] sm:$0xf] }
 0x21a   : > { %v890_v15 = vsel %vm4098_vm12, %v885_v39, %v889_v40  ;;  %v1112_v53 = vrot.slane %v1110_v34, 5  ;;  %v906_v54 = vshrl.u32 %v4200_v35, 16  ;;  %v2745_v55 = vcombine.low %v1024_v4, %v1025_v20  ;;  %v4229_v20 = vld [vmem:[#allocation2 + $0x30] sm:$0xf]  ;;  %v1150_v0 = vld [vmem:[#allocation2 + $0x18] sm:$0xe] }
 0x21b   : > { %1421 = vrot.lane.b32.xlu0 %v2735_v45, %s3614_s16  ;;  %v899_v5 = vrot.slane %v898_v46, 4  ;;  %v909_v56 = vshll.u32 %v4200_v35, 16  ;;  %v915_v18 = vshll.u32 %v4204_v43, 16  ;;  %v4219_v19 = vrot.slane %v1043_v2, 4  ;;  %v4234_v45 = vld [vmem:[#allocation2 + $0x34] sm:$0x1] }
 0x21c   : > { %v908_v42 = vrot.slane %v906_v54, 4  ;;  %v920_v57 = vshrl.u32 %v4211_v52, 16  ;;  %v923_v58 = vshll.u32 %v4211_v52, 16  ;;  %v1099_v63 = vor.u32 %v1098_v47, %v1095_v41  ;;  %v1152_v38 = vld [vmem:[#allocation2 + $0x28] sm:$0xe] }
 0x21d   : > { %v904_v60 = vsel %vm4098_vm12, %v899_v5, %v903_v25  ;;  %v1113_v24 = vor.u32 %v1112_v53, %v1109_v50  ;;  %v911_v37 = vrot.slane %v909_v56, 5  ;;  %v917_v7 = vrot.slane %v915_v18, 5  ;;  %v4247_v56 = vld [vmem:[#allocation2 + $0x10] sm:$0xf]  ;;  %v4249_v18 = vld [vmem:[#allocation2 + $0x14] sm:$0x1] }
 0x21e   : > { %v2736_v4 = vcombine.low %v890_v15, %v904_v60  ;;  %v922_v8 = vrot.slane %v920_v57, 4  ;;  %v925_v2 = vrot.slane %v923_v58, 5  ;;  %v929_v11 = vshll.u32 %v4225_v6, 16  ;;  %4750 = vst [vmem:[#allocation27_spill] sm:$0xff] %v4249_v18 }
 0x21f   : > { %1465 = vrot.lane.b32.xlu0 %v2745_v55, %s3614_s16  ;;  %v912_v9 = vor.u32 %v911_v37, %v908_v42  ;;  %v1121_v12 = vshrl.u32 %v1026_v59, 16  ;;  %v1124_v17 = vshll.u32 %v1026_v59, 16  ;;  %v1135_v22 = vshrl.u32 %v1027_v3, 16 }
 0x220   : > { %1423 = vrot.lane.b32.xlu1 %v2736_v4, %s3614_s16  ;;  %v926_v21 = vor.u32 %v925_v2, %v922_v8  ;;  %v1138_v27 = vshll.u32 %v1027_v3, 16  ;;  %v2746_v28 = vcombine.low %v1026_v59, %v1027_v3  ;;  %v931_v32 = vrot.slane %v929_v11, 5  ;;  %v4253_v59 = vld [vmem:[#allocation2 + $0x3c] sm:$0x1] }
 0x221   : > { %v913_v31 = vrot.slane %v912_v9, 4  ;;  %v1123_v33 = vrot.slane %v1121_v12, 4  ;;  %v1126_v34 = vrot.slane %v1124_v17, 5  ;;  %v1137_v40 = vrot.slane %v1135_v22, 4  ;;  %v4260_v2 = vld [vmem:[#allocation2 + $0x1c] sm:$0x1] }
 0x222   : > { %v927_v39 = vrot.slane %v926_v21, 4  ;;  %v1140_v41 = vrot.slane %v1138_v27, 5  ;;  %v934_v46 = vshrl.u32 %v4229_v20, 16  ;;  %v4237_v47 = vrot.slane %v1099_v63, 4  ;;  %v4255_v63 = vld [vmem:[#allocation2 + $0x18] sm:$0xf] }
 0x223   : > { %v918_v50 = vsel %vm4098_vm12, %v913_v31, %v917_v7  ;;  %1467 = vrot.lane.b32.xlu0 %v2746_v28, %s3614_s16  ;;  %v937_v15 = vshll.u32 %v4229_v20, 16  ;;  %v943_v25 = vshll.u32 %v4234_v45, 16  ;;  %v1127_v54 = vor.u32 %v1126_v34, %v1123_v33  ;;  %4751 = vst [vmem:[#allocation28_spill] sm:$0xff] %v4260_v2  ;;  %v4269_v33 = vld [vmem:[#allocation2 + $0xc] sm:$0x1] }
 0x224   : > { %v932_v53 = vsel %vm4098_vm12, %v927_v39, %v931_v32  ;;  %v936_v5 = vrot.slane %v934_v46, 4  ;;  %v948_v55 = vshrl.u32 %v4232_v36, 16  ;;  %v4251_v42 = vrot.slane %v1113_v24, 4  ;;  %v1148_v46 = vld [vmem:[#allocation2 + $0x8] sm:$0xe] }
 0x225   : > { %v2737_v57 = vcombine.low %v918_v50, %v932_v53  ;;  %v1141_v58 = vor.u32 %v1140_v41, %v1137_v40  ;;  %v939_v60 = vrot.slane %v937_v15, 5  ;;  %v945_v37 = vrot.slane %v943_v25, 5 }
 0x226   : > { %v950_v3 = vrot.slane %v948_v55, 4  ;;  %v951_v4 = vshll.u32 %v4232_v36, 16  ;;  %v957_v7 = vshll.u32 %v4253_v59, 16  ;;  %v1222_v24 = vshrl.u32 %v4247_v56, 16 }
 0x227   : > { %1425 = vrot.lane.b32.xlu1 %v2737_v57, %s3614_s16  ;;  %v940_v8 = vor.u32 %v939_v60, %v936_v5  ;;  %v1225_v9 = vshll.u32 %v4247_v56, 16  ;;  %v1231_v11 = vshll.u32 %v4249_v18, 16  ;;  %v4265_v12 = vrot.slane %v1127_v54, 4  ;;  %v4276_v54 = vld [vmem:[#allocation2 + $0x14] sm:$0x1] }
 0x228   : > { %v953_v17 = vrot.slane %v951_v4, 5  ;;  %v1236_v21 = vshrl.u32 %v4255_v63, 16  ;;  %v1239_v22 = vshll.u32 %v4255_v63, 16  ;;  %v959_v28 = vrot.slane %v957_v7, 5  ;;  %v1149_v5 = vld [vmem:[#allocation2 + $0x10] sm:$0xe] }
 0x229   : > { %v941_v27 = vrot.slane %v940_v8, 4  ;;  %v1224_v31 = vrot.slane %v1222_v24, 4  ;;  %v1227_v32 = vrot.slane %v1225_v9, 5  ;;  %v1245_v41 = vshll.u32 %v4260_v2, 16  ;;  %v4280_v4 = vld [vmem:[#allocation2 + $0x20] sm:$0xf] }
 0x22a   : > { %v954_v34 = vor.u32 %v953_v17, %v950_v3  ;;  %v1238_v39 = vrot.slane %v1236_v21, 4  ;;  %v1241_v40 = vrot.slane %v1239_v22, 5  ;;  %v4272_v50 = vrot.slane %v1141_v58, 4  ;;  %v1215_v9 = vld [vmem:[#allocation2 + $0x24] sm:$0x1] }
 0x22b   : > { %v946_v15 = vsel %vm4098_vm12, %v941_v27, %v945_v37  ;;  %v1228_v25 = vor.u32 %v1227_v32, %v1224_v31  ;;  %v1233_v53 = vrot.slane %v1231_v11, 5  ;;  %v1247_v8 = vrot.slane %v1245_v41, 5  ;;  %v4286_v22 = vld [vmem:[#allocation2 + $0x28] sm:$0xf]  ;;  %v1151_v3 = vld [vmem:[#allocation2 + $0x20] sm:$0xe] }
 0x22c   : > { %4752 = vst [vmem:[#allocation29_spill] sm:$0xff] %v4272_v50  ;;  %v955_v55 = vrot.slane %v954_v34, 4  ;;  %v1242_v57 = vor.u32 %v1241_v40, %v1238_v39  ;;  %v2715_v58 = vrot.slane %v1148_v46, 9  ;;  %v1174_v24 = vrot.slane %v4269_v33, 5  ;;  %v4291_v34 = vld [vmem:[#allocation2 + $0x2c] sm:$0x1] }
 0x22d   : > { %v1229_v7 = vrot.slane %v1228_v25, 4  ;;  %v2716_v17 = vrot.slane %v1149_v5, 9  ;;  %v1178_v21 = vrot.slane %v4276_v54, 5  ;;  %v1250_v39 = vshrl.u32 %v4280_v4, 16  ;;  %v1335_v25 = vld [vmem:[#allocation2 + $0x20] sm:$0xe] }
 0x22e   : > { %v960_v37 = vsel %vm4098_vm12, %v955_v55, %v959_v28  ;;  %v1243_v11 = vrot.slane %v1242_v57, 4  ;;  %v1253_v41 = vshll.u32 %v4280_v4, 16  ;;  %v1259_v46 = vshll.u32 %v1215_v9, 16  ;;  %v1153_v2 = vld [vmem:[#allocation2 + $0x30] sm:$0xe] }
 0x22f   : > { %v2738_v27 = vcombine.low %v946_v15, %v960_v37  ;;  %v1234_v31 = vsel %vm4098_vm12, %v1229_v7, %v1233_v53  ;;  %v1179_v28 = vsel %vm4108_vm13, %v2716_v17, %v1178_v21  ;;  %v1336_v15 = vld [vmem:[#allocation2 + $0x28] sm:$0xe]  ;;  %v1252_v55 = vrot.slane %v1250_v39, 4  ;;  %v4302_v7 = vld [vmem:[#allocation2 + $0x1c] sm:$0x1] }
 0x230   : > { %v1248_v40 = vsel %vm4098_vm12, %v1243_v11, %v1247_v8  ;;  %v1264_v57 = vshrl.u32 %v4286_v22, 16  ;;  %v1175_v8 = vsel %vm4108_vm13, %v2715_v58, %v1174_v24  ;;  %v1255_v37 = vrot.slane %v1253_v41, 5  ;;  %v4308_v21 = vld [vmem:[#allocation2 + $0x24] sm:$0x1]  ;;  %v4311_v58 = vld [vmem:[#allocation2 + $0x30] sm:$0xf] }
 0x231   : > { %1427 = vrot.lane.b32.xlu1 %v2738_v27, %s3614_s16  ;;  %v2759_v53 = vcombine.low %v1234_v31, %v1248_v40  ;;  %v1267_v11 = vshll.u32 %v4286_v22, 16  ;;  %v1273_v17 = vshll.u32 %v4291_v34, 16  ;;  %v2751_v27 = vcombine.low %v1175_v8, %v1179_v28 }
 0x232   : > { %v1266_v31 = vrot.slane %v1264_v57, 4  ;;  %v2725_v39 = vrot.slane %v1335_v25, 9  ;;  %v1367_v40 = vrot.slane %v1215_v9, 5  ;;  %v1256_v60 = vor.u32 %v1255_v37, %v1252_v55  ;;  %v4321_v55 = vld [vmem:[#allocation2 + $0x38] sm:$0xf] }
 0x233   : > { %1533 = vrot.lane.b32.xlu0 %v2759_v53, %s3614_s16  ;;  %v1261_v5 = vrot.slane %v1259_v46, 5  ;;  %v1269_v32 = vrot.slane %v1267_v11, 5  ;;  %v2726_v14 = vrot.slane %v1336_v15, 9  ;;  %v1275_v24 = vrot.slane %v1273_v17, 5  ;;  %v4324_v37 = vld [vmem:[#allocation2 + $0x34] sm:$0x1] }
 0x234   : > { %v4316_v41 = vsel %vm4108_vm13, %v2725_v39, %v1367_v40  ;;  %v1371_v53 = vrot.slane %v4291_v34, 5  ;;  %v2717_v28 = vrot.slane %v1150_v0, 9  ;;  %v1257_v57 = vrot.slane %v1256_v60, 4  ;;  %4754 = vst [vmem:[#allocation31_spill] sm:$0xff] %v4324_v37 }
 0x235   : > { %1493 = vrot.lane.b32.xlu1 %v2751_v27, %s3614_s16  ;;  %4753 = vst [vmem:[#allocation30_spill] sm:$0xff] %v4316_v41  ;;  %v1270_v25 = vor.u32 %v1269_v32, %v1266_v31  ;;  %v1182_v46 = vrot.slane %v4302_v7, 5  ;;  %v2718_v15 = vrot.slane %v1151_v3, 9  ;;  %v1186_v8 = vrot.slane %v4308_v21, 5  ;;  %v4334_v3 = vld [vmem:[#allocation2 + $0x3c] sm:$0x1] }
 0x236   : > { %v1278_v11 = vshrl.u32 %v4311_v58, 16  ;;  %v1281_v17 = vshll.u32 %v4311_v58, 16  ;;  %v1287_v32 = vshll.u32 %v4324_v37, 16  ;;  %4755 = vst [vmem:[#allocation32_spill] sm:$0xff] %v4334_v3  ;;  %v1292_v40 = vshrl.u32 %v4321_v55, 16 }
 0x237   : > { %v1271_v27 = vrot.slane %v1270_v25, 4  ;;  %v1183_v60 = vsel %vm4108_vm13, %v2717_v28, %v1182_v46  ;;  %v1187_v34 = vsel %vm4108_vm13, %v2718_v15, %v1186_v8  ;;  %v1262_v9 = vsel %vm4098_vm12, %v1257_v57, %v1261_v5  ;;  %v4342_v46 = vld [vmem:[#allocation2 + $0x2c] sm:$0x1]  ;;  %v962_v41 = vld [vmem:[#allocation2 + $0x8] sm:$0xe] }
 0x238   : > { %v1280_v31 = vrot.slane %v1278_v11, 4  ;;  %v1283_v39 = vrot.slane %v1281_v17, 5  ;;  %v2752_v0 = vcombine.low %v1183_v60, %v1187_v34  ;;  %v1295_v28 = vshll.u32 %v4321_v55, 16  ;;  %v4345_v17 = vld [vmem:[#allocation2 + $0x34] sm:$0x1] }
 0x239   : > { %v1276_v25 = vsel %vm4098_vm12, %v1271_v27, %v1275_v24  ;;  %v1294_v8 = vrot.slane %v1292_v40, 4  ;;  %v1301_v11 = vshll.u32 %v4334_v3, 16  ;;  %v4349_v5 = vsel %vm4108_vm13, %v2726_v14, %v1371_v53  ;;  %v4353_v60 = vld [vmem:[#allocation2 + $0x40] sm:$0xf]  ;;  %v4357_v40 = vld [vmem:[#allocation2 + $0x44] sm:$0x1] }
 0x23a   : > { %v2760_v29 = vcombine.low %v1262_v9, %v1276_v25  ;;  %v1284_v15 = vor.u32 %v1283_v39, %v1280_v31  ;;  %4756 = vst [vmem:[#allocation33_spill] sm:$0xff] %v4349_v5  ;;  %1495 = vrot.lane.b32.xlu1 %v2752_v0, %s3614_s16  ;;  %v1289_v24 = vrot.slane %v1287_v32, 5  ;;  %v1297_v57 = vrot.slane %v1295_v28, 5  ;;  %4757 = vst [vmem:[#allocation34_spill] sm:$0xff] %v4353_v60  ;;  %v4361_v32 = vld [vmem:[#allocation2 + $0x3c] sm:$0x1] }
 0x23b   : > { %v1303_v34 = vrot.slane %v1301_v11, 5  ;;  %v2719_v39 = vrot.slane %v1152_v38, 9  ;;  %v1190_v14 = vrot.slane %v4342_v46, 5  ;;  %v2720_v53 = vrot.slane %v1153_v2, 9  ;;  %v1154_v11 = vld [vmem:[#allocation2 + $0x38] sm:$0xe] }
 0x23c   : > { %1535 = vrot.lane.b32.xlu0 %v2760_v29, %s3614_s16  ;;  %v1285_v9 = vrot.slane %v1284_v15, 4  ;;  %v1298_v25 = vor.u32 %v1297_v57, %v1294_v8  ;;  %v1194_v0 = vrot.slane %v4345_v17, 5  ;;  %v1306_v27 = vshrl.u32 %v4353_v60, 16  ;;  %v4373_v31 = vld [vmem:[#allocation2 + $0x44] sm:$0x1] }
 0x23d   : > { %v1309_v29 = vshll.u32 %v4353_v60, 16  ;;  %v1315_v15 = vshll.u32 %v4357_v40, 16  ;;  %v1191_v2 = vsel %vm4108_vm13, %v2719_v39, %v1190_v14  ;;  %v1155_v28 = vld [vmem:[#allocation2 + $0x40] sm:$0xe]  ;;  %v963_v39 = vld [vmem:[#allocation2 + $0x10] sm:$0xe] }
 0x23e   : > { %v1290_v38 = vsel %vm4098_vm12, %v1285_v9, %v1289_v24  ;;  %v1299_v8 = vrot.slane %v1298_v25, 4  ;;  %v1195_v57 = vsel %vm4108_vm13, %v2720_v53, %v1194_v0  ;;  %v1308_v60 = vrot.slane %v1306_v27, 4  ;;  %v964_v3 = vld [vmem:[#allocation2 + $0x18] sm:$0xe] }
 0x23f   : > { %v2753_v37 = vcombine.low %v1191_v2, %v1195_v57  ;;  %v1311_v18 = vrot.slane %v1309_v29, 5  ;;  %v1317_v24 = vrot.slane %v1315_v15, 5  ;;  %v1130_v9 = vshll.u32 %v4361_v32, 16 }
 0x240   : > { %v1304_v5 = vsel %vm4098_vm12, %v1299_v8, %v1303_v34  ;;  %v2721_v25 = vrot.slane %v1154_v11, 9  ;;  %v1198_v0 = vrot.slane %v4361_v32, 5  ;;  %v2722_v50 = vrot.slane %v1155_v28, 9 }
 0x241   : > { %v2761_v14 = vcombine.low %v1290_v38, %v1304_v5  ;;  %1497 = vrot.lane.b32.xlu1 %v2753_v37, %s3614_s16  ;;  %v1312_v53 = vor.u32 %v1311_v18, %v1308_v60  ;;  %v1144_v27 = vshll.u32 %v4373_v31, 16  ;;  %v1202_v29 = vrot.slane %v4373_v31, 5  ;;  %v965_v37 = vld [vmem:[#allocation2 + $0x20] sm:$0xe]  ;;  %v966_v38 = vld [vmem:[#allocation2 + $0x28] sm:$0xe] }
 0x242   : > { %v2708_v2 = vrot.slane %v962_v41, 9  ;;  %v994_v34 = vrot.slane %v4162_v51, 5  ;;  %v1199_v5 = vsel %vm4108_vm13, %v2721_v25, %v1198_v0  ;;  %v2709_v11 = vrot.slane %v963_v39, 9 }
 0x243   : > { %1537 = vrot.lane.b32.xlu0 %v2761_v14, %s3614_s16  ;;  %v1313_v15 = vrot.slane %v1312_v53, 4  ;;  %v998_v18 = vrot.slane %v4184_v30, 5  ;;  %v1203_v60 = vsel %vm4108_vm13, %v2722_v50, %v1202_v29  ;;  %v2710_v41 = vrot.slane %v964_v3, 9  ;;  %v967_v50 = vld [vmem:[#allocation2 + $0x30] sm:$0xe] }
 0x244   : > { %v4392_v28 = vsel %vm4108_vm13, %v2708_v2, %v994_v34  ;;  %v1002_v51 = vrot.slane %v4186_v1, 5  ;;  %v2754_v57 = vcombine.low %v1199_v5, %v1203_v60  ;;  %v4758_v3 = vsel %vm4098_vm12, %v4135_v48, %v4140_v62  ;;  %v968_v53 = vld [vmem:[#allocation2 + $0x38] sm:$0xe] }
 0x245   : > { %v1318_v8 = vsel %vm4098_vm12, %v1313_v15, %v1317_v24  ;;  %v2739_v25 = vcombine.low %v4130_v61, %v4392_v28  ;;  %v4401_v30 = vsel %vm4108_vm13, %v2709_v11, %v998_v18  ;;  %v2732_v24 = vcombine.low %v4165_v44, %v4168_v13  ;;  %v3208_v61 = vld [vmem:[#allocation9 + $0x88] sm:$0xff]   ;;  %v3209_v28 = vld [vmem:[#allocation9 + $0xd0] sm:$0xff]  }
 0x246   : > { %v2762_v39 = vcombine.low %v1318_v8, %v4758_v3  ;;  %v4410_v1 = vsel %vm4108_vm13, %v2710_v41, %v1002_v51  ;;  %v2711_v14 = vrot.slane %v965_v37, 9  ;;  %1499 = vrot.lane.b32.xlu1 %v2754_v57, %s3614_s16  ;;  %v1006_v29 = vrot.slane %v4204_v43, 5 }
 0x247   : > { %v2740_v0 = vcombine.low %v4401_v30, %v4410_v1  ;;  %v2712_v2 = vrot.slane %v966_v38, 9  ;;  %v1010_v48 = vrot.slane %v4225_v6, 5  ;;  %v4759_v62 = vshll.u32 %v4269_v33, 16  ;;  %v3213_v1 = vld [vmem:[#allocation9 + $0x98] sm:$0xff]  }
 0x248   : > { %1539 = vrot.lane.b32.xlu0 %v2762_v39, %s3614_s16  ;;  %v4760_v15 = vshll.u32 %v4276_v54, 16  ;;  %v2733_v11 = vcombine.low %v4200_v35, %v4211_v52  ;;  %v2713_v18 = vrot.slane %v967_v50, 9  ;;  %v4428_v37 = vsel %vm4108_vm13, %v2711_v14, %v1006_v29 }
 0x249   : > { %v1048_v34 = vrot.slane %v4759_v62, 5  ;;  %v4432_v43 = vsel %vm4108_vm13, %v2712_v2, %v1010_v48  ;;  %v1014_v6 = vrot.slane %v4234_v45, 5  ;;  %v2714_v60 = vrot.slane %v968_v53, 9 }
 0x24a   : > { %v1062_v5 = vrot.slane %v4760_v15, 5  ;;  %v2741_v33 = vcombine.low %v4428_v37, %v4432_v43  ;;  %v1018_v51 = vrot.slane %v4253_v59, 5  ;;  %v2734_v45 = vcombine.low %v4229_v20, %v4232_v36  ;;  %v1334_v15 = vld [vmem:[#allocation2 + $0x18] sm:$0xe]  ;;  %v3219_v37 = vld [vmem:[#allocation9 + $0xf0] sm:$0xff]  }
 0x24b   : > { %v1049_v41 = vsel %vm4098_vm12, %v4219_v19, %v1048_v34  ;;  %v4448_v8 = vsel %vm4108_vm13, %v2713_v18, %v1014_v6  ;;  %v2755_v57 = vcombine.low %v4247_v56, %v4255_v63  ;;  %v2756_v19 = vcombine.low %v4280_v4, %v4286_v22  ;;  %v1333_v34 = vld [vmem:[#allocation2 + $0x10] sm:$0xe]  ;;  %v1338_v6 = vld [vmem:[#allocation2 + $0x38] sm:$0xe]  ;;  %v3229_v63 = vld [vmem:[#allocation9 + $0x110] sm:$0xff]  }
 0x24c   : > { %v1063_v54 = vsel %vm4098_vm12, %v4196_v10, %v1062_v5  ;;  %v4456_v10 = vsel %vm4108_vm13, %v2714_v60, %v1018_v51  ;;  %v4761_v59 = vshll.u32 %v4302_v7, 16  ;;  %v4762_v3 = vshll.u32 %v4308_v21, 16  ;;  %v4765_v51 = vld [vmem:[#allocation29_spill] sm:$0xff] }
 0x24d   : > { %v4444_v38 = vcombine.low %v1049_v41, %v1063_v54  ;;  %v2742_v14 = vcombine.low %v4448_v8, %v4456_v10  ;;  %v2757_v53 = vcombine.low %v4311_v58, %v4321_v55  ;;  %v4763_v29 = vshll.u32 %v4342_v46, 16  ;;  %v1337_v46 = vld [vmem:[#allocation2 + $0x30] sm:$0xe]  ;;  %v1339_v54 = vld [vmem:[#allocation2 + $0x40] sm:$0xe] }
 0x24e   : > { %v1076_v50 = vrot.slane %v4761_v59, 5  ;;  %v1090_v39 = vrot.slane %v4762_v3, 5  ;;  %v4764_v48 = vshll.u32 %v4345_v17, 16  ;;  %v1383_v7 = vrot.slane %v4357_v40, 5  ;;  %v4766_v59 = vld [vmem:[#allocation33_spill] sm:$0xff] }
 0x24f   : > { %v1104_v2 = vrot.slane %v4763_v29, 5  ;;  %v1132_v18 = vrot.slane %v1130_v9, 5  ;;  %v2723_v9 = vrot.slane %v1333_v34, 9  ;;  %v2724_v41 = vrot.slane %v1334_v15, 9  ;;  %v4772_v15 = vld [vmem:[#allocation31_spill] sm:$0xff]  ;;  %v3225_v8 = vld [vmem:[#allocation9 + $0x100] sm:$0xff]  }
 0x250   : > { %v1118_v62 = vrot.slane %v4764_v48, 5  ;;  %v1077_v21 = vsel %vm4098_vm12, %v4192_v26, %v1076_v50  ;;  %v1091_v5 = vsel %vm4098_vm12, %v4190_v49, %v1090_v39  ;;  %v1146_v26 = vrot.slane %v1144_v27, 5  ;;  %v4767_v50 = vld [vmem:[#allocation30_spill] sm:$0xff]  ;;  %v4768_v27 = vld [vmem:[#allocation27_spill] sm:$0xff]  ;;  %v3232_v55 = vld [vmem:[#allocation12] ss:$8 sps:$4 sm:$0xff]  }
 0x251   : > { %v4481_v60 = vcombine.low %v1077_v21, %v1091_v5  ;;  %v1105_v17 = vsel %vm4098_vm12, %v4237_v47, %v1104_v2  ;;  %v1133_v32 = vsel %vm4098_vm12, %v4265_v12, %v1132_v18  ;;  %v2764_v3 = vcombine.low %v4767_v50, %v4766_v59  ;;  %v4770_v12 = vld [vmem:[#allocation28_spill] sm:$0xff]  ;;  %v3240_v50 = vld [vmem:[#allocation12 + $0x24] ss:$8 sps:$4 sm:$0xff]  }
 0x252   : > { %v1119_v40 = vsel %vm4098_vm12, %v4251_v42, %v1118_v62  ;;  %v1147_v47 = vsel %vm4098_vm12, %v4765_v51, %v1146_v26  ;;  %v2727_v42 = vrot.slane %v1337_v46, 9  ;;  %v2728_v39 = vrot.slane %v1338_v6, 9  ;;  %v4774_v18 = vld [vmem:[#allocation32_spill] sm:$0xff]  ;;  %v4776_v26 = vld [vmem:[#allocation26_spill] sm:$0xff] }
 0x253   : > { %v4491_v49 = vcombine.low %v1105_v17, %v1119_v40  ;;  %v4501_v31 = vcombine.low %v1133_v32, %v1147_v47  ;;  %v4769_v29 = vrot.slane %v4768_v27, 5  ;;  %v4771_v48 = vrot.slane %v4770_v12, 5  ;;  %v3256_v51 = vld [vmem:[#allocation2] sm:$0xf]  ;;  %v4777_v47 = vld [vmem:[#allocation25_spill] sm:$0xff] }
 0x254   : > { %v2729_v16 = vrot.slane %v1339_v54, 9  ;;  %v4773_v21 = vrot.slane %v4772_v15, 5  ;;  %v4775_v46 = vrot.slane %v4774_v18, 5  ;;  %v3238_v59 = vld [vmem:[#allocation12 + $0x20] ss:$8 sps:$4 sm:$0xff]  }
 0x255   : > { %v4507_v2 = vsel %vm4108_vm13, %v2723_v9, %v4769_v29  ;;  %v4513_v62 = vsel %vm4108_vm13, %v2724_v41, %v4771_v48  ;;  %v3207_v29 = vld [vmem:[#allocation9 + $0xc8] sm:$0xff]   ;;  %v3211_v48 = vld [vmem:[#allocation9 + $0x90] sm:$0xff]  }
 0x256   : > { %v2763_v34 = vcombine.low %v4507_v2, %v4513_v62  ;;  %v4521_v5 = vsel %vm4108_vm13, %v2727_v42, %v4773_v21  ;;  %v4527_v6 = vsel %vm4108_vm13, %v2728_v39, %v4775_v46  ;;  %v4533_v40 = vsel %vm4108_vm13, %v2729_v16, %v1383_v7  ;;  %v3206_v39 = vld [vmem:[#allocation9 + $0x80] sm:$0xff]   ;;  %v3212_v16 = vld [vmem:[#allocation9 + $0xd8] sm:$0xff]   ;;  %v3246_v62 = vld [vmem:[#allocation15 + $0x4] ss:$8 sps:$4 sm:$0xff]  }
 0x257   : > { %v2765_v17 = vcombine.low %v4521_v5, %v4527_v6  ;;  %v2766_v54 = vcombine.low %v4533_v40, %v4776_v26  ;;  %v2731_v42 = vcombine.low %v3256_v51, %v4777_v47  ;;  %v3216_v46 = vld [vmem:[#allocation9 + $0xa0] sm:$0xff]  }
 0x258   : > { %v3243_v2 = vld [vmem:[#allocation12 + $0x34] ss:$8 sps:$4 sm:$0xff]  }
 0x27d   : > { %v1462_v32 = vpop.permute.xlu0 %1461  ;;  %v1464_v41 = vpop.permute.xlu1 %1463 }
 0x27e   : > { %v1571_v9 = vsel %vm590_vm4, %v2739_v25, %v1462_v32  ;;  %v1575_v7 = vsel %vm590_vm4, %v2740_v0, %v1464_v41  ;;  %v3214_v0 = vld [vmem:[#allocation9 + $0xe0] sm:$0xff]   ;;  %v3217_v32 = vld [vmem:[#allocation9 + $0xe8] sm:$0xff]   ;;  %v3223_v41 = vld [vmem:[#allocation9 + $0xf8] sm:$0xff]  }
 0x27f   : > { %1956 = vmatprep.mubr.bf16.mxu1 %v1571_v9 }
 0x28d   : > { %v1422_v27 = vpop.permute.xlu0 %1421 }
 0x28e   : > { %v1555_v23 = vsel %vm590_vm4, %v2731_v42, %v1422_v27  ;;  %v4778_v42 = vld [vmem:[#allocation34_spill] sm:$0xff] }
 0x28f   : > { %1957 = vmatmul.mubr.bf16.vlgmr.msra.gmra.mrb[0].mxu1 %v1555_v23 }
 0x290   : > { %2914 = vmatpush3.bf16.msra.mxu1 %v3206_v39  ;;  %1964 = vmatprep.mubr.bf16.mxu1 %v1575_v7 }
 0x291   : > { %2915 = vmatprep.subr.bf16.mxu1 %v3207_v29  ;;  %v1466_v12 = vpop.permute.xlu0 %1465 }
 0x292   : > { %v1424_v25 = vpop.permute.xlu1 %1423  ;;  %v1579_v30 = vsel %vm590_vm4, %v2741_v33, %v1466_v12  ;;  %v3221_v33 = vld [vmem:[#allocation9 + $0xb0] sm:$0xff]  }
 0x293   : > { %v1559_v15 = vsel %vm590_vm4, %v2732_v24, %v1424_v25  ;;  %v3218_v24 = vld [vmem:[#allocation9 + $0xa8] sm:$0xff]  }
 0x294   : > { %2916 = vmatpush3.bf16.msra.mxu1 %v3208_v61 }
 0x295   : > { %2917 = vmatprep.subr.bf16.mxu1 %v3209_v28  ;;  %v1468_v18 = vpop.permute.xlu0 %1467 }
 0x296   : > { %v1583_v13 = vsel %vm590_vm4, %v2742_v14, %v1468_v18  ;;  %v3227_v14 = vld [vmem:[#allocation9 + $0x108] sm:$0xff]  }
 0x297   : > { %1965 = vmatmul.mubr.bf16.gmra.mrb[4].mxu1 %v1559_v15 }
 0x298   : > { %2918 = vmatpush3.bf16.msra.mxu1 %v3211_v48  ;;  %1972 = vmatprep.mubr.bf16.mxu1 %v1579_v30 }
 0x299   : > { %2919 = vmatprep.subr.bf16.mxu1 %v3212_v16  ;;  %v1426_v21 = vpop.permute.xlu1 %1425 }
 0x29a   : > { %v1563_v44 = vsel %vm590_vm4, %v2733_v11, %v1426_v21  ;;  %v3224_v11 = vld [vmem:[#allocation9 + $0xb8] sm:$0xff]  }
 0x29c   : > { %2920 = vmatpush3.bf16.msra.mxu1 %v3213_v1 }
 0x29d   : > { %2921 = vmatprep.subr.bf16.mxu1 %v3214_v0 }
 0x29f   : > { %1973 = vmatmul.mubr.bf16.gmra.mrb[8].mxu1 %v1563_v44 }
 0x2a0   : > { %2922 = vmatpush3.bf16.msra.mxu1 %v3216_v46  ;;  %1980 = vmatprep.mubr.bf16.mxu1 %v1583_v13  ;;  %v2767_v13 = vld [vmem:[#allocation11] ss:$0 sm:$0xff] }
 0x2a1   : > { %2923 = vmatprep.subr.bf16.mxu1 %v3217_v32 }
 0x2a3   : > { %v1428_v43 = vpop.permute.xlu1 %1427 }
 0x2a4   : > { %2924 = vmatpush3.bf16.msra.mxu1 %v3218_v24  ;;  %v1567_v35 = vsel %vm590_vm4, %v2734_v45, %v1428_v43 }
 0x2a5   : > { %v1534_v9 = vpop.permute.xlu0 %1533  ;;  %2925 = vmatprep.subr.bf16.mxu1 %v3219_v37 }
 0x2a6   : > { %v1603_v52 = vsel %vm590_vm4, %v2755_v57, %v1534_v9  ;;  %v3231_v57 = vld [vmem:[#allocation9 + $0x118] sm:$0xff]  }
 0x2a7   : > { %1981 = vmatmul.mubr.bf16.gmra.mrb[12].mxu1 %v1567_v35  ;;  %v1494_v10 = vpop.permute.xlu1 %1493 }
 0x2a8   : > { %2926 = vmatpush3.bf16.msra.mxu1 %v3221_v33  ;;  %2021 = vmatprep.mubr.bf16.mxu1 %v1603_v52  ;;  %v1587_v20 = vsel %vm590_vm4, %v4444_v38, %v1494_v10 }
 0x2a9   : > { %2927 = vmatprep.subr.bf16.mxu1 %v3223_v41 }
 0x2ac   : > { %2928 = vmatpush3.bf16.msra.mxu1 %v3224_v11  ;;  %v1496_v45 = vpop.permute.xlu1 %1495 }
 0x2ad   : > { %2977 = vmatprep.subr.bf16.mxu1 %v3225_v8  ;;  %v1591_v51 = vsel %vm590_vm4, %v4481_v60, %v1496_v45 }
 0x2ae   : > { %v1536_v36 = vpop.permute.xlu0 %1535 }
 0x2af   : > { %2022 = vmatmul.mubr.bf16.vlgmr.msra.gmra.mrb[16].mxu1 %v1587_v20  ;;  %v1607_v56 = vsel %vm590_vm4, %v2756_v19, %v1536_v36  ;;  %v3257_v19 = vld [vmem:[#allocation2 + $0x48] sm:$0xf] }
 0x2b0   : > { %2978 = vmatpush3.bf16.msra.mxu1 %v3225_v8  ;;  %2029 = vmatprep.mubr.bf16.mxu1 %v1607_v56  ;;  %v2758_v39 = vcombine.low %v4778_v42, %v3257_v19 }
 0x2b1   : > { %2979 = vmatprep.subr.bf16.mxu1 %v3227_v14 }
 0x2b3   : > { %v1498_v4 = vpop.permute.xlu1 %1497 }
 0x2b4   : > { %2980 = vmatpush3.bf16.msra.mxu1 %v3227_v14  ;;  %v1595_v27 = vsel %vm590_vm4, %v4491_v49, %v1498_v4  ;;  %v3237_v49 = vld [vmem:[#allocation12 + $0x14] ss:$8 sps:$4 sm:$0xff]  }
 0x2b5   : > { %2981 = vmatprep.subr.bf16.mxu1 %v3229_v63  ;;  %v1538_v47 = vpop.permute.xlu0 %1537 }
 0x2b6   : > { %v1611_v38 = vsel %vm590_vm4, %v2757_v53, %v1538_v47  ;;  %v3234_v53 = vld [vmem:[#allocation12 + $0x4] ss:$8 sps:$4 sm:$0xff]  }
 0x2b7   : > { %2030 = vmatmul.mubr.bf16.gmra.mrb[20].mxu1 %v1591_v51  ;;  %2203 = vmatprep.subr.bf16.mxu0 %v3234_v53 }
 0x2b8   : > { %2982 = vmatpush3.bf16.msra.mxu1 %v3229_v63  ;;  %2037 = vmatprep.mubr.bf16.mxu1 %v1611_v38  ;;  %v1500_v29 = vpop.permute.xlu1 %1499 }
 0x2b9   : > { %2983 = vmatprep.subr.bf16.mxu1 %v3231_v57  ;;  %v1599_v58 = vsel %vm590_vm4, %v4501_v31, %v1500_v29  ;;  %2204 = vmatpush1.bf16.msra.mxu0 %v3232_v55  ;;  %v3235_v31 = vld [vmem:[#allocation12 + $0x10] ss:$8 sps:$4 sm:$0xff]  }
 0x2ba   : > { %v1540_v22 = vpop.permute.xlu0 %1539  ;;  %2205 = vmatprep.subr.bf16.mxu0 %v3237_v49 }
 0x2bb   : > { %v1615_v60 = vsel %vm590_vm4, %v2758_v39, %v1540_v22 }
 0x2bc   : > { %2984 = vmatpush3.bf16.msra.mxu1 %v3231_v57 }
 0x2bd   : > { %2206 = vmatpush1.bf16.msra.mxu0 %v3235_v31 }
 0x2be   : > { %2207 = vmatprep.subr.bf16.mxu0 %v3240_v50 }
 0x2bf   : > { %2038 = vmatmul.mubr.bf16.gmra.mrb[24].mxu1 %v1595_v27 }
 0x2c0   : > { %2045 = vmatprep.mubr.bf16.mxu1 %v1615_v60 }
 0x2c1   : > { %2208 = vmatpush1.bf16.msra.mxu0 %v3238_v59 }
 0x2c2   : > { %2209 = vmatprep.subr.bf16.mxu0 %v3243_v2 }
 0x2c7   : > { %2046 = vmatmul.mubr.bf16.gmra.mrb[28].mxu1 %v1599_v58 }
 0x2c8   : > { %2985 = vmatprep.mubr.msk.bf16.mxu1 %vm590_vm4, %v2763_v34 }
 0x2cf   : > { %2986 = vmatmul.mubr.msk.bf16.vlgmr.msra.gmra.mrb[32].mxu1 %vm590_vm4, %v2764_v3  ;;  %v3241_v3 = vld [vmem:[#allocation12 + $0x30] ss:$8 sps:$4 sm:$0xff]  }
 0x2d0   : > { %2989 = vmatprep.mubr.msk.bf16.mxu1 %vm590_vm4, %v2765_v17  ;;  %2210 = vmatpush1.bf16.msra.mxu0 %v3241_v3 }
 0x2d1   : > { %2336 = vmatprep.subr.bf16.mxu0 %v3246_v62 }
 0x2d7   : > { %2990 = vmatmul.mubr.msk.bf16.gmra.mrb[36].mxu1 %vm590_vm4, %v2766_v54 }
 0x362   : > { %v2889_v34 = vpop.f32.mrb[0].mxu1 }
 0x363   : > { %v2890_v5 = vpop.f32.mrb[1].mxu1 }
 0x364   : > { %v2891_v6 = vadd.f32 %v2890_v5, %v2889_v34  ;;  %v2892_v17 = vpop.f32.mrb[2].mxu1 }
 0x365   : > { %v2893_v40 = vpop.f32.mrb[3].mxu1 }
 0x366   : > { %v2894_v26 = vadd.f32 %v2893_v40, %v2892_v17  ;;  %v1959_v43 = vadd.f32 %v2891_v6, %v2767_v13 }
 0x368   : > { %v1962_v35 = vadd.f32 %v2894_v26, %v2767_v13 }
 0x36a   : > { %v2895_v54 = vpop.f32.mrb[4].mxu1 }
 0x36b   : > { %v2896_v23 = vpop.f32.mrb[5].mxu1 }
 0x36c   : > { %v2897_v7 = vadd.f32 %v2896_v23, %v2895_v54  ;;  %v2898_v61 = vpop.f32.mrb[6].mxu1 }
 0x36d   : > { %v2899_v28 = vpop.f32.mrb[7].mxu1 }
 0x36e   : > { %v2900_v25 = vadd.f32 %v2899_v28, %v2898_v61  ;;  %v1967_v20 = vadd.f32 %v2897_v7, %v2767_v13 }
 0x370   : > { %v1970_v45 = vadd.f32 %v2900_v25, %v2767_v13 }
 0x372   : > { %v2901_v12 = vpop.f32.mrb[8].mxu1 }
 0x373   : > { %v2902_v48 = vpop.f32.mrb[9].mxu1 }
 0x374   : > { %v2903_v16 = vadd.f32 %v2902_v48, %v2901_v12  ;;  %v2904_v15 = vpop.f32.mrb[10].mxu1 }
 0x375   : > { %v2905_v30 = vpop.f32.mrb[11].mxu1 }
 0x376   : > { %v2906_v1 = vadd.f32 %v2905_v30, %v2904_v15  ;;  %v1975_v22 = vadd.f32 %v2903_v16, %v2767_v13  ;;  %v3244_v16 = vld [vmem:[#allocation15] ss:$8 sps:$4 sm:$0xff]  }
 0x378   : > { %v1978_v27 = vadd.f32 %v2906_v1, %v2767_v13  ;;  %v3249_v1 = vld [vmem:[#allocation15 + $0x14] ss:$8 sps:$4 sm:$0xff]  }
 0x37a   : > { %v2907_v0 = vpop.f32.mrb[12].mxu1 }
 0x37b   : > { %v2908_v21 = vpop.f32.mrb[13].mxu1 }
 0x37c   : > { %v2909_v18 = vadd.f32 %v2908_v21, %v2907_v0  ;;  %v2910_v46 = vpop.f32.mrb[14].mxu1 }
 0x37d   : > { %v2911_v32 = vpop.f32.mrb[15].mxu1 }
 0x37e   : > { %v2912_v44 = vadd.f32 %v2911_v32, %v2910_v46  ;;  %v1983_v49 = vadd.f32 %v2909_v18, %v2767_v13 }
 0x380   : > { %v1986_v3 = vadd.f32 %v2912_v44, %v2767_v13  ;;  %v4779_v13 = vmov 0  }
 0x382   : > { %v2929_v24 = vpop.f32.mrb[16].mxu1 }
 0x383   : > { %v2930_v37 = vpop.f32.mrb[17].mxu1 }
 0x384   : > { %v2931_v33 = vadd.f32 %v2930_v37, %v2929_v24  ;;  %v2932_v9 = vpop.f32.mrb[18].mxu1  ;;  %v3247_v24 = vld [vmem:[#allocation15 + $0x10] ss:$8 sps:$4 sm:$0xff]  }
 0x385   : > { %v2933_v41 = vpop.f32.mrb[19].mxu1 }
 0x386   : > { %v2934_v52 = vadd.f32 %v2933_v41, %v2932_v9  ;;  %v2024_v11 = vadd.f32 %v2931_v33, %v1959_v43  ;;  %v3252_v43 = vld [vmem:[#allocation15 + $0x24] ss:$8 sps:$4 sm:$0xff]  }
 0x388   : > { %v2027_v8 = vadd.f32 %v2934_v52, %v1962_v35 }
 0x38a   : > { %v2935_v10 = vpop.f32.mrb[20].mxu1 }
 0x38b   : > { %v2936_v14 = vpop.f32.mrb[21].mxu1 }
 0x38c   : > { %v2937_v36 = vadd.f32 %v2936_v14, %v2935_v10  ;;  %v2938_v56 = vpop.f32.mrb[22].mxu1  ;;  %v3255_v10 = vld [vmem:[#allocation15 + $0x34] ss:$8 sps:$4 sm:$0xff]   ;;  %v3253_v14 = vld [vmem:[#allocation15 + $0x30] ss:$8 sps:$4 sm:$0xff]  }
 0x38d   : > { %v2939_v63 = vpop.f32.mrb[23].mxu1 }
 0x38e   : > { %v2940_v57 = vadd.f32 %v2939_v63, %v2938_v56  ;;  %v2032_v51 = vadd.f32 %v2937_v36, %v1967_v20  ;;  %v3258_v20 = vld [vmem:[%s3972_s28] sm:$0xff]   ;;  %v3259_v36 = vld [vmem:[%s3972_s28 + $0x8] sm:$0xff]   ;;  %v3260_v56 = vld [vmem:[%s3972_s28 + $0x10] sm:$0xff]  }
 0x38f   : > { %v3261_v63 = vld [vmem:[%s3972_s28 + $0x18] sm:$0xff]  }
 0x390   : > { %v2035_v47 = vadd.f32 %v2940_v57, %v1970_v45  ;;  %v2141_v45 = vlaneseq }
 0x392   : > { %v2941_v38 = vpop.f32.mrb[24].mxu1  ;;  %v2142_v57 = vshrl.u32 %v2141_v45, 7 }
 0x393   : > { %v2942_v4 = vpop.f32.mrb[25].mxu1 }
 0x394   : > { %v2943_v19 = vadd.f32 %v2942_v4, %v2941_v38  ;;  %v2944_v42 = vpop.f32.mrb[26].mxu1  ;;  %v2284_v38 = vld [vmem:[#allocation17] sm:$0x3]  ;;  %v2147_v4 = vsub.s32 1, %v2142_v57 }
 0x395   : > { %v2945_v39 = vpop.f32.mrb[27].mxu1 }
 0x396   : > { %v2946_v60 = vadd.f32 %v2945_v39, %v2944_v42  ;;  %v2040_v29 = vadd.f32 %v2943_v19, %v1975_v22  ;;  %v2293_v39 = vrot.slane %v2284_v38, %v2147_v4 }
 0x398   : > { %v2043_v58 = vadd.f32 %v2946_v60, %v1978_v27 }
 0x39a   : > { %v2947_v55 = vpop.f32.mrb[28].mxu1 }
 0x39b   : > { %v2948_v53 = vpop.f32.mrb[29].mxu1 }
 0x39c   : > { %v2949_v31 = vadd.f32 %v2948_v53, %v2947_v55  ;;  %v2950_v59 = vpop.f32.mrb[30].mxu1 }
 0x39d   : > { %v2951_v50 = vpop.f32.mrb[31].mxu1 }
 0x39e   : > { %v2952_v2 = vadd.f32 %v2951_v50, %v2950_v59  ;;  %v2048_v62 = vadd.f32 %v2949_v31, %v1983_v49 }
 0x3a0   : > { %v2051_v34 = vadd.f32 %v2952_v2, %v1986_v3 }
 0x3a2   : > { %v2987_v5 = vpop.f32.mrb[32].mxu1 }
 0x3a3   : > { %v2097_v6 = vadd.f32 %v2987_v5, %v2032_v51  ;;  %v2088_v17 = vpop.f32.mrb[33].mxu1  ;;  %v2143_v51 = vsub.s32 0, %v2142_v57 }
 0x3a4   : > { %v2089_v40 = vadd.f32 %v2088_v17, %v2024_v11  ;;  %v2988_v26 = vpop.f32.mrb[34].mxu1  ;;  %v3250_v11 = vld [vmem:[#allocation15 + $0x20] ss:$8 sps:$4 sm:$0xff]  }
 0x3a5   : > { %v2100_v54 = vadd.f32 %v2988_v26, %v2035_v47  ;;  %v2091_v23 = vpop.f32.mrb[35].mxu1  ;;  %v2121_v61 = vmax.f32 %v2097_v6, 0.0  ;;  %v2139_v47 = vld [vmem:[#allocation14] sm:$0x3]  ;;  %v2289_v19 = vrot.slane %v2284_v38, %v2143_v51 }
 0x3a6   : > { %v2092_v7 = vadd.f32 %v2091_v23, %v2027_v8  ;;  %v2119_v25 = vmax.f32 %v2089_v40, 0.0  ;;  %v2144_v22 = vrot.slane %v2139_v47, %v2143_v51  ;;  %v2148_v42 = vrot.slane %v2139_v47, %v2147_v4 }
 0x3a7   : > { %v2122_v28 = vmax.f32 %v2100_v54, 0.0 }
 0x3a8   : > { %v2120_v12 = vmax.f32 %v2092_v7, 0.0  ;;  %v2993_v27 = vadd.f32 %v2289_v19, %v2144_v22  ;;  %v2995_v60 = vadd.f32 %v2293_v39, %v2148_v42 }
 0x3a9   : > { %v2128_v48 = vpack.c.bf16 %v2122_v28, %v2121_v61 }
 0x3aa   : > { %v2127_v15 = vpack.c.bf16 %v2120_v12, %v2119_v25  ;;  %v2991_v30 = vpop.f32.mrb[36].mxu1 }
 0x3ab   : > { %v2113_v0 = vadd.f32 %v2991_v30, %v2048_v62  ;;  %v2104_v21 = vpop.f32.mrb[37].mxu1 }
 0x3ac   : > { %v2105_v18 = vadd.f32 %v2104_v21, %v2040_v29  ;;  %v2992_v46 = vpop.f32.mrb[38].mxu1  ;;  %2816 = vmatmul.mubr.msk.bf16.vlgmr.msra.gmra.mrb[8].mxu0 %vm590_vm4, %v2127_v15 }
 0x3ad   : > { %v2116_v32 = vadd.f32 %v2992_v46, %v2051_v34  ;;  %2337 = vmatpush1.bf16.msra.mxu0 %v3244_v16  ;;  %v2107_v44 = vpop.f32.mrb[39].mxu1  ;;  %2245 = vmatprep.mubr.bf16.mxu0 %v4779_v13  ;;  %v2125_v33 = vmax.f32 %v2113_v0, 0.0 }
 0x3ae   : > { %v2108_v37 = vadd.f32 %v2107_v44, %v2043_v58  ;;  %2338 = vmatprep.subr.bf16.mxu0 %v3249_v1  ;;  %v2123_v41 = vmax.f32 %v2105_v18, 0.0 }
 0x3af   : > { %v2126_v9 = vmax.f32 %v2116_v32, 0.0 }
 0x3b0   : > { %v2124_v35 = vmax.f32 %v2108_v37, 0.0 }
 0x3b1   : > { %v2130_v52 = vpack.c.bf16 %v2126_v9, %v2125_v33  ;;  %2339 = vmatpush1.bf16.msra.mxu0 %v3247_v24 }
 0x3b2   : > { %v2129_v8 = vpack.c.bf16 %v2124_v35, %v2123_v41  ;;  %2340 = vmatprep.subr.bf16.mxu0 %v3252_v43 }
 0x3b4   : > { %2817 = vmatmul.mubr.msk.bf16.gmra.mrb[12].mxu0 %vm590_vm4, %v2128_v48 }
 0x3b5   : > { %2255 = vmatprep.mubr.bf16.mxu0 %v4779_v13  ;;  %2341 = vmatpush1.bf16.msra.mxu0 %v3250_v11 }
 0x3b6   : > { %2342 = vmatprep.subr.bf16.mxu0 %v3255_v10 }
 0x3b9   : > { %2343 = vmatpush1.bf16.msra.mxu0 %v3253_v14 }
 0x3bc   : > { %2818 = vmatmul.mubr.msk.bf16.gmra.mrb[16].mxu0 %vm590_vm4, %v2129_v8 }
 0x3bd   : > { %2265 = vmatprep.mubr.bf16.mxu0 %v4779_v13 }
 0x3c4   : > { %2819 = vmatmul.mubr.msk.bf16.gmra.mrb[20].mxu0 %vm590_vm4, %v2130_v52 }
 0x3c5   : > { %2368 = vmatprep.mubr.bf16.mxu0 %v4779_v13 }
 0x3cc   : > { %2828 = vmatmul.mubr.msk.bf16.vlgmr.msra.gmra.mrb[8].mxu0 %vm590_vm4, %v3258_v20 }
 0x3cd   : > { %2378 = vmatprep.mubr.bf16.mxu0 %v4779_v13 }
 0x3d4   : > { %2829 = vmatmul.mubr.msk.bf16.gmra.mrb[12].mxu0 %vm590_vm4, %v3259_v36 }
 0x3d5   : > { %2388 = vmatprep.mubr.bf16.mxu0 %v4779_v13 }
 0x3dc   : > { %2830 = vmatmul.mubr.msk.bf16.gmra.mrb[16].mxu0 %vm590_vm4, %v3260_v56 }
 0x3dd   : > { %2398 = vmatprep.mubr.bf16.mxu0 %v4779_v13 }
 0x3e4   : > { %2831 = vmatmul.mubr.msk.bf16.gmra.mrb[20].mxu0 %vm590_vm4, %v3261_v63 }
 0x49f   : > { %v2370_v29 = vpop.f32.mrb[8].mxu0 }
 0x4a0   : > { %v2994_v58 = vadd.f32 %v2993_v27, %v2370_v29  ;;  %v2372_v55 = vpop.f32.mrb[9].mxu0 }
 0x4a1   : > { %v2996_v53 = vadd.f32 %v2995_v60, %v2372_v55  ;;  %v2374_v49 = vpop.f32.mrb[10].mxu0 }
 0x4a2   : > { %v2425_v31 = vmax.f32 %v2994_v58, 0.0  ;;  %v2998_v59 = vadd.f32 %v2993_v27, %v2374_v49  ;;  %v2376_v50 = vpop.f32.mrb[11].mxu0 }
 0x4a3   : > { %v2426_v3 = vmax.f32 %v2996_v53, 0.0  ;;  %v3000_v2 = vadd.f32 %v2995_v60, %v2376_v50 }
 0x4a4   : > { %v2427_v62 = vmax.f32 %v2998_v59, 0.0 }
 0x4a5   : > { %v2855_v34 = vpack.c.bf16 %v2426_v3, %v2425_v31  ;;  %v2428_v5 = vmax.f32 %v3000_v2, 0.0 }
 0x4a7   : > { %2489 = vst [vmem:[%s4625_s1] sm:$0xff] %v2855_v34  ;;  %v2856_v6 = vpack.c.bf16 %v2428_v5, %v2427_v62  ;;  %v2380_v17 = vpop.f32.mrb[12].mxu0 }
 0x4a8   : > { %v3002_v40 = vadd.f32 %v2993_v27, %v2380_v17  ;;  %v2382_v26 = vpop.f32.mrb[13].mxu0 }
 0x4a9   : > { %2490 = vst [vmem:[%s4625_s1 + $0x8] sm:$0xff] %v2856_v6  ;;  %v3004_v54 = vadd.f32 %v2995_v60, %v2382_v26  ;;  %v2384_v23 = vpop.f32.mrb[14].mxu0 }
 0x4aa   : > { %v2429_v7 = vmax.f32 %v3002_v40, 0.0  ;;  %v3006_v61 = vadd.f32 %v2993_v27, %v2384_v23  ;;  %v2386_v28 = vpop.f32.mrb[15].mxu0 }
 0x4ab   : > { %v2430_v25 = vmax.f32 %v3004_v54, 0.0  ;;  %v3008_v12 = vadd.f32 %v2995_v60, %v2386_v28 }
 0x4ac   : > { %v2431_v48 = vmax.f32 %v3006_v61, 0.0 }
 0x4ad   : > { %v2857_v16 = vpack.c.bf16 %v2430_v25, %v2429_v7  ;;  %v2432_v15 = vmax.f32 %v3008_v12, 0.0 }
 0x4af   : > { %2491 = vst [vmem:[%s4625_s1 + $0x10] sm:$0xff] %v2857_v16  ;;  %v2858_v30 = vpack.c.bf16 %v2432_v15, %v2431_v48  ;;  %v2390_v1 = vpop.f32.mrb[16].mxu0 }
 0x4b0   : > { %v3010_v0 = vadd.f32 %v2993_v27, %v2390_v1  ;;  %v2392_v21 = vpop.f32.mrb[17].mxu0 }
 0x4b1   : > { %2492 = vst [vmem:[%s4625_s1 + $0x18] sm:$0xff] %v2858_v30  ;;  %v3012_v18 = vadd.f32 %v2995_v60, %v2392_v21  ;;  %v2394_v46 = vpop.f32.mrb[18].mxu0 }
 0x4b2   : > { %v2433_v32 = vmax.f32 %v3010_v0, 0.0  ;;  %v3014_v44 = vadd.f32 %v2993_v27, %v2394_v46  ;;  %v2396_v13 = vpop.f32.mrb[19].mxu0 }
 0x4b3   : > { %v2434_v24 = vmax.f32 %v3012_v18, 0.0  ;;  %v3016_v37 = vadd.f32 %v2995_v60, %v2396_v13 }
 0x4b4   : > { %v2435_v43 = vmax.f32 %v3014_v44, 0.0 }
 0x4b5   : > { %v2859_v33 = vpack.c.bf16 %v2434_v24, %v2433_v32  ;;  %v2436_v9 = vmax.f32 %v3016_v37, 0.0 }
 0x4b7   : > { %2493 = vst [vmem:[%s4625_s1 + $0x20] sm:$0xff] %v2859_v33  ;;  %v2860_v41 = vpack.c.bf16 %v2436_v9, %v2435_v43  ;;  %v2400_v35 = vpop.f32.mrb[20].mxu0 }
 0x4b8   : > { %v3018_v52 = vadd.f32 %v2993_v27, %v2400_v35  ;;  %v2402_v11 = vpop.f32.mrb[21].mxu0 }
 0x4b9   : > { %2494 = vst [vmem:[%s4625_s1 + $0x28] sm:$0xff] %v2860_v41  ;;  %v3020_v8 = vadd.f32 %v2995_v60, %v2402_v11  ;;  %v2404_v10 = vpop.f32.mrb[22].mxu0 }
 0x4ba   : > { %v2437_v14 = vmax.f32 %v3018_v52, 0.0  ;;  %v3022_v20 = vadd.f32 %v2993_v27, %v2404_v10  ;;  %v2406_v36 = vpop.f32.mrb[23].mxu0 }
 0x4bb   : > { %v2438_v56 = vmax.f32 %v3020_v8, 0.0  ;;  %v3024_v63 = vadd.f32 %v2995_v60, %v2406_v36 }
 0x4bc   : > { %v2439_v45 = vmax.f32 %v3022_v20, 0.0 }
 0x4bd   : > { %v2861_v57 = vpack.c.bf16 %v2438_v56, %v2437_v14  ;;  %v2440_v51 = vmax.f32 %v3024_v63, 0.0 }
 0x4bf   : > { %2495 = vst [vmem:[%s4625_s1 + $0x30] sm:$0xff] %v2861_v57  ;;  %v2862_v47 = vpack.c.bf16 %v2440_v51, %v2439_v45 }
 0x4c1   : > { %2496 = vst [vmem:[%s4625_s1 + $0x38] sm:$0xff] %v2862_v47 }
 0x4c2   : > { %3529 = shalt.err (!%p3526_p10)
}
 0x4c3   : > { %s3530_s28 = scalar_lea.hbm %s4640_s24, 1024  ;;  %s3534_s1 = scalar_lea.hbm %s4780_s20, 2048 }
 0x4c4   : > { %p3531_p11 = scmp.ne.s32.totalorder %s4640_s24, %s3530_s28  ;;  %p3535_p7 = scmp.lt.u32.totalorder %s4640_s24, %s4780_s20 }
 0x4c5   : > { %p3536_p6 = scmp.lt.u32.totalorder %s3534_s1, %s3530_s28  ;;  %p3538_p12 = scmp.lt.u32.totalorder %s3530_s28, %s4640_s24 }
 0x4c6   : > { %p3532_p0 = pnand %p3531_p11, %p4781_p13 }
 0x4c7   : > { %p3537_p9 = por %p3536_p6, %p3535_p7 }
 0x4c8   : > { %p3533_p5 = pneg %p3532_p0 }
 0x4c9   : > { %p3539_p1 = por %p3538_p12, %p3537_p9 }
 0x4cb   : > { %p3540_p3 = pnand %p3539_p1, %p3533_p5 }
 0x4cd   : > { %3543 = shalt.err (!%p3540_p3)
}
 0x4ce   : > { %s3616_s17 = smov 128   ;;  %s3617_s9 = smov 8  }
 0x4cf   : > { %3075 = dma.vmem_to_hbm [thread:$0]  (%p4781_p13), %s4635_s3, 1024, %s4640_s24, %s2498_s23, %s3616_s17, %s3616_s17, %s3617_s9  }
 0x4d0 PF: > { %s2527_s15 = sand.u32 1, %s3586_s30   ;;  %p4782_p2 = scmp.ne.s32.totalorder %s4725_s14, 0 }
 0x4d1   : > { %p4783_p8 = scmp.ge.s32.totalorder %s3598_s12, 2  ;;  %s2528_s25 = scalar_lea.sflag [#allocation5], %s2527_s15 }
 0x4d3   : > { %p3107_p4 = pnand %p4783_p8, %p4782_p2 }
 0x4d5   : > { %3581 = dma.done.wait (!%p3107_p4), %s2528_s25, 1024  }
 0x4d6   : > { %3583 = vsyncadd (!%p3107_p4), %s2528_s25, 4294966272  ;;  %p26_p10 = scmp.ge.s32.totalorder %s3886_s19, 4   ;;  %s4784_s30 = smov %s3590_s10 }
 0x4d7   : > { %s4785_s10 = smov %s3594_s11  ;;  %s4786_s11 = smov %s3897_s21 }
 0x4d8   : > { %s4787_s12 = smov %s3886_s19  ;;  %28 = sbr.rel (!%p26_p10) target bundleno = 13 (0xd), region = 136 }
 0x4df   :  { %2533 = vsyncpa [#allocation4], 1 }
 0x4e0   :  { %2535 = vsyncpa [#allocation4 + $0x1], 1 }
 0x4e1   :  { %2536 = vsyncpa [#allocation7], 1 }
 0x4e2   :  { %2537 = vsyncpa [#allocation10], 1 }
 0x4e3   :  { %2538 = vsyncpa [#allocation13], 1 }
 0x4e4   :  { %2539 = vsyncpa [#allocation16], 1 }
 0x4e5   :  { %2540 = vsyncpa [#allocation5], 1 }
 0x4e6   :  { %2542 = vsyncpa [#allocation5 + $0x1], 1 }

// kernel: tpu_custom_call.1
= control target key start
LH: loop header
LB: loop body
LE: loop exit
PB: predicated region body
PF: predicated region fallthrough
CT: control target
= control target key end

     0   :  { %s4686_s0 = inlined_call_operand.hbm [shape: bf16[128,64], index: 0, kind: input, shape index: {}]   ;;  %s4687_s1 = inlined_call_operand.hbm [shape: bf16[64,64], index: 1, kind: input, shape index: {}]   ;;  %s4688_s2 = inlined_call_operand.hbm [shape: f32[1,64], index: 2, kind: input, shape index: {}]   ;;  %s4689_s3 = inlined_call_operand.hbm [shape: bf16[576,64], index: 3, kind: input, shape index: {}]   ;;  %s4690_s4 = inlined_call_operand.hbm [shape: f32[1,64], index: 4, kind: input, shape index: {}]   ;;  %s4691_s5 = inlined_call_operand.hbm [shape: bf16[64,256], index: 5, kind: input, shape index: {}]   ;;  %s4692_s6 = inlined_call_operand.hbm [shape: f32[1,256], index: 6, kind: input, shape index: {}]   ;;  %s4693_s7 = inlined_call_operand.hbm [shape: bf16[64,256], index: 7, kind: input, shape index: {}]   ;;  %s4694_s8 = inlined_call_operand.hbm [shape: f32[1,256], index: 8, kind: input, shape index: {}]   ;;  %s4695_s9 = inlined_call_operand.hbm [shape: bf16[128,256], index: 9, kind: output, shape index: {}]  }
   0x1   :  { %4713 = sst [smem:[#allocation35_spill]] %s4687_s1 }
   0x2   :  { %4714 = sst [smem:[#allocation36_spill]] %s4689_s3 }
   0x3   :  { %4715 = sst [smem:[#allocation37_spill]] %s4695_s9 }
   0x4   :  { %14 = vsyncpa [#allocation4], 0 }
   0x5   :  { %16 = vsyncpa [#allocation4 + $0x1], 0 }
   0x6   :  { %17 = vsyncpa [#allocation7], 0 }
   0x7   :  { %18 = vsyncpa [#allocation10], 0 }
   0x8   :  { %19 = vsyncpa [#allocation13], 0 }
   0x9   :  { %20 = vsyncpa [#allocation16], 0 }
   0xa   :  { %21 = vsyncpa [#allocation5], 0 }
   0xb   :  { %23 = vsyncpa [#allocation5 + $0x1], 0  ;;  %s3668_s30 = smov 0   ;;  %s3670_s10 = smov 0  }
   0xc   :  { %s3672_s11 = smov 0   ;;  %s3674_s12 = smov 0  }
   0xd LB: > { %s3600_s13 = smov [#allocation6]   ;;  %s3689_s15 = sadd.s32 4294967295, %s3598_s12   ;;  %s3598_s12 = sphi %s3674_s12, %s4787_s12   ;;  %s3594_s11 = sphi %s3672_s11, %s4786_s11   ;;  %s3590_s10 = sphi %s3670_s10, %s4785_s10   ;;  %s3586_s30 = sphi %s3668_s30, %s4784_s30  }
   0xe   : > { %s266_s14 = sshll.u32 %s3600_s13, 4  ;;  %p2662_p0 = scmp.ge.s32.totalorder %s3598_s12, 1  ;;  %s3694_s14 = int_to_ptr.vmem [resolvable:$true] %s266_s14 }
   0xf   : > { %p4699_p1 = scmp.eq.s32.totalorder %s3689_s15, 0  ;;  %p254_p2 = scmp.lt.s32.totalorder %s3598_s12, 3 }
  0x10   : > { %s3601_s17 = smov [#allocation9]   ;;  %s3602_s20 = smov [#allocation12]  }
  0x11   : > { %p3696_p3 = pnand %p2662_p0, %p254_p2  ;;  %s290_s18 = sshll.u32 %s3601_s17, 4  ;;  %s3709_s18 = int_to_ptr.vmem [resolvable:$true] %s290_s18 }
  0x12   : > { %s314_s21 = sshll.u32 %s3602_s20, 4  ;;  %s4718_s1 = sld [smem:[#allocation35_spill]]  ;;  %s3711_s21 = int_to_ptr.vmem [resolvable:$true] %s314_s21 }
  0x13   : > { %s4716_s16 = scalar_select %p3696_p3, 1, 0 }
  0x14   : > { %p3077_p5 = pneg %p3696_p3 }
  0x16   : > { %p3705_p6 = pnand %p3077_p5, %p4699_p1 }
  0x18   : > { %s3262_s24 = scalar_lea.hbm %s4718_s1, 512  ;;  %p3721_p8 = pneg %p3705_p6 }
  0x19   : > { %p3263_p7 = scmp.ne.s32.totalorder %s4718_s1, %s3262_s24  ;;  %p3269_p11 = scmp.lt.u32.totalorder %s3262_s24, %s4718_s1 }
  0x1b   : > { %p3265_p9 = pnand %p3721_p8, %p3263_p7 }
  0x1d   : > { %p3266_p10 = pneg %p3265_p9 }
  0x1f   : > { %p3271_p12 = pnand %p3269_p11, %p3266_p10 }
  0x21   : > { %3274 = shalt.err (!%p3271_p12)
}
  0x22   : > { %s3275_s13 = scalar_lea.vmem %s3694_s14, 512  ;;  %p3283_p5 = scmp.lt.s32.totalorder %s3694_s14, %s3694_s14 }
  0x23   : > { %p3276_p13 = scmp.ne.s32.totalorder %s3694_s14, %s3275_s13  ;;  %p3284_p4 = scmp.lt.s32.totalorder %s3275_s13, %s3275_s13 }
  0x25   : > { %p3278_p0 = pnand %p3276_p13, %p3721_p8  ;;  %p3285_p7 = por %p3284_p4, %p3283_p5 }
  0x27   : > { %p3279_p2 = pneg %p3278_p0 }
  0x29   : > { %p3286_p9 = pnand %p3285_p7, %p3279_p2 }
  0x2b   : > { %3289 = shalt.err (!%p3286_p9)
}
  0x2c   : > { %s4697_s17 = smov 64   ;;  %s4698_s20 = smov 4  }
  0x2d   : > { %3080 = dma.hbm_to_vmem [thread:$0]  (!%p3705_p6), %s4718_s1, 512, %s3694_s14, [#allocation7], %s4697_s17, %s4697_s17, %s4698_s20  }
  0x2e   : > { %s4720_s3 = sld [smem:[#allocation36_spill]] }
  0x34   : > { %s3290_s26 = scalar_lea.hbm %s4720_s3, 4608 }
  0x35   : > { %p3291_p4 = scmp.ne.s32.totalorder %s4720_s3, %s3290_s26  ;;  %p3297_p12 = scmp.lt.u32.totalorder %s3290_s26, %s4720_s3 }
  0x37   : > { %p3293_p10 = pnand %p3291_p4, %p3721_p8 }
  0x39   : > { %p3294_p11 = pneg %p3293_p10 }
  0x3b   : > { %p3299_p13 = pnand %p3297_p12, %p3294_p11 }
  0x3d   : > { %3302 = shalt.err (!%p3299_p13)
}
  0x3e   : > { %s3303_s14 = scalar_lea.vmem %s3709_s18, 4608  ;;  %p3311_p7 = scmp.lt.s32.totalorder %s3709_s18, %s3709_s18 }
  0x3f   : > { %p3304_p0 = scmp.ne.s32.totalorder %s3709_s18, %s3303_s14  ;;  %p3312_p9 = scmp.lt.s32.totalorder %s3303_s14, %s3303_s14 }
  0x41   : > { %p3306_p2 = pnand %p3304_p0, %p3721_p8  ;;  %p3313_p4 = por %p3312_p9, %p3311_p7 }
  0x43   : > { %p3307_p5 = pneg %p3306_p2 }
  0x45   : > { %p3314_p10 = pnand %p3313_p4, %p3307_p5 }
  0x47   : > { %3317 = shalt.err (!%p3314_p10)
}
  0x48   : > { %3086 = dma.hbm_to_vmem [thread:$0]  (!%p3705_p6), %s4720_s3, 4608, %s3709_s18, [#allocation10], %s4697_s17, %s4697_s17, %s4698_s20  }
  0x49   : > { %s3318_s25 = scalar_lea.hbm %s4691_s5, 1024 }
  0x4a   : > { %p3319_p11 = scmp.ne.s32.totalorder %s4691_s5, %s3318_s25  ;;  %p3325_p0 = scmp.lt.u32.totalorder %s3318_s25, %s4691_s5 }
  0x4c   : > { %p3321_p12 = pnand %p3319_p11, %p3721_p8 }
  0x4e   : > { %p3322_p13 = pneg %p3321_p12 }
  0x50   : > { %p3327_p2 = pnand %p3325_p0, %p3322_p13 }
  0x52   : > { %3330 = shalt.err (!%p3327_p2)
}
  0x53   : > { %s3331_s18 = scalar_lea.vmem %s3711_s21, 1024  ;;  %p3339_p4 = scmp.lt.s32.totalorder %s3711_s21, %s3711_s21 }
  0x54   : > { %p3332_p5 = scmp.ne.s32.totalorder %s3711_s21, %s3331_s18  ;;  %p3340_p10 = scmp.lt.s32.totalorder %s3331_s18, %s3331_s18 }
  0x56   : > { %p3334_p7 = pnand %p3332_p5, %p3721_p8  ;;  %p3341_p11 = por %p3340_p10, %p3339_p4 }
  0x58   : > { %p3335_p9 = pneg %p3334_p7 }
  0x5a   : > { %p3342_p12 = pnand %p3341_p11, %p3335_p9 }
  0x5c   : > { %3345 = shalt.err (!%p3342_p12)
}
  0x5d   : > { %s3605_s14 = smov 128   ;;  %s3606_s9 = smov 8  }
  0x5e   : > { %3092 = dma.hbm_to_vmem [thread:$0]  (!%p3705_p6), %s4691_s5, 1024, %s3711_s21, [#allocation13], %s3605_s14, %s3605_s14, %s3606_s9  }
  0x5f   : > { %s3607_s24 = smov [#allocation15]   ;;  %s3608_s26 = smov [#allocation8]  }
  0x60   : > { %s338_s25 = sshll.u32 %s3607_s24, 4  ;;  %s280_s28 = sshll.u32 %s3608_s26, 4  ;;  %s339_s25 = int_to_ptr.vmem [resolvable:$true] %s338_s25  ;;  %s281_s28 = int_to_ptr.vmem [resolvable:$true] %s280_s28 }
  0x61   : > { %s3346_s18 = scalar_lea.hbm %s4693_s7, 1024 }
  0x62   : > { %p3347_p13 = scmp.ne.s32.totalorder %s4693_s7, %s3346_s18  ;;  %p3353_p5 = scmp.lt.u32.totalorder %s3346_s18, %s4693_s7 }
  0x64   : > { %p3349_p0 = pnand %p3347_p13, %p3721_p8 }
  0x66   : > { %p3350_p2 = pneg %p3349_p0 }
  0x68   : > { %p3355_p7 = pnand %p3353_p5, %p3350_p2 }
  0x6a   : > { %3358 = shalt.err (!%p3355_p7)
}
  0x6b   : > { %s3359_s21 = scalar_lea.vmem %s339_s25, 1024  ;;  %p3367_p11 = scmp.lt.s32.totalorder %s339_s25, %s339_s25 }
  0x6c   : > { %p3360_p9 = scmp.ne.s32.totalorder %s339_s25, %s3359_s21  ;;  %p3368_p12 = scmp.lt.s32.totalorder %s3359_s21, %s3359_s21 }
  0x6e   : > { %p3362_p4 = pnand %p3360_p9, %p3721_p8  ;;  %p3369_p1 = por %p3368_p12, %p3367_p11 }
  0x70   : > { %p3363_p10 = pneg %p3362_p4 }
  0x72   : > { %p3370_p3 = pnand %p3369_p1, %p3363_p10 }
  0x74   : > { %3373 = shalt.err (!%p3370_p3)
}
  0x75   : > { %3098 = dma.hbm_to_vmem [thread:$0]  (!%p3705_p6), %s4693_s7, 1024, %s339_s25, [#allocation16], %s3605_s14, %s3605_s14, %s3606_s9  }
  0x76   : > { %s3374_s22 = scalar_lea.hbm %s4688_s2, 16 }
  0x77   : > { %p3375_p13 = scmp.ne.s32.totalorder %s4688_s2, %s3374_s22  ;;  %p3381_p3 = scmp.lt.u32.totalorder %s3374_s22, %s4688_s2 }
  0x79   : > { %p3377_p0 = pnand %p3375_p13, %p3721_p8 }
  0x7b   : > { %p3378_p1 = pneg %p3377_p0 }
  0x7d   : > { %p3383_p2 = pnand %p3381_p3, %p3378_p1 }
  0x7f   : > { %3386 = shalt.err (!%p3383_p2)
}
  0x80   : > { %s3387_s13 = scalar_lea.vmem %s281_s28, 16  ;;  %s3394_s14 = scalar_lea.vmem %s281_s28, 32 }
  0x81   : > { %p3388_p5 = scmp.ne.s32.totalorder %s281_s28, %s3387_s13  ;;  %p3395_p4 = scmp.lt.s32.totalorder %s281_s28, %s281_s28 }
  0x82   : > { %p3396_p10 = scmp.lt.s32.totalorder %s3394_s14, %s3387_s13 }
  0x83   : > { %p3390_p7 = pnand %p3388_p5, %p3721_p8 }
  0x84   : > { %p3397_p11 = por %p3396_p10, %p3395_p4 }
  0x85   : > { %p3391_p9 = pneg %p3390_p7 }
  0x87   : > { %p3398_p12 = pnand %p3397_p11, %p3391_p9 }
  0x89   : > { %3401 = shalt.err (!%p3398_p12)
}
  0x8a   : > { %3083 = dma.hbm_to_vmem [thread:$0]  (!%p3705_p6), %s4688_s2, 16, %s281_s28, [#allocation7]  }
  0x8b   : > { %s3609_s18 = smov [#allocation11]   ;;  %s3610_s17 = smov [#allocation14]  }
  0x8c   : > { %s304_s21 = sshll.u32 %s3609_s18, 4  ;;  %s328_s20 = sshll.u32 %s3610_s17, 4  ;;  %s305_s21 = int_to_ptr.vmem [resolvable:$true] %s304_s21  ;;  %s329_s20 = int_to_ptr.vmem [resolvable:$true] %s328_s20 }
  0x8d   : > { %s3402_s22 = scalar_lea.hbm %s4690_s4, 16 }
  0x8e   : > { %p3403_p13 = scmp.ne.s32.totalorder %s4690_s4, %s3402_s22  ;;  %p3409_p3 = scmp.lt.u32.totalorder %s3402_s22, %s4690_s4 }
  0x90   : > { %p3405_p0 = pnand %p3403_p13, %p3721_p8 }
  0x92   : > { %p3406_p1 = pneg %p3405_p0 }
  0x94   : > { %p3411_p2 = pnand %p3409_p3, %p3406_p1 }
  0x96   : > { %3414 = shalt.err (!%p3411_p2)
}
  0x97   : > { %s3415_s28 = scalar_lea.vmem %s305_s21, 16  ;;  %s3422_s13 = scalar_lea.vmem %s305_s21, 32 }
  0x98   : > { %p3416_p5 = scmp.ne.s32.totalorder %s305_s21, %s3415_s28  ;;  %p3423_p4 = scmp.lt.s32.totalorder %s305_s21, %s305_s21 }
  0x99   : > { %p3424_p10 = scmp.lt.s32.totalorder %s3422_s13, %s3415_s28 }
  0x9a   : > { %p3418_p7 = pnand %p3416_p5, %p3721_p8 }
  0x9b   : > { %p3425_p11 = por %p3424_p10, %p3423_p4 }
  0x9c   : > { %p3419_p9 = pneg %p3418_p7 }
  0x9e   : > { %p3426_p12 = pnand %p3425_p11, %p3419_p9 }
  0xa0   : > { %3429 = shalt.err (!%p3426_p12)
}
  0xa1   : > { %3089 = dma.hbm_to_vmem [thread:$0]  (!%p3705_p6), %s4690_s4, 16, %s305_s21, [#allocation10]  }
  0xa2   : > { %s3430_s17 = scalar_lea.hbm %s4692_s6, 32 }
  0xa3   : > { %p3431_p13 = scmp.ne.s32.totalorder %s4692_s6, %s3430_s17  ;;  %p3437_p3 = scmp.lt.u32.totalorder %s3430_s17, %s4692_s6 }
  0xa5   : > { %p3433_p0 = pnand %p3431_p13, %p3721_p8 }
  0xa7   : > { %p3434_p1 = pneg %p3433_p0 }
  0xa9   : > { %p3439_p2 = pnand %p3437_p3, %p3434_p1 }
  0xab   : > { %3442 = shalt.err (!%p3439_p2)
}
  0xac   : > { %s3443_s24 = scalar_lea.vmem %s329_s20, 32  ;;  %p3451_p4 = scmp.lt.s32.totalorder %s329_s20, %s329_s20 }
  0xad   : > { %p3444_p5 = scmp.ne.s32.totalorder %s329_s20, %s3443_s24  ;;  %p3452_p10 = scmp.lt.s32.totalorder %s3443_s24, %s3443_s24 }
  0xaf   : > { %p3446_p7 = pnand %p3444_p5, %p3721_p8  ;;  %p3453_p11 = por %p3452_p10, %p3451_p4 }
  0xb1   : > { %p3447_p9 = pneg %p3446_p7 }
  0xb3   : > { %p3454_p12 = pnand %p3453_p11, %p3447_p9 }
  0xb5   : > { %3457 = shalt.err (!%p3454_p12)
}
  0xb6   : > { %3095 = dma.hbm_to_vmem [thread:$0]  (!%p3705_p6), %s4692_s6, 32, %s329_s20, [#allocation13]  }
  0xb7   : > { %s3611_s29 = smov [#allocation17]   ;;  %s3458_s9 = scalar_lea.hbm %s4694_s8, 32 }
  0xb8   : > { %s352_s28 = sshll.u32 %s3611_s29, 4  ;;  %p3459_p13 = scmp.ne.s32.totalorder %s4694_s8, %s3458_s9  ;;  %s353_s28 = int_to_ptr.vmem [resolvable:$true] %s352_s28 }
  0xb9   : > { %p3465_p3 = scmp.lt.u32.totalorder %s3458_s9, %s4694_s8 }
  0xba   : > { %p3461_p0 = pnand %p3459_p13, %p3721_p8 }
  0xbc   : > { %p3462_p1 = pneg %p3461_p0 }
  0xbe   : > { %p3467_p2 = pnand %p3465_p3, %p3462_p1 }
  0xc0   : > { %3470 = shalt.err (!%p3467_p2)
}
  0xc1   : > { %s3471_s20 = scalar_lea.vmem %s353_s28, 32  ;;  %p3479_p4 = scmp.lt.s32.totalorder %s353_s28, %s353_s28 }
  0xc2   : > { %p3472_p5 = scmp.ne.s32.totalorder %s353_s28, %s3471_s20  ;;  %p3480_p10 = scmp.lt.s32.totalorder %s3471_s20, %s3471_s20 }
  0xc4   : > { %p3474_p7 = pnand %p3472_p5, %p3721_p8  ;;  %p3481_p11 = por %p3480_p10, %p3479_p4 }
  0xc6   : > { %p3475_p9 = pneg %p3474_p7 }
  0xc8   : > { %p3482_p12 = pnand %p3481_p11, %p3475_p9 }
  0xca   : > { %3485 = shalt.err (!%p3482_p12)
}
  0xcb   : > { %3101 = dma.hbm_to_vmem [thread:$0]  (!%p3705_p6), %s4694_s8, 32, %s353_s28, [#allocation16]  }
  0xcc   : > { %s2661_s27 = sadd.s32 4294967294, %s3598_s12   ;;  %s3886_s19 = sadd.s32 1, %s3598_s12  }
  0xcd   : > { %s33_s23 = ssub.s32 %s3598_s12, %s3886_s19  ;;  %s36_s24 = sadd.s32 1, %s3594_s11 }
  0xce   : > { %p34_p8 = scmp.eq.s32.totalorder %s33_s23, 0  ;;  %p43_p13 = scmp.ne.s32.totalorder %s3594_s11, %s3590_s10 }
  0xcf   : > { %p44_p0 = scmp.eq.s32.totalorder %s3598_s12, 0  ;;  %p49_p1 = scmp.ne.s32.totalorder %s3590_s10, %s3586_s30 }
  0xd0   : > { %s3897_s21 = scalar_select %p34_p8, %s3594_s11, %s36_s24  }
  0xd1   : > { %p3899_p3 = por %p44_p0, %p43_p13  ;;  %p4722_p2 = scmp.eq.s32.totalorder %s3689_s15, 0 }
  0xd2   : > { %p241_p5 = scmp.eq.s32.totalorder %s3689_s15, 1  ;;  %p247_p7 = scmp.eq.s32.totalorder %s2661_s27, 1 }
  0xd3   : > { %p3905_p6 = por %p4722_p2, %p49_p1  ;;  %p3118_p9 = scmp.lt.s32.totalorder %s3598_s12, 2 }
  0xd4   : > { %s363_s28 = sand.u32 1, %s3594_s11   ;;  %p3912_p4 = por %p241_p5, %p43_p13 }
  0xd5   : > { %p3916_p10 = por %p247_p7, %p49_p1  ;;  %s2672_s9 = sshll.u32 %s363_s28, 5 }
  0xd6   : > { %s4724_s13 = scalar_select %p3912_p4, 1, 0 }
  0xd7   : > { %s4725_s14 = scalar_select %p3916_p10, 1, 0 }
  0xd8   : > { %s2846_s25 = sshll.u32 %s3598_s12, 9  ;;  %s367_s20 = scalar_lea.vmem [#allocation3], %s2672_s9 }
  0xd9   : > { %s3924_s1 = scalar_lea.hbm %s4686_s0, %s2846_s25  ;;  %s374_s3 = sshll.u32 %s367_s20, 4  ;;  %s3926_s3 = int_to_ptr.vmem [resolvable:$true] %s374_s3 }
  0xda   : > { %p3930_p11 = pnand %p3118_p9, %p3899_p3  ;;  %s3934_s27 = scalar_lea.sflag [#allocation4], %s363_s28 }
  0xdb   : > { %s3486_s23 = scalar_lea.hbm %s3924_s1, 512  ;;  %s3491_s26 = scalar_lea.hbm %s4686_s0, 1024 }
  0xdc   : > { %p3487_p12 = scmp.ne.s32.totalorder %s3924_s1, %s3486_s23  ;;  %p3488_p8 = pneg %p3930_p11 }
  0xdd   : > { %p3492_p1 = scmp.lt.u32.totalorder %s3924_s1, %s4686_s0  ;;  %p3493_p3 = scmp.lt.u32.totalorder %s3491_s26, %s3486_s23 }
  0xde   : > { %p3489_p13 = pnand %p3488_p8, %p3487_p12  ;;  %p3495_p5 = scmp.lt.u32.totalorder %s3486_s23, %s3924_s1 }
  0xdf   : > { %p3494_p2 = por %p3493_p3, %p3492_p1 }
  0xe0   : > { %p3490_p0 = pneg %p3489_p13 }
  0xe1   : > { %p3496_p7 = por %p3495_p5, %p3494_p2 }
  0xe3   : > { %p3497_p9 = pnand %p3496_p7, %p3490_p0 }
  0xe5   : > { %3500 = shalt.err (!%p3497_p9)
}
  0xe6   : > { %s3501_s28 = scalar_lea.vmem %s3926_s3, 512  ;;  %s3612_s17 = smov [#allocation3]  }
  0xe7   : > { %p3502_p12 = scmp.ne.s32.totalorder %s3926_s3, %s3501_s28  ;;  %s3506_s20 = sshll.u32 %s3612_s17, 4  ;;  %s3507_s20 = int_to_ptr.vmem [resolvable:$false] %s3506_s20 }
  0xe8   : > { %s3508_s24 = scalar_lea.vmem %s3507_s20, 1024  ;;  %p3509_p4 = scmp.lt.s32.totalorder %s3926_s3, %s3507_s20 }
  0xe9   : > { %p3504_p13 = pnand %p3502_p12, %p3488_p8  ;;  %p3510_p1 = scmp.lt.s32.totalorder %s3508_s24, %s3501_s28 }
  0xeb   : > { %p3505_p10 = pneg %p3504_p13  ;;  %p3511_p3 = por %p3510_p1, %p3509_p4 }
  0xed   : > { %p3512_p2 = pnand %p3511_p3, %p3505_p10 }
  0xef   : > { %3515 = shalt.err (!%p3512_p2)
}
  0xf0   : > { %s4727_s23 = smov 4   ;;  %s4728_s9 = smov 64  }
  0xf1   : > { %3105 = dma.hbm_to_vmem [thread:$0]  (!%p3930_p11), %s3924_s1, 512, %s3926_s3, %s3934_s27, %s4728_s9, %s4728_s9, %s4727_s23  }
  0xf2   : > { %p4729_p8 = scmp.ne.s32.totalorder %s4716_s16, 0 }
  0xf4   : > { %386 = sbr.rel (%p4729_p8) target bundleno = 1232 (0x4d0), region = 56 }
  0xfb   : > { %s3968_s26 = sand.u32 1, %s3590_s10  }
  0xfc   : > { %s2676_s25 = sshll.u32 %s3968_s26, 5  ;;  %s389_s18 = scalar_lea.sflag [#allocation4], %s3968_s26 }
  0xfd   : > { %s3972_s28 = scalar_lea.vmem [#allocation3], %s2676_s25 }
  0xfe   : > { %3561 = dma.done.wait (%p3905_p6), %s389_s18, 512  }
  0xff   : > { %3563 = vsyncadd (%p3905_p6), %s389_s18, 4294966784  ;;  %p4730_p4 = scmp.eq.s32.totalorder %s3689_s15, 0 }
 0x101   : > { %3565 = dma.done.wait (%p4730_p4), [#allocation7], 528   ;;  %p4731_p10 = pmov %p4730_p4 }
 0x102   : > { %p4732_p11 = pmov %p4730_p4 }
 0x103   : > { %3567 = vsyncadd (%p4731_p10), [#allocation7], 4294966768 }
 0x104   : > { %3569 = dma.done.wait (%p4732_p11), [#allocation10], 4624   ;;  %p4733_p0 = pmov %p4730_p4 }
 0x106   : > { %3571 = vsyncadd (%p4733_p0), [#allocation10], 4294962672  ;;  %p4734_p5 = pmov %p4733_p0 }
 0x107   : > { %p4735_p7 = pmov %p4733_p0 }
 0x108   : > { %3573 = dma.done.wait (%p4734_p5), [#allocation13], 1056  }
 0x109   : > { %3575 = vsyncadd (%p4735_p7), [#allocation13], 4294966240  ;;  %p4736_p6 = pmov %p4733_p0 }
 0x10a   : > { %p4737_p9 = pmov %p4733_p0 }
 0x10b   : > { %3577 = dma.done.wait (%p4736_p6), [#allocation16], 1056  }
 0x10c   : > { %3579 = vsyncadd (%p4737_p9), [#allocation16], 4294966240  ;;  %vm462_vm0 = vcmask 519168   ;;  %vm464_vm1 = vcmask 516096   ;;  %v4702_v0 = vmov 0   ;;  %v3176_v1 = vld [vmem:[#allocation6] sm:$0xff]  }
 0x10d   : > { %463 = vst.msk [vmem:[#allocation2] sm:$0xf] %vm462_vm0, %v4702_v0  ;;  %467 = vst.msk [vmem:[#allocation2 + $0x48] sm:$0xf] %vm462_vm0, %v4702_v0  ;;  %vm471_vm2 = vsmask.f32 256  ;;  %2961 = vmatprep.subr.bf16.mxu0 %v3176_v1 }
 0x10e   : > { %465 = vst.msk [vmem:[#allocation2 + $0x4] sm:$0x1] %vm464_vm1, %v4702_v0  ;;  %468 = vst.msk [vmem:[#allocation2 + $0x4c] sm:$0x1] %vm464_vm1, %v4702_v0  ;;  %v3177_v2 = vld [vmem:[#allocation6 + $0x8] sm:$0xff]   ;;  %2962 = vmatpush3.bf16.msra.mxu0 %v3176_v1  ;;  %v3178_v3 = vld [vmem:[#allocation6 + $0x10] sm:$0xff]  }
 0x10f   : > { %vm497_vm3 = vsmask.f32 7938  ;;  %vm590_vm4 = vcmask 523264   ;;  %2963 = vmatprep.subr.bf16.mxu0 %v3177_v2  ;;  %v3180_v4 = vld [vmem:[%s3972_s28] sm:$0xff]   ;;  %vm4004_vm5 = vmand %vm464_vm1, %vm471_vm2  ;;  %v3179_v7 = vld [vmem:[#allocation6 + $0x18] sm:$0xff]   ;;  %vm985_vm9 = vcmask 1042432  }
 0x110   : > { %2969 = vmatprep.mubr.msk.bf16.mxu0 %vm590_vm4, %v3180_v4  ;;  %vm4011_vm6 = vmand %vm464_vm1, %vm497_vm3  ;;  %v479_v8 = vld [vmem:[#allocation2 + $0x18] sm:$0x1]  ;;  %v505_v9 = vld [vmem:[#allocation2 + $0x1c] sm:$0x1]  ;;  %vm846_vm7 = vsmask.f32 3328 }
 0x111   : > { %v480_v10 = vsel %vm4004_vm5, 0, %v479_v8  ;;  %v506_v11 = vsel %vm4011_vm6, 0, %v505_v9  ;;  %v3181_v12 = vld [vmem:[%s3972_s28 + $0x8] sm:$0xff]   ;;  %v3182_v13 = vld [vmem:[%s3972_s28 + $0x10] sm:$0xff]   ;;  %v3183_v14 = vld [vmem:[%s3972_s28 + $0x18] sm:$0xff]   ;;  %vm986_vm10 = vcmask 1046532  }
 0x112   : > { %2964 = vmatpush3.bf16.msra.mxu0 %v3177_v2  ;;  %481 = vst [vmem:[#allocation2 + $0x18] sm:$0x1] %v480_v10  ;;  %507 = vst [vmem:[#allocation2 + $0x1c] sm:$0x1] %v506_v11  ;;  %v473_v15 = vld [vmem:[#allocation2 + $0x8] sm:$0x1] }
 0x113   : > { %2965 = vmatprep.subr.bf16.mxu0 %v3178_v3  ;;  %v499_v16 = vld [vmem:[#allocation2 + $0xc] sm:$0x1]  ;;  %v474_v17 = vsel %vm4004_vm5, 0, %v473_v15  ;;  %v482_v19 = vld [vmem:[#allocation2 + $0x20] sm:$0x1]  ;;  %v3188_v43 = vld [vmem:[#allocation9 + $0x40] sm:$0xff]  }
 0x114   : > { %v500_v18 = vsel %vm4011_vm6, 0, %v499_v16  ;;  %v508_v20 = vld [vmem:[#allocation2 + $0x24] sm:$0x1]  ;;  %475 = vst [vmem:[#allocation2 + $0x8] sm:$0x1] %v474_v17  ;;  %v483_v21 = vsel %vm4004_vm5, 0, %v482_v19  ;;  %2873 = vmatprep.subr.bf16.mxu1 %v3188_v43  ;;  %vm4083_vm11 = vmand %vm462_vm0, %vm497_vm3 }
 0x115   : > { %501 = vst [vmem:[#allocation2 + $0xc] sm:$0x1] %v500_v18  ;;  %v509_v22 = vsel %vm4011_vm6, 0, %v508_v20  ;;  %v476_v23 = vld [vmem:[#allocation2 + $0x10] sm:$0x1]  ;;  %v3189_v44 = vld [vmem:[#allocation9] sm:$0xff]   ;;  %vm4108_vm13 = vmor %vm985_vm9, %vm986_vm10 }
 0x116   : > { %2966 = vmatpush3.bf16.msra.mxu0 %v3178_v3  ;;  %v502_v24 = vld [vmem:[#allocation2 + $0x14] sm:$0x1]  ;;  %484 = vst [vmem:[#allocation2 + $0x20] sm:$0x1] %v483_v21  ;;  %510 = vst [vmem:[#allocation2 + $0x24] sm:$0x1] %v509_v22  ;;  %2874 = vmatpush3.bf16.msra.mxu1 %v3189_v44 }
 0x117   : > { %2967 = vmatprep.subr.bf16.mxu0 %v3179_v7  ;;  %v477_v25 = vsel %vm4004_vm5, 0, %v476_v23  ;;  %v503_v26 = vsel %vm4011_vm6, 0, %v502_v24  ;;  %v485_v27 = vld [vmem:[#allocation2 + $0x28] sm:$0x1]  ;;  %v511_v28 = vld [vmem:[#allocation2 + $0x2c] sm:$0x1] }
 0x118   : > { %478 = vst [vmem:[#allocation2 + $0x10] sm:$0x1] %v477_v25  ;;  %504 = vst [vmem:[#allocation2 + $0x14] sm:$0x1] %v503_v26  ;;  %v486_v29 = vsel %vm4004_vm5, 0, %v485_v27  ;;  %v512_v30 = vsel %vm4011_vm6, 0, %v511_v28 }
 0x119   : > { %487 = vst [vmem:[#allocation2 + $0x28] sm:$0x1] %v486_v29  ;;  %513 = vst [vmem:[#allocation2 + $0x2c] sm:$0x1] %v512_v30  ;;  %v491_v31 = vld [vmem:[#allocation2 + $0x38] sm:$0x1] }
 0x11a   : > { %2968 = vmatpush3.bf16.msra.mxu0 %v3179_v7  ;;  %v492_v32 = vsel %vm4004_vm5, 0, %v491_v31  ;;  %v494_v33 = vld [vmem:[#allocation2 + $0x40] sm:$0x1]  ;;  %v517_v34 = vld [vmem:[#allocation2 + $0x3c] sm:$0x1]  ;;  %v3192_v47 = vld [vmem:[#allocation9 + $0x50] sm:$0xff]  }
 0x11b   : > { %493 = vst [vmem:[#allocation2 + $0x38] sm:$0x1] %v492_v32  ;;  %v495_v35 = vsel %vm4004_vm5, 0, %v494_v33  ;;  %v518_v36 = vsel %vm4011_vm6, 0, %v517_v34  ;;  %v520_v37 = vld [vmem:[#allocation2 + $0x44] sm:$0x1] }
 0x11c   : > { %496 = vst [vmem:[#allocation2 + $0x40] sm:$0x1] %v495_v35  ;;  %v488_v38 = vld [vmem:[#allocation2 + $0x30] sm:$0x1]  ;;  %519 = vst [vmem:[#allocation2 + $0x3c] sm:$0x1] %v518_v36 }
 0x11d   : > { %2970 = vmatmul.mubr.msk.bf16.vlgmr.msra.gmra.mrb[0].mxu0 %vm590_vm4, %v3181_v12  ;;  %v521_v39 = vsel %vm4011_vm6, 0, %v520_v37  ;;  %v489_v40 = vsel %vm4004_vm5, 0, %v488_v38  ;;  %v514_v41 = vld [vmem:[#allocation2 + $0x34] sm:$0x1]  ;;  %v3190_v45 = vld [vmem:[#allocation9 + $0x48] sm:$0xff]   ;;  %v3193_v48 = vld [vmem:[#allocation9 + $0x10] sm:$0xff]  }
 0x11e   : > { %2973 = vmatprep.mubr.msk.bf16.mxu0 %vm590_vm4, %v3182_v13  ;;  %522 = vst [vmem:[#allocation2 + $0x44] sm:$0x1] %v521_v39  ;;  %490 = vst [vmem:[#allocation2 + $0x30] sm:$0x1] %v489_v40  ;;  %v515_v42 = vsel %vm4011_vm6, 0, %v514_v41  ;;  %v3191_v46 = vld [vmem:[#allocation9 + $0x8] sm:$0xff]   ;;  %2875 = vmatprep.subr.bf16.mxu1 %v3190_v45 }
 0x11f   : > { %516 = vst [vmem:[#allocation2 + $0x34] sm:$0x1] %v515_v42  ;;  %2876 = vmatpush3.bf16.msra.mxu1 %v3191_v46  ;;  %v3194_v49 = vld [vmem:[#allocation9 + $0x58] sm:$0xff]   ;;  %v3196_v51 = vld [vmem:[#allocation9 + $0x60] sm:$0xff]   ;;  %v3198_v53 = vld [vmem:[#allocation9 + $0x68] sm:$0xff]   ;;  %s3614_s16 = smov 64  }
 0x120   : > { %2877 = vmatprep.subr.bf16.mxu1 %v3192_v47  ;;  %v3195_v50 = vld [vmem:[#allocation9 + $0x18] sm:$0xff]   ;;  %v3197_v52 = vld [vmem:[#allocation9 + $0x20] sm:$0xff]   ;;  %v3199_v54 = vld [vmem:[#allocation9 + $0x28] sm:$0xff]   ;;  %vm847_vm8 = vsmask.f32 7440  ;;  %s2685_s29 = sshll.u32 %s3968_s26, 6 }
 0x121   : > { %v830_v55 = vld [vmem:[#allocation2] sm:$0xf]  ;;  %v1212_v60 = vld [vmem:[#allocation2 + $0x48] sm:$0xf]  ;;  %v4054_v61 = vld [vmem:[#allocation8] ss:$0 sm:$0xff] }
 0x122   : > { %v850_v56 = vshrl.u32 %v830_v55, 16  ;;  %v853_v57 = vshll.u32 %v830_v55, 16  ;;  %v4056_v62 = vld [vmem:[#allocation2 + $0x4] sm:$0x1]  ;;  %v1320_v63 = vshrl.u32 %v1212_v60, 16  ;;  %v1323_v1 = vshll.u32 %v1212_v60, 16  ;;  %vm4098_vm12 = vmor %vm846_vm7, %vm847_vm8 }
 0x123   : > { %2878 = vmatpush3.bf16.msra.mxu1 %v3193_v48  ;;  %v859_v4 = vshll.u32 %v4056_v62, 16  ;;  %v4066_v15 = vld [vmem:[#allocation2] sm:$0xe]  ;;  %v4073_v24 = vld [vmem:[#allocation2 + $0x4c] sm:$0x1]  ;;  %v990_v26 = vrot.slane %v4056_v62, 5 }
 0x124   : > { %2879 = vmatprep.subr.bf16.mxu1 %v3194_v49  ;;  %v852_v58 = vrot.slane %v850_v56, 4  ;;  %v855_v59 = vrot.slane %v853_v57, 5  ;;  %v4062_v13 = vrot.slane %v1320_v63, 4  ;;  %v2707_v25 = vrot.slane %v4066_v15, 9  ;;  %v794_v32 = vld [vmem:[#allocation2 + $0x18] sm:$0xf] }
 0x125   : > { %2974 = vmatmul.mubr.msk.bf16.gmra.mrb[4].mxu0 %vm590_vm4, %v3183_v14  ;;  %v4064_v14 = vrot.slane %v1323_v1, 5  ;;  %v4071_v19 = vrot.slane %v859_v4, 5  ;;  %v1329_v30 = vshll.u32 %v4073_v24, 16  ;;  %v797_v33 = vld [vmem:[#allocation2 + $0x1c] sm:$0x1]  ;;  %v3202_v15 = vld [vmem:[#allocation9 + $0x78] sm:$0xff]  }
 0x126   : > { %2235 = vmatprep.mubr.bf16.mxu0 %v4702_v0  ;;  %v856_v3 = vor.u32 %v855_v59, %v852_v58  ;;  %v782_v39 = vld [vmem:[#allocation2 + $0x8] sm:$0xf]  ;;  %v785_v46 = vld [vmem:[#allocation2 + $0xc] sm:$0x1]  ;;  %v803_v59 = vld [vmem:[#allocation2 + $0x24] sm:$0x1] }
 0x127   : > { %2880 = vmatpush3.bf16.msra.mxu1 %v3195_v50  ;;  %v1326_v29 = vor.u32 %v4064_v14, %v4062_v13  ;;  %v4140_v62 = vrot.slane %v1329_v30, 5  ;;  %s4625_s1 = scalar_lea.vmem [#allocation18], %s2685_s29  ;;  %s2864_s22 = sshll.u32 %s3689_s15, 10 }
 0x128   : > { %2881 = vmatprep.subr.bf16.mxu1 %v3196_v51  ;;  %v4069_v18 = vrot.slane %v856_v3, 4  ;;  %s2512_s3 = sshll.u32 %s4625_s1, 4  ;;  %s4780_s20 = sld [smem:[#allocation37_spill]]  ;;  %s4635_s3 = int_to_ptr.vmem [resolvable:$true] %s2512_s3 }
 0x129   : > { %s2498_s23 = scalar_lea.sflag [#allocation5], %s3968_s26  ;;  %s3516_s9 = scalar_lea.vmem %s4635_s3, 1024 }
 0x12a   : > { %p3517_p12 = scmp.ne.s32.totalorder %s4635_s3, %s3516_s9  ;;  %p4781_p13 = scmp.ne.s32.totalorder %s4724_s13, 0 }
 0x12b   : > { %2882 = vmatpush3.bf16.msra.mxu1 %v3197_v52  ;;  %s3615_s15 = smov [#allocation18]  }
 0x12c   : > { %2883 = vmatprep.subr.bf16.mxu1 %v3198_v53  ;;  %p3518_p1 = pnand %p3517_p12, %p4781_p13  ;;  %s3520_s25 = sshll.u32 %s3615_s15, 4  ;;  %s3521_s25 = int_to_ptr.vmem [resolvable:$false] %s3520_s25 }
 0x12d   : > { %s3522_s18 = scalar_lea.vmem %s3521_s25, 2048  ;;  %p3523_p2 = scmp.lt.s32.totalorder %s4635_s3, %s3521_s25 }
 0x12e   : > { %s4640_s24 = scalar_lea.hbm %s4780_s20, %s2864_s22  ;;  %p3519_p3 = pneg %p3518_p1 }
 0x12f   : > { %2884 = vmatpush3.bf16.msra.mxu1 %v3199_v54  ;;  %v800_v54 = vld [vmem:[#allocation2 + $0x20] sm:$0xf]  ;;  %p3524_p8 = scmp.lt.s32.totalorder %s3522_s18, %s3516_s9 }
 0x131   : > { %p3525_p4 = por %p3524_p8, %p3523_p2 }
 0x133   : > { %p3526_p10 = pnand %p3525_p4, %p3519_p3 }
 0x1f0   : > { %v2971_v2 = vpop.f32.mrb[0].mxu0 }
 0x1f1   : > { %v646_v6 = vadd.f32 %v2971_v2, %v4054_v61  ;;  %v637_v7 = vpop.f32.mrb[1].mxu0 }
 0x1f2   : > { %v638_v8 = vadd.f32 %v4054_v61, %v637_v7  ;;  %v2972_v9 = vpop.f32.mrb[2].mxu0  ;;  %v791_v7 = vld [vmem:[#allocation2 + $0x14] sm:$0x1] }
 0x1f3   : > { %v670_v10 = vmax.f32 %v646_v6, 0.0  ;;  %v649_v11 = vadd.f32 %v2972_v9, %v4054_v61  ;;  %v640_v12 = vpop.f32.mrb[3].mxu0  ;;  %v788_v6 = vld [vmem:[#allocation2 + $0x10] sm:$0xf] }
 0x1f4   : > { %v668_v16 = vmax.f32 %v638_v8, 0.0  ;;  %v641_v17 = vadd.f32 %v4054_v61, %v640_v12  ;;  %v3200_v8 = vld [vmem:[#allocation9 + $0x70] sm:$0xff]  }
 0x1f5   : > { %v2849_v20 = vpack.c.bf16 %v670_v10, %v670_v10  ;;  %v671_v21 = vmax.f32 %v649_v11, 0.0  ;;  %2885 = vmatprep.subr.bf16.mxu1 %v3200_v8 }
 0x1f6   : > { %v2847_v22 = vpack.c.bf16 %v668_v16, %v668_v16  ;;  %v669_v23 = vmax.f32 %v641_v17, 0.0 }
 0x1f7   : > { %v717_v27 = vshrl.u32 %v2849_v20, 16  ;;  %v2850_v28 = vpack.c.bf16 %v671_v21, %v671_v21  ;;  %v720_v31 = vshll.u32 %v2849_v20, 16 }
 0x1f8   : > { %v701_v34 = vshrl.u32 %v2847_v22, 16  ;;  %v704_v35 = vshll.u32 %v2847_v22, 16  ;;  %v2848_v36 = vpack.c.bf16 %v669_v23, %v669_v23  ;;  %v2975_v37 = vpop.f32.mrb[4].mxu0 }
 0x1f9   : > { %v719_v38 = vrot.slane %v717_v27, 7  ;;  %v725_v40 = vshrl.u32 %v2850_v28, 16  ;;  %v728_v41 = vshll.u32 %v2850_v28, 16  ;;  %v662_v42 = vadd.f32 %v2975_v37, %v4054_v61  ;;  %v653_v43 = vpop.f32.mrb[5].mxu0  ;;  %v4118_v37 = vld [vmem:[#allocation2 + $0x48] sm:$0xe] }
 0x1fa   : > { %v703_v45 = vrot.slane %v701_v34, 7  ;;  %v709_v47 = vshrl.u32 %v2848_v36, 16  ;;  %v712_v48 = vshll.u32 %v2848_v36, 16  ;;  %v654_v49 = vadd.f32 %v4054_v61, %v653_v43  ;;  %v2976_v50 = vpop.f32.mrb[6].mxu0  ;;  %v3201_v43 = vld [vmem:[#allocation9 + $0x30] sm:$0xff]  }
 0x1fb   : > { %v722_v51 = vor.u32 %v720_v31, %v719_v38  ;;  %v723_v52 = vrot.slane %v719_v38, 4  ;;  %v727_v53 = vrot.slane %v725_v40, 7  ;;  %v674_v55 = vmax.f32 %v662_v42, 0.0  ;;  %v656_v56 = vpop.f32.mrb[7].mxu0  ;;  %v806_v38 = vld [vmem:[#allocation2 + $0x28] sm:$0xf]  ;;  %2886 = vmatpush3.bf16.msra.mxu1 %v3201_v43 }
 0x1fc   : > { %v706_v57 = vor.u32 %v704_v35, %v703_v45  ;;  %v707_v58 = vrot.slane %v703_v45, 4  ;;  %v711_v60 = vrot.slane %v709_v47, 7  ;;  %v672_v63 = vmax.f32 %v654_v49, 0.0  ;;  %2887 = vmatprep.subr.bf16.mxu1 %v3202_v15 }
 0x1fd   : > { %v795_v1 = vsel %vm4083_vm11, %v722_v51, %v794_v32  ;;  %v798_v2 = vsel %vm4004_vm5, %v723_v52, %v797_v33  ;;  %v730_v3 = vor.u32 %v728_v41, %v727_v53  ;;  %v731_v4 = vrot.slane %v727_v53, 4 }
 0x1fe   : > { %796 = vst [vmem:[#allocation2 + $0x18] sm:$0xf] %v795_v1  ;;  %799 = vst [vmem:[#allocation2 + $0x1c] sm:$0x1] %v798_v2  ;;  %v783_v9 = vsel %vm4083_vm11, %v706_v57, %v782_v39  ;;  %v786_v10 = vsel %vm4004_vm5, %v707_v58, %v785_v46  ;;  %v714_v11 = vor.u32 %v712_v48, %v711_v60  ;;  %v715_v12 = vrot.slane %v711_v60, 4 }
 0x1ff   : > { %784 = vst [vmem:[#allocation2 + $0x8] sm:$0xf] %v783_v9  ;;  %787 = vst [vmem:[#allocation2 + $0xc] sm:$0x1] %v786_v10  ;;  %v801_v17 = vsel %vm4083_vm11, %v730_v3, %v800_v54  ;;  %v804_v20 = vsel %vm4004_vm5, %v731_v4, %v803_v59  ;;  %v2853_v21 = vpack.c.bf16 %v674_v55, %v674_v55  ;;  %v809_v39 = vld [vmem:[#allocation2 + $0x2c] sm:$0x1] }
 0x200   : > { %v2851_v22 = vpack.c.bf16 %v672_v63, %v672_v63  ;;  %802 = vst [vmem:[#allocation2 + $0x20] sm:$0xf] %v801_v17  ;;  %805 = vst [vmem:[#allocation2 + $0x24] sm:$0x1] %v804_v20  ;;  %v789_v27 = vsel %vm4083_vm11, %v714_v11, %v788_v6  ;;  %v792_v28 = vsel %vm4004_vm5, %v715_v12, %v791_v7  ;;  %v818_v46 = vld [vmem:[#allocation2 + $0x38] sm:$0xf] }
 0x201   : > { %v665_v31 = vadd.f32 %v2976_v50, %v4054_v61  ;;  %v657_v32 = vadd.f32 %v4054_v61, %v656_v56  ;;  %790 = vst [vmem:[#allocation2 + $0x10] sm:$0xf] %v789_v27  ;;  %793 = vst [vmem:[#allocation2 + $0x14] sm:$0x1] %v792_v28  ;;  %v749_v33 = vshrl.u32 %v2853_v21, 16  ;;  %v752_v34 = vshll.u32 %v2853_v21, 16 }
 0x202   : > { %v733_v35 = vshrl.u32 %v2851_v22, 16  ;;  %v736_v36 = vshll.u32 %v2851_v22, 16  ;;  %v862_v42 = vsel %vm4098_vm12, %v4069_v18, %v4071_v19  ;;  %v4130_v61 = vsel %vm4108_vm13, %v2707_v25, %v990_v26  ;;  %v821_v50 = vld [vmem:[#allocation2 + $0x3c] sm:$0x1]  ;;  %v3203_v25 = vld [vmem:[#allocation9 + $0x38] sm:$0xff]  }
 0x203   : > { %v675_v40 = vmax.f32 %v665_v31, 0.0  ;;  %v673_v41 = vmax.f32 %v657_v32, 0.0  ;;  %v751_v45 = vrot.slane %v749_v33, 7  ;;  %v4135_v48 = vrot.slane %v1326_v29, 4  ;;  %v824_v1 = vld [vmem:[#allocation2 + $0x40] sm:$0xf]  ;;  %2888 = vmatpush3.bf16.msra.mxu1 %v3203_v25 }
 0x204   : > { %v735_v47 = vrot.slane %v733_v35, 7  ;;  %v1387_v49 = vrot.slane %v4073_v24, 5  ;;  %v2730_v26 = vrot.slane %v4118_v37, 9  ;;  %v827_v2 = vld [vmem:[#allocation2 + $0x44] sm:$0x1] }
 0x205   : > { %v2854_v51 = vpack.c.bf16 %v675_v40, %v675_v40  ;;  %v2852_v52 = vpack.c.bf16 %v673_v41, %v673_v41  ;;  %v754_v53 = vor.u32 %v752_v34, %v751_v45  ;;  %v755_v54 = vrot.slane %v751_v45, 4  ;;  %v1022_v58 = vld [vmem:[#allocation2 + $0x18] sm:$0xf]  ;;  %v812_v3 = vld [vmem:[#allocation2 + $0x30] sm:$0xf] }
 0x206   : > { %v738_v55 = vor.u32 %v736_v36, %v735_v47  ;;  %v739_v13 = vrot.slane %v735_v47, 4  ;;  %v815_v11 = vld [vmem:[#allocation2 + $0x34] sm:$0x1]  ;;  %v1065_v17 = vshrl.u32 %v1022_v58, 16  ;;  %v1068_v20 = vshll.u32 %v1022_v58, 16 }
 0x207   : > { %v757_v14 = vshrl.u32 %v2854_v51, 16  ;;  %v760_v29 = vshll.u32 %v2854_v51, 16  ;;  %v741_v56 = vshrl.u32 %v2852_v52, 16  ;;  %v744_v57 = vshll.u32 %v2852_v52, 16  ;;  %v1023_v4 = vld [vmem:[#allocation2 + $0x20] sm:$0xf] }
 0x208   : > { %v819_v59 = vsel %vm4083_vm11, %v754_v53, %v818_v46  ;;  %v822_v30 = vsel %vm4004_vm5, %v755_v54, %v821_v50  ;;  %v807_v60 = vsel %vm4083_vm11, %v738_v55, %v806_v38  ;;  %v810_v63 = vsel %vm4004_vm5, %v739_v13, %v809_v39  ;;  %v1021_v10 = vld [vmem:[#allocation2 + $0x10] sm:$0xf]  ;;  %v1020_v32 = vld [vmem:[#allocation2 + $0x8] sm:$0xf]  ;;  %v4162_v51 = vld [vmem:[#allocation2 + $0xc] sm:$0x1] }
 0x209   : > { %820 = vst [vmem:[#allocation2 + $0x38] sm:$0xf] %v819_v59  ;;  %823 = vst [vmem:[#allocation2 + $0x3c] sm:$0x1] %v822_v30  ;;  %v759_v6 = vrot.slane %v757_v14, 7  ;;  %v743_v7 = vrot.slane %v741_v56, 7  ;;  %v2744_v12 = vcombine.low %v1022_v58, %v1023_v4  ;;  %v2743_v52 = vcombine.low %v1020_v32, %v1021_v10 }
 0x20a   : > { %808 = vst [vmem:[#allocation2 + $0x28] sm:$0xf] %v807_v60  ;;  %811 = vst [vmem:[#allocation2 + $0x2c] sm:$0x1] %v810_v63  ;;  %v1079_v8 = vshrl.u32 %v1023_v4, 16  ;;  %v1082_v9 = vshll.u32 %v1023_v4, 16 }
 0x20b   : > { %v1051_v21 = vshrl.u32 %v1021_v10, 16  ;;  %v762_v22 = vor.u32 %v760_v29, %v759_v6  ;;  %v763_v27 = vrot.slane %v759_v6, 4  ;;  %v746_v28 = vor.u32 %v744_v57, %v743_v7  ;;  %1463 = vrot.lane.b32.xlu1 %v2744_v12, %s3614_s16  ;;  %v4152_v38 = vld [vmem:[#allocation2 + $0x8] sm:$0xf]  ;;  %v4165_v44 = vld [vmem:[#allocation2 + $0x10] sm:$0xf]  ;;  %1461 = vrot.lane.b32.xlu0 %v2743_v52, %s3614_s16 }
 0x20c   : > { %v747_v31 = vrot.slane %v743_v7, 4  ;;  %v1081_v33 = vrot.slane %v1079_v8, 4  ;;  %v1084_v34 = vrot.slane %v1082_v9, 5  ;;  %v1067_v35 = vrot.slane %v1065_v17, 4  ;;  %4748 = vst [vmem:[#allocation25_spill] sm:$0xff] %v4152_v38  ;;  %v3204_v54 = vld [vmem:[#allocation9 + $0xc0] sm:$0xff]  }
 0x20d   : > { %v1070_v36 = vrot.slane %v1068_v20, 5  ;;  %v825_v39 = vsel %vm4083_vm11, %v762_v22, %v824_v1  ;;  %v828_v40 = vsel %vm4004_vm5, %v763_v27, %v827_v2  ;;  %v813_v41 = vsel %vm4083_vm11, %v746_v28, %v812_v3  ;;  %v4168_v13 = vld [vmem:[#allocation2 + $0x18] sm:$0xf]  ;;  %v4184_v30 = vld [vmem:[#allocation2 + $0x14] sm:$0x1]  ;;  %2913 = vmatprep.subr.bf16.mxu1 %v3204_v54 }
 0x20e   : > { %v816_v43 = vsel %vm4004_vm5, %v747_v31, %v815_v11  ;;  %826 = vst [vmem:[#allocation2 + $0x40] sm:$0xf] %v825_v39  ;;  %829 = vst [vmem:[#allocation2 + $0x44] sm:$0x1] %v828_v40  ;;  %v1085_v45 = vor.u32 %v1084_v34, %v1081_v33  ;;  %v1053_v47 = vrot.slane %v1051_v21, 4  ;;  %v1054_v50 = vshll.u32 %v1021_v10, 16 }
 0x20f   : > { %814 = vst [vmem:[#allocation2 + $0x30] sm:$0xf] %v813_v41  ;;  %817 = vst [vmem:[#allocation2 + $0x34] sm:$0x1] %v816_v43  ;;  %v1071_v46 = vor.u32 %v1070_v36, %v1067_v35  ;;  %v1037_v15 = vshrl.u32 %v1020_v32, 16  ;;  %v1040_v25 = vshll.u32 %v1020_v32, 16  ;;  %v4180_v29 = vsel %vm4108_vm13, %v2730_v26, %v1387_v49 }
 0x210   : > { %v864_v53 = vshrl.u32 %v4152_v38, 16  ;;  %v1056_v5 = vrot.slane %v1054_v50, 5  ;;  %v867_v55 = vshll.u32 %v4152_v38, 16  ;;  %4749 = vst [vmem:[#allocation26_spill] sm:$0xff] %v4180_v29  ;;  %v873_v59 = vshll.u32 %v4162_v51, 16 }
 0x211   : > { %v1039_v56 = vrot.slane %v1037_v15, 4  ;;  %v1042_v57 = vrot.slane %v1040_v25, 5  ;;  %v4186_v1 = vld [vmem:[#allocation2 + $0x1c] sm:$0x1]  ;;  %v878_v24 = vshrl.u32 %v4165_v44, 16  ;;  %v881_v37 = vshll.u32 %v4165_v44, 16 }
 0x212   : > { %v866_v58 = vrot.slane %v864_v53, 4  ;;  %v1057_v60 = vor.u32 %v1056_v5, %v1053_v47  ;;  %v869_v63 = vrot.slane %v867_v55, 5  ;;  %v4190_v49 = vrot.slane %v1085_v45, 4  ;;  %v1024_v4 = vld [vmem:[#allocation2 + $0x28] sm:$0xf] }
 0x213   : > { %v4192_v26 = vrot.slane %v1071_v46, 4  ;;  %v1043_v2 = vor.u32 %v1042_v57, %v1039_v56  ;;  %v892_v3 = vshrl.u32 %v4168_v13, 16  ;;  %v880_v7 = vrot.slane %v878_v24, 4  ;;  %v4200_v35 = vld [vmem:[#allocation2 + $0x20] sm:$0xf] }
 0x214   : > { %v870_v6 = vor.u32 %v869_v63, %v866_v58  ;;  %v883_v8 = vrot.slane %v881_v37, 5  ;;  %v887_v9 = vshll.u32 %v4184_v30, 16  ;;  %v4196_v10 = vrot.slane %v1057_v60, 4  ;;  %v4204_v43 = vld [vmem:[#allocation2 + $0x24] sm:$0x1] }
 0x215   : > { %v875_v11 = vrot.slane %v873_v59, 5  ;;  %v894_v12 = vrot.slane %v892_v3, 4  ;;  %v895_v17 = vshll.u32 %v4168_v13, 16  ;;  %v901_v27 = vshll.u32 %v4186_v1, 16  ;;  %v4211_v52 = vld [vmem:[#allocation2 + $0x28] sm:$0xf] }
 0x216   : > { %v1025_v20 = vld [vmem:[#allocation2 + $0x30] sm:$0xf]  ;;  %v871_v21 = vrot.slane %v870_v6, 4  ;;  %v884_v22 = vor.u32 %v883_v8, %v880_v7  ;;  %v1093_v28 = vshrl.u32 %v1024_v4, 16  ;;  %v1096_v32 = vshll.u32 %v1024_v4, 16 }
 0x217   : > { %v897_v31 = vrot.slane %v895_v17, 5  ;;  %v1107_v33 = vshrl.u32 %v1025_v20, 16  ;;  %v1110_v34 = vshll.u32 %v1025_v20, 16  ;;  %v889_v40 = vrot.slane %v887_v9, 5  ;;  %v1026_v59 = vld [vmem:[#allocation2 + $0x38] sm:$0xf] }
 0x218   : > { %v876_v36 = vsel %vm4098_vm12, %v871_v21, %v875_v11  ;;  %v885_v39 = vrot.slane %v884_v22, 4  ;;  %v1095_v41 = vrot.slane %v1093_v28, 4  ;;  %v1098_v47 = vrot.slane %v1096_v32, 5  ;;  %v1027_v3 = vld [vmem:[#allocation2 + $0x40] sm:$0xf] }
 0x219   : > { %v2735_v45 = vcombine.low %v862_v42, %v876_v36  ;;  %v898_v46 = vor.u32 %v897_v31, %v894_v12  ;;  %v1109_v50 = vrot.slane %v1107_v33, 4  ;;  %v903_v25 = vrot.slane %v901_v27, 5  ;;  %v4225_v6 = vld [vmem:[#allocation2 + $0x2c] sm:$0x1]  ;;  %v4232_v36 = vld [vmem:[#allocation2 + $0x38] sm:$0xf] }
 0x21a   : > { %v890_v15 = vsel %vm4098_vm12, %v885_v39, %v889_v40  ;;  %v1112_v53 = vrot.slane %v1110_v34, 5  ;;  %v906_v54 = vshrl.u32 %v4200_v35, 16  ;;  %v2745_v55 = vcombine.low %v1024_v4, %v1025_v20  ;;  %v4229_v20 = vld [vmem:[#allocation2 + $0x30] sm:$0xf]  ;;  %v1150_v0 = vld [vmem:[#allocation2 + $0x18] sm:$0xe] }
 0x21b   : > { %1421 = vrot.lane.b32.xlu0 %v2735_v45, %s3614_s16  ;;  %v899_v5 = vrot.slane %v898_v46, 4  ;;  %v909_v56 = vshll.u32 %v4200_v35, 16  ;;  %v915_v18 = vshll.u32 %v4204_v43, 16  ;;  %v4219_v19 = vrot.slane %v1043_v2, 4  ;;  %v4234_v45 = vld [vmem:[#allocation2 + $0x34] sm:$0x1] }
 0x21c   : > { %v908_v42 = vrot.slane %v906_v54, 4  ;;  %v920_v57 = vshrl.u32 %v4211_v52, 16  ;;  %v923_v58 = vshll.u32 %v4211_v52, 16  ;;  %v1099_v63 = vor.u32 %v1098_v47, %v1095_v41  ;;  %v1152_v38 = vld [vmem:[#allocation2 + $0x28] sm:$0xe] }
 0x21d   : > { %v904_v60 = vsel %vm4098_vm12, %v899_v5, %v903_v25  ;;  %v1113_v24 = vor.u32 %v1112_v53, %v1109_v50  ;;  %v911_v37 = vrot.slane %v909_v56, 5  ;;  %v917_v7 = vrot.slane %v915_v18, 5  ;;  %v4247_v56 = vld [vmem:[#allocation2 + $0x10] sm:$0xf]  ;;  %v4249_v18 = vld [vmem:[#allocation2 + $0x14] sm:$0x1] }
 0x21e   : > { %v2736_v4 = vcombine.low %v890_v15, %v904_v60  ;;  %v922_v8 = vrot.slane %v920_v57, 4  ;;  %v925_v2 = vrot.slane %v923_v58, 5  ;;  %v929_v11 = vshll.u32 %v4225_v6, 16  ;;  %4750 = vst [vmem:[#allocation27_spill] sm:$0xff] %v4249_v18 }
 0x21f   : > { %1465 = vrot.lane.b32.xlu0 %v2745_v55, %s3614_s16  ;;  %v912_v9 = vor.u32 %v911_v37, %v908_v42  ;;  %v1121_v12 = vshrl.u32 %v1026_v59, 16  ;;  %v1124_v17 = vshll.u32 %v1026_v59, 16  ;;  %v1135_v22 = vshrl.u32 %v1027_v3, 16 }
 0x220   : > { %1423 = vrot.lane.b32.xlu1 %v2736_v4, %s3614_s16  ;;  %v926_v21 = vor.u32 %v925_v2, %v922_v8  ;;  %v1138_v27 = vshll.u32 %v1027_v3, 16  ;;  %v2746_v28 = vcombine.low %v1026_v59, %v1027_v3  ;;  %v931_v32 = vrot.slane %v929_v11, 5  ;;  %v4253_v59 = vld [vmem:[#allocation2 + $0x3c] sm:$0x1] }
 0x221   : > { %v913_v31 = vrot.slane %v912_v9, 4  ;;  %v1123_v33 = vrot.slane %v1121_v12, 4  ;;  %v1126_v34 = vrot.slane %v1124_v17, 5  ;;  %v1137_v40 = vrot.slane %v1135_v22, 4  ;;  %v4260_v2 = vld [vmem:[#allocation2 + $0x1c] sm:$0x1] }
 0x222   : > { %v927_v39 = vrot.slane %v926_v21, 4  ;;  %v1140_v41 = vrot.slane %v1138_v27, 5  ;;  %v934_v46 = vshrl.u32 %v4229_v20, 16  ;;  %v4237_v47 = vrot.slane %v1099_v63, 4  ;;  %v4255_v63 = vld [vmem:[#allocation2 + $0x18] sm:$0xf] }
 0x223   : > { %v918_v50 = vsel %vm4098_vm12, %v913_v31, %v917_v7  ;;  %1467 = vrot.lane.b32.xlu0 %v2746_v28, %s3614_s16  ;;  %v937_v15 = vshll.u32 %v4229_v20, 16  ;;  %v943_v25 = vshll.u32 %v4234_v45, 16  ;;  %v1127_v54 = vor.u32 %v1126_v34, %v1123_v33  ;;  %4751 = vst [vmem:[#allocation28_spill] sm:$0xff] %v4260_v2  ;;  %v4269_v33 = vld [vmem:[#allocation2 + $0xc] sm:$0x1] }
 0x224   : > { %v932_v53 = vsel %vm4098_vm12, %v927_v39, %v931_v32  ;;  %v936_v5 = vrot.slane %v934_v46, 4  ;;  %v948_v55 = vshrl.u32 %v4232_v36, 16  ;;  %v4251_v42 = vrot.slane %v1113_v24, 4  ;;  %v1148_v46 = vld [vmem:[#allocation2 + $0x8] sm:$0xe] }
 0x225   : > { %v2737_v57 = vcombine.low %v918_v50, %v932_v53  ;;  %v1141_v58 = vor.u32 %v1140_v41, %v1137_v40  ;;  %v939_v60 = vrot.slane %v937_v15, 5  ;;  %v945_v37 = vrot.slane %v943_v25, 5 }
 0x226   : > { %v950_v3 = vrot.slane %v948_v55, 4  ;;  %v951_v4 = vshll.u32 %v4232_v36, 16  ;;  %v957_v7 = vshll.u32 %v4253_v59, 16  ;;  %v1222_v24 = vshrl.u32 %v4247_v56, 16 }
 0x227   : > { %1425 = vrot.lane.b32.xlu1 %v2737_v57, %s3614_s16  ;;  %v940_v8 = vor.u32 %v939_v60, %v936_v5  ;;  %v1225_v9 = vshll.u32 %v4247_v56, 16  ;;  %v1231_v11 = vshll.u32 %v4249_v18, 16  ;;  %v4265_v12 = vrot.slane %v1127_v54, 4  ;;  %v4276_v54 = vld [vmem:[#allocation2 + $0x14] sm:$0x1] }
 0x228   : > { %v953_v17 = vrot.slane %v951_v4, 5  ;;  %v1236_v21 = vshrl.u32 %v4255_v63, 16  ;;  %v1239_v22 = vshll.u32 %v4255_v63, 16  ;;  %v959_v28 = vrot.slane %v957_v7, 5  ;;  %v1149_v5 = vld [vmem:[#allocation2 + $0x10] sm:$0xe] }
 0x229   : > { %v941_v27 = vrot.slane %v940_v8, 4  ;;  %v1224_v31 = vrot.slane %v1222_v24, 4  ;;  %v1227_v32 = vrot.slane %v1225_v9, 5  ;;  %v1245_v41 = vshll.u32 %v4260_v2, 16  ;;  %v4280_v4 = vld [vmem:[#allocation2 + $0x20] sm:$0xf] }
 0x22a   : > { %v954_v34 = vor.u32 %v953_v17, %v950_v3  ;;  %v1238_v39 = vrot.slane %v1236_v21, 4  ;;  %v1241_v40 = vrot.slane %v1239_v22, 5  ;;  %v4272_v50 = vrot.slane %v1141_v58, 4  ;;  %v1215_v9 = vld [vmem:[#allocation2 + $0x24] sm:$0x1] }
 0x22b   : > { %v946_v15 = vsel %vm4098_vm12, %v941_v27, %v945_v37  ;;  %v1228_v25 = vor.u32 %v1227_v32, %v1224_v31  ;;  %v1233_v53 = vrot.slane %v1231_v11, 5  ;;  %v1247_v8 = vrot.slane %v1245_v41, 5  ;;  %v4286_v22 = vld [vmem:[#allocation2 + $0x28] sm:$0xf]  ;;  %v1151_v3 = vld [vmem:[#allocation2 + $0x20] sm:$0xe] }
 0x22c   : > { %4752 = vst [vmem:[#allocation29_spill] sm:$0xff] %v4272_v50  ;;  %v955_v55 = vrot.slane %v954_v34, 4  ;;  %v1242_v57 = vor.u32 %v1241_v40, %v1238_v39  ;;  %v2715_v58 = vrot.slane %v1148_v46, 9  ;;  %v1174_v24 = vrot.slane %v4269_v33, 5  ;;  %v4291_v34 = vld [vmem:[#allocation2 + $0x2c] sm:$0x1] }
 0x22d   : > { %v1229_v7 = vrot.slane %v1228_v25, 4  ;;  %v2716_v17 = vrot.slane %v1149_v5, 9  ;;  %v1178_v21 = vrot.slane %v4276_v54, 5  ;;  %v1250_v39 = vshrl.u32 %v4280_v4, 16  ;;  %v1335_v25 = vld [vmem:[#allocation2 + $0x20] sm:$0xe] }
 0x22e   : > { %v960_v37 = vsel %vm4098_vm12, %v955_v55, %v959_v28  ;;  %v1243_v11 = vrot.slane %v1242_v57, 4  ;;  %v1253_v41 = vshll.u32 %v4280_v4, 16  ;;  %v1259_v46 = vshll.u32 %v1215_v9, 16  ;;  %v1153_v2 = vld [vmem:[#allocation2 + $0x30] sm:$0xe] }
 0x22f   : > { %v2738_v27 = vcombine.low %v946_v15, %v960_v37  ;;  %v1234_v31 = vsel %vm4098_vm12, %v1229_v7, %v1233_v53  ;;  %v1179_v28 = vsel %vm4108_vm13, %v2716_v17, %v1178_v21  ;;  %v1336_v15 = vld [vmem:[#allocation2 + $0x28] sm:$0xe]  ;;  %v1252_v55 = vrot.slane %v1250_v39, 4  ;;  %v4302_v7 = vld [vmem:[#allocation2 + $0x1c] sm:$0x1] }
 0x230   : > { %v1248_v40 = vsel %vm4098_vm12, %v1243_v11, %v1247_v8  ;;  %v1264_v57 = vshrl.u32 %v4286_v22, 16  ;;  %v1175_v8 = vsel %vm4108_vm13, %v2715_v58, %v1174_v24  ;;  %v1255_v37 = vrot.slane %v1253_v41, 5  ;;  %v4308_v21 = vld [vmem:[#allocation2 + $0x24] sm:$0x1]  ;;  %v4311_v58 = vld [vmem:[#allocation2 + $0x30] sm:$0xf] }
 0x231   : > { %1427 = vrot.lane.b32.xlu1 %v2738_v27, %s3614_s16  ;;  %v2759_v53 = vcombine.low %v1234_v31, %v1248_v40  ;;  %v1267_v11 = vshll.u32 %v4286_v22, 16  ;;  %v1273_v17 = vshll.u32 %v4291_v34, 16  ;;  %v2751_v27 = vcombine.low %v1175_v8, %v1179_v28 }
 0x232   : > { %v1266_v31 = vrot.slane %v1264_v57, 4  ;;  %v2725_v39 = vrot.slane %v1335_v25, 9  ;;  %v1367_v40 = vrot.slane %v1215_v9, 5  ;;  %v1256_v60 = vor.u32 %v1255_v37, %v1252_v55  ;;  %v4321_v55 = vld [vmem:[#allocation2 + $0x38] sm:$0xf] }
 0x233   : > { %1533 = vrot.lane.b32.xlu0 %v2759_v53, %s3614_s16  ;;  %v1261_v5 = vrot.slane %v1259_v46, 5  ;;  %v1269_v32 = vrot.slane %v1267_v11, 5  ;;  %v2726_v14 = vrot.slane %v1336_v15, 9  ;;  %v1275_v24 = vrot.slane %v1273_v17, 5  ;;  %v4324_v37 = vld [vmem:[#allocation2 + $0x34] sm:$0x1] }
 0x234   : > { %v4316_v41 = vsel %vm4108_vm13, %v2725_v39, %v1367_v40  ;;  %v1371_v53 = vrot.slane %v4291_v34, 5  ;;  %v2717_v28 = vrot.slane %v1150_v0, 9  ;;  %v1257_v57 = vrot.slane %v1256_v60, 4  ;;  %4754 = vst [vmem:[#allocation31_spill] sm:$0xff] %v4324_v37 }
 0x235   : > { %1493 = vrot.lane.b32.xlu1 %v2751_v27, %s3614_s16  ;;  %4753 = vst [vmem:[#allocation30_spill] sm:$0xff] %v4316_v41  ;;  %v1270_v25 = vor.u32 %v1269_v32, %v1266_v31  ;;  %v1182_v46 = vrot.slane %v4302_v7, 5  ;;  %v2718_v15 = vrot.slane %v1151_v3, 9  ;;  %v1186_v8 = vrot.slane %v4308_v21, 5  ;;  %v4334_v3 = vld [vmem:[#allocation2 + $0x3c] sm:$0x1] }
 0x236   : > { %v1278_v11 = vshrl.u32 %v4311_v58, 16  ;;  %v1281_v17 = vshll.u32 %v4311_v58, 16  ;;  %v1287_v32 = vshll.u32 %v4324_v37, 16  ;;  %4755 = vst [vmem:[#allocation32_spill] sm:$0xff] %v4334_v3  ;;  %v1292_v40 = vshrl.u32 %v4321_v55, 16 }
 0x237   : > { %v1271_v27 = vrot.slane %v1270_v25, 4  ;;  %v1183_v60 = vsel %vm4108_vm13, %v2717_v28, %v1182_v46  ;;  %v1187_v34 = vsel %vm4108_vm13, %v2718_v15, %v1186_v8  ;;  %v1262_v9 = vsel %vm4098_vm12, %v1257_v57, %v1261_v5  ;;  %v4342_v46 = vld [vmem:[#allocation2 + $0x2c] sm:$0x1]  ;;  %v962_v41 = vld [vmem:[#allocation2 + $0x8] sm:$0xe] }
 0x238   : > { %v1280_v31 = vrot.slane %v1278_v11, 4  ;;  %v1283_v39 = vrot.slane %v1281_v17, 5  ;;  %v2752_v0 = vcombine.low %v1183_v60, %v1187_v34  ;;  %v1295_v28 = vshll.u32 %v4321_v55, 16  ;;  %v4345_v17 = vld [vmem:[#allocation2 + $0x34] sm:$0x1] }
 0x239   : > { %v1276_v25 = vsel %vm4098_vm12, %v1271_v27, %v1275_v24  ;;  %v1294_v8 = vrot.slane %v1292_v40, 4  ;;  %v1301_v11 = vshll.u32 %v4334_v3, 16  ;;  %v4349_v5 = vsel %vm4108_vm13, %v2726_v14, %v1371_v53  ;;  %v4353_v60 = vld [vmem:[#allocation2 + $0x40] sm:$0xf]  ;;  %v4357_v40 = vld [vmem:[#allocation2 + $0x44] sm:$0x1] }
 0x23a   : > { %v2760_v29 = vcombine.low %v1262_v9, %v1276_v25  ;;  %v1284_v15 = vor.u32 %v1283_v39, %v1280_v31  ;;  %4756 = vst [vmem:[#allocation33_spill] sm:$0xff] %v4349_v5  ;;  %1495 = vrot.lane.b32.xlu1 %v2752_v0, %s3614_s16  ;;  %v1289_v24 = vrot.slane %v1287_v32, 5  ;;  %v1297_v57 = vrot.slane %v1295_v28, 5  ;;  %4757 = vst [vmem:[#allocation34_spill] sm:$0xff] %v4353_v60  ;;  %v4361_v32 = vld [vmem:[#allocation2 + $0x3c] sm:$0x1] }
 0x23b   : > { %v1303_v34 = vrot.slane %v1301_v11, 5  ;;  %v2719_v39 = vrot.slane %v1152_v38, 9  ;;  %v1190_v14 = vrot.slane %v4342_v46, 5  ;;  %v2720_v53 = vrot.slane %v1153_v2, 9  ;;  %v1154_v11 = vld [vmem:[#allocation2 + $0x38] sm:$0xe] }
 0x23c   : > { %1535 = vrot.lane.b32.xlu0 %v2760_v29, %s3614_s16  ;;  %v1285_v9 = vrot.slane %v1284_v15, 4  ;;  %v1298_v25 = vor.u32 %v1297_v57, %v1294_v8  ;;  %v1194_v0 = vrot.slane %v4345_v17, 5  ;;  %v1306_v27 = vshrl.u32 %v4353_v60, 16  ;;  %v4373_v31 = vld [vmem:[#allocation2 + $0x44] sm:$0x1] }
 0x23d   : > { %v1309_v29 = vshll.u32 %v4353_v60, 16  ;;  %v1315_v15 = vshll.u32 %v4357_v40, 16  ;;  %v1191_v2 = vsel %vm4108_vm13, %v2719_v39, %v1190_v14  ;;  %v1155_v28 = vld [vmem:[#allocation2 + $0x40] sm:$0xe]  ;;  %v963_v39 = vld [vmem:[#allocation2 + $0x10] sm:$0xe] }
 0x23e   : > { %v1290_v38 = vsel %vm4098_vm12, %v1285_v9, %v1289_v24  ;;  %v1299_v8 = vrot.slane %v1298_v25, 4  ;;  %v1195_v57 = vsel %vm4108_vm13, %v2720_v53, %v1194_v0  ;;  %v1308_v60 = vrot.slane %v1306_v27, 4  ;;  %v964_v3 = vld [vmem:[#allocation2 + $0x18] sm:$0xe] }
 0x23f   : > { %v2753_v37 = vcombine.low %v1191_v2, %v1195_v57  ;;  %v1311_v18 = vrot.slane %v1309_v29, 5  ;;  %v1317_v24 = vrot.slane %v1315_v15, 5  ;;  %v1130_v9 = vshll.u32 %v4361_v32, 16 }
 0x240   : > { %v1304_v5 = vsel %vm4098_vm12, %v1299_v8, %v1303_v34  ;;  %v2721_v25 = vrot.slane %v1154_v11, 9  ;;  %v1198_v0 = vrot.slane %v4361_v32, 5  ;;  %v2722_v50 = vrot.slane %v1155_v28, 9 }
 0x241   : > { %v2761_v14 = vcombine.low %v1290_v38, %v1304_v5  ;;  %1497 = vrot.lane.b32.xlu1 %v2753_v37, %s3614_s16  ;;  %v1312_v53 = vor.u32 %v1311_v18, %v1308_v60  ;;  %v1144_v27 = vshll.u32 %v4373_v31, 16  ;;  %v1202_v29 = vrot.slane %v4373_v31, 5  ;;  %v965_v37 = vld [vmem:[#allocation2 + $0x20] sm:$0xe]  ;;  %v966_v38 = vld [vmem:[#allocation2 + $0x28] sm:$0xe] }
 0x242   : > { %v2708_v2 = vrot.slane %v962_v41, 9  ;;  %v994_v34 = vrot.slane %v4162_v51, 5  ;;  %v1199_v5 = vsel %vm4108_vm13, %v2721_v25, %v1198_v0  ;;  %v2709_v11 = vrot.slane %v963_v39, 9 }
 0x243   : > { %1537 = vrot.lane.b32.xlu0 %v2761_v14, %s3614_s16  ;;  %v1313_v15 = vrot.slane %v1312_v53, 4  ;;  %v998_v18 = vrot.slane %v4184_v30, 5  ;;  %v1203_v60 = vsel %vm4108_vm13, %v2722_v50, %v1202_v29  ;;  %v2710_v41 = vrot.slane %v964_v3, 9  ;;  %v967_v50 = vld [vmem:[#allocation2 + $0x30] sm:$0xe] }
 0x244   : > { %v4392_v28 = vsel %vm4108_vm13, %v2708_v2, %v994_v34  ;;  %v1002_v51 = vrot.slane %v4186_v1, 5  ;;  %v2754_v57 = vcombine.low %v1199_v5, %v1203_v60  ;;  %v4758_v3 = vsel %vm4098_vm12, %v4135_v48, %v4140_v62  ;;  %v968_v53 = vld [vmem:[#allocation2 + $0x38] sm:$0xe] }
 0x245   : > { %v1318_v8 = vsel %vm4098_vm12, %v1313_v15, %v1317_v24  ;;  %v2739_v25 = vcombine.low %v4130_v61, %v4392_v28  ;;  %v4401_v30 = vsel %vm4108_vm13, %v2709_v11, %v998_v18  ;;  %v2732_v24 = vcombine.low %v4165_v44, %v4168_v13  ;;  %v3208_v61 = vld [vmem:[#allocation9 + $0x88] sm:$0xff]   ;;  %v3209_v28 = vld [vmem:[#allocation9 + $0xd0] sm:$0xff]  }
 0x246   : > { %v2762_v39 = vcombine.low %v1318_v8, %v4758_v3  ;;  %v4410_v1 = vsel %vm4108_vm13, %v2710_v41, %v1002_v51  ;;  %v2711_v14 = vrot.slane %v965_v37, 9  ;;  %1499 = vrot.lane.b32.xlu1 %v2754_v57, %s3614_s16  ;;  %v1006_v29 = vrot.slane %v4204_v43, 5 }
 0x247   : > { %v2740_v0 = vcombine.low %v4401_v30, %v4410_v1  ;;  %v2712_v2 = vrot.slane %v966_v38, 9  ;;  %v1010_v48 = vrot.slane %v4225_v6, 5  ;;  %v4759_v62 = vshll.u32 %v4269_v33, 16  ;;  %v3213_v1 = vld [vmem:[#allocation9 + $0x98] sm:$0xff]  }
 0x248   : > { %1539 = vrot.lane.b32.xlu0 %v2762_v39, %s3614_s16  ;;  %v4760_v15 = vshll.u32 %v4276_v54, 16  ;;  %v2733_v11 = vcombine.low %v4200_v35, %v4211_v52  ;;  %v2713_v18 = vrot.slane %v967_v50, 9  ;;  %v4428_v37 = vsel %vm4108_vm13, %v2711_v14, %v1006_v29 }
 0x249   : > { %v1048_v34 = vrot.slane %v4759_v62, 5  ;;  %v4432_v43 = vsel %vm4108_vm13, %v2712_v2, %v1010_v48  ;;  %v1014_v6 = vrot.slane %v4234_v45, 5  ;;  %v2714_v60 = vrot.slane %v968_v53, 9 }
 0x24a   : > { %v1062_v5 = vrot.slane %v4760_v15, 5  ;;  %v2741_v33 = vcombine.low %v4428_v37, %v4432_v43  ;;  %v1018_v51 = vrot.slane %v4253_v59, 5  ;;  %v2734_v45 = vcombine.low %v4229_v20, %v4232_v36  ;;  %v1334_v15 = vld [vmem:[#allocation2 + $0x18] sm:$0xe]  ;;  %v3219_v37 = vld [vmem:[#allocation9 + $0xf0] sm:$0xff]  }
 0x24b   : > { %v1049_v41 = vsel %vm4098_vm12, %v4219_v19, %v1048_v34  ;;  %v4448_v8 = vsel %vm4108_vm13, %v2713_v18, %v1014_v6  ;;  %v2755_v57 = vcombine.low %v4247_v56, %v4255_v63  ;;  %v2756_v19 = vcombine.low %v4280_v4, %v4286_v22  ;;  %v1333_v34 = vld [vmem:[#allocation2 + $0x10] sm:$0xe]  ;;  %v1338_v6 = vld [vmem:[#allocation2 + $0x38] sm:$0xe]  ;;  %v3229_v63 = vld [vmem:[#allocation9 + $0x110] sm:$0xff]  }
 0x24c   : > { %v1063_v54 = vsel %vm4098_vm12, %v4196_v10, %v1062_v5  ;;  %v4456_v10 = vsel %vm4108_vm13, %v2714_v60, %v1018_v51  ;;  %v4761_v59 = vshll.u32 %v4302_v7, 16  ;;  %v4762_v3 = vshll.u32 %v4308_v21, 16  ;;  %v4765_v51 = vld [vmem:[#allocation29_spill] sm:$0xff] }
 0x24d   : > { %v4444_v38 = vcombine.low %v1049_v41, %v1063_v54  ;;  %v2742_v14 = vcombine.low %v4448_v8, %v4456_v10  ;;  %v2757_v53 = vcombine.low %v4311_v58, %v4321_v55  ;;  %v4763_v29 = vshll.u32 %v4342_v46, 16  ;;  %v1337_v46 = vld [vmem:[#allocation2 + $0x30] sm:$0xe]  ;;  %v1339_v54 = vld [vmem:[#allocation2 + $0x40] sm:$0xe] }
 0x24e   : > { %v1076_v50 = vrot.slane %v4761_v59, 5  ;;  %v1090_v39 = vrot.slane %v4762_v3, 5  ;;  %v4764_v48 = vshll.u32 %v4345_v17, 16  ;;  %v1383_v7 = vrot.slane %v4357_v40, 5  ;;  %v4766_v59 = vld [vmem:[#allocation33_spill] sm:$0xff] }
 0x24f   : > { %v1104_v2 = vrot.slane %v4763_v29, 5  ;;  %v1132_v18 = vrot.slane %v1130_v9, 5  ;;  %v2723_v9 = vrot.slane %v1333_v34, 9  ;;  %v2724_v41 = vrot.slane %v1334_v15, 9  ;;  %v4772_v15 = vld [vmem:[#allocation31_spill] sm:$0xff]  ;;  %v3225_v8 = vld [vmem:[#allocation9 + $0x100] sm:$0xff]  }
 0x250   : > { %v1118_v62 = vrot.slane %v4764_v48, 5  ;;  %v1077_v21 = vsel %vm4098_vm12, %v4192_v26, %v1076_v50  ;;  %v1091_v5 = vsel %vm4098_vm12, %v4190_v49, %v1090_v39  ;;  %v1146_v26 = vrot.slane %v1144_v27, 5  ;;  %v4767_v50 = vld [vmem:[#allocation30_spill] sm:$0xff]  ;;  %v4768_v27 = vld [vmem:[#allocation27_spill] sm:$0xff]  ;;  %v3232_v55 = vld [vmem:[#allocation12] ss:$8 sps:$4 sm:$0xff]  }
 0x251   : > { %v4481_v60 = vcombine.low %v1077_v21, %v1091_v5  ;;  %v1105_v17 = vsel %vm4098_vm12, %v4237_v47, %v1104_v2  ;;  %v1133_v32 = vsel %vm4098_vm12, %v4265_v12, %v1132_v18  ;;  %v2764_v3 = vcombine.low %v4767_v50, %v4766_v59  ;;  %v4770_v12 = vld [vmem:[#allocation28_spill] sm:$0xff]  ;;  %v3240_v50 = vld [vmem:[#allocation12 + $0x24] ss:$8 sps:$4 sm:$0xff]  }
 0x252   : > { %v1119_v40 = vsel %vm4098_vm12, %v4251_v42, %v1118_v62  ;;  %v1147_v47 = vsel %vm4098_vm12, %v4765_v51, %v1146_v26  ;;  %v2727_v42 = vrot.slane %v1337_v46, 9  ;;  %v2728_v39 = vrot.slane %v1338_v6, 9  ;;  %v4774_v18 = vld [vmem:[#allocation32_spill] sm:$0xff]  ;;  %v4776_v26 = vld [vmem:[#allocation26_spill] sm:$0xff] }
 0x253   : > { %v4491_v49 = vcombine.low %v1105_v17, %v1119_v40  ;;  %v4501_v31 = vcombine.low %v1133_v32, %v1147_v47  ;;  %v4769_v29 = vrot.slane %v4768_v27, 5  ;;  %v4771_v48 = vrot.slane %v4770_v12, 5  ;;  %v3256_v51 = vld [vmem:[#allocation2] sm:$0xf]  ;;  %v4777_v47 = vld [vmem:[#allocation25_spill] sm:$0xff] }
 0x254   : > { %v2729_v16 = vrot.slane %v1339_v54, 9  ;;  %v4773_v21 = vrot.slane %v4772_v15, 5  ;;  %v4775_v46 = vrot.slane %v4774_v18, 5  ;;  %v3238_v59 = vld [vmem:[#allocation12 + $0x20] ss:$8 sps:$4 sm:$0xff]  }
 0x255   : > { %v4507_v2 = vsel %vm4108_vm13, %v2723_v9, %v4769_v29  ;;  %v4513_v62 = vsel %vm4108_vm13, %v2724_v41, %v4771_v48  ;;  %v3207_v29 = vld [vmem:[#allocation9 + $0xc8] sm:$0xff]   ;;  %v3211_v48 = vld [vmem:[#allocation9 + $0x90] sm:$0xff]  }
 0x256   : > { %v2763_v34 = vcombine.low %v4507_v2, %v4513_v62  ;;  %v4521_v5 = vsel %vm4108_vm13, %v2727_v42, %v4773_v21  ;;  %v4527_v6 = vsel %vm4108_vm13, %v2728_v39, %v4775_v46  ;;  %v4533_v40 = vsel %vm4108_vm13, %v2729_v16, %v1383_v7  ;;  %v3206_v39 = vld [vmem:[#allocation9 + $0x80] sm:$0xff]   ;;  %v3212_v16 = vld [vmem:[#allocation9 + $0xd8] sm:$0xff]   ;;  %v3246_v62 = vld [vmem:[#allocation15 + $0x4] ss:$8 sps:$4 sm:$0xff]  }
 0x257   : > { %v2765_v17 = vcombine.low %v4521_v5, %v4527_v6  ;;  %v2766_v54 = vcombine.low %v4533_v40, %v4776_v26  ;;  %v2731_v42 = vcombine.low %v3256_v51, %v4777_v47  ;;  %v3216_v46 = vld [vmem:[#allocation9 + $0xa0] sm:$0xff]  }
 0x258   : > { %v3243_v2 = vld [vmem:[#allocation12 + $0x34] ss:$8 sps:$4 sm:$0xff]  }
 0x27d   : > { %v1462_v32 = vpop.permute.xlu0 %1461  ;;  %v1464_v41 = vpop.permute.xlu1 %1463 }
 0x27e   : > { %v1571_v9 = vsel %vm590_vm4, %v2739_v25, %v1462_v32  ;;  %v1575_v7 = vsel %vm590_vm4, %v2740_v0, %v1464_v41  ;;  %v3214_v0 = vld [vmem:[#allocation9 + $0xe0] sm:$0xff]   ;;  %v3217_v32 = vld [vmem:[#allocation9 + $0xe8] sm:$0xff]   ;;  %v3223_v41 = vld [vmem:[#allocation9 + $0xf8] sm:$0xff]  }
 0x27f   : > { %1956 = vmatprep.mubr.bf16.mxu1 %v1571_v9 }
 0x28d   : > { %v1422_v27 = vpop.permute.xlu0 %1421 }
 0x28e   : > { %v1555_v23 = vsel %vm590_vm4, %v2731_v42, %v1422_v27  ;;  %v4778_v42 = vld [vmem:[#allocation34_spill] sm:$0xff] }
 0x28f   : > { %1957 = vmatmul.mubr.bf16.vlgmr.msra.gmra.mrb[0].mxu1 %v1555_v23 }
 0x290   : > { %2914 = vmatpush3.bf16.msra.mxu1 %v3206_v39  ;;  %1964 = vmatprep.mubr.bf16.mxu1 %v1575_v7 }
 0x291   : > { %2915 = vmatprep.subr.bf16.mxu1 %v3207_v29  ;;  %v1466_v12 = vpop.permute.xlu0 %1465 }
 0x292   : > { %v1424_v25 = vpop.permute.xlu1 %1423  ;;  %v1579_v30 = vsel %vm590_vm4, %v2741_v33, %v1466_v12  ;;  %v3221_v33 = vld [vmem:[#allocation9 + $0xb0] sm:$0xff]  }
 0x293   : > { %v1559_v15 = vsel %vm590_vm4, %v2732_v24, %v1424_v25  ;;  %v3218_v24 = vld [vmem:[#allocation9 + $0xa8] sm:$0xff]  }
 0x294   : > { %2916 = vmatpush3.bf16.msra.mxu1 %v3208_v61 }
 0x295   : > { %2917 = vmatprep.subr.bf16.mxu1 %v3209_v28  ;;  %v1468_v18 = vpop.permute.xlu0 %1467 }
 0x296   : > { %v1583_v13 = vsel %vm590_vm4, %v2742_v14, %v1468_v18  ;;  %v3227_v14 = vld [vmem:[#allocation9 + $0x108] sm:$0xff]  }
 0x297   : > { %1965 = vmatmul.mubr.bf16.gmra.mrb[4].mxu1 %v1559_v15 }
 0x298   : > { %2918 = vmatpush3.bf16.msra.mxu1 %v3211_v48  ;;  %1972 = vmatprep.mubr.bf16.mxu1 %v1579_v30 }
 0x299   : > { %2919 = vmatprep.subr.bf16.mxu1 %v3212_v16  ;;  %v1426_v21 = vpop.permute.xlu1 %1425 }
 0x29a   : > { %v1563_v44 = vsel %vm590_vm4, %v2733_v11, %v1426_v21  ;;  %v3224_v11 = vld [vmem:[#allocation9 + $0xb8] sm:$0xff]  }
 0x29c   : > { %2920 = vmatpush3.bf16.msra.mxu1 %v3213_v1 }
 0x29d   : > { %2921 = vmatprep.subr.bf16.mxu1 %v3214_v0 }
 0x29f   : > { %1973 = vmatmul.mubr.bf16.gmra.mrb[8].mxu1 %v1563_v44 }
 0x2a0   : > { %2922 = vmatpush3.bf16.msra.mxu1 %v3216_v46  ;;  %1980 = vmatprep.mubr.bf16.mxu1 %v1583_v13  ;;  %v2767_v13 = vld [vmem:[#allocation11] ss:$0 sm:$0xff] }
 0x2a1   : > { %2923 = vmatprep.subr.bf16.mxu1 %v3217_v32 }
 0x2a3   : > { %v1428_v43 = vpop.permute.xlu1 %1427 }
 0x2a4   : > { %2924 = vmatpush3.bf16.msra.mxu1 %v3218_v24  ;;  %v1567_v35 = vsel %vm590_vm4, %v2734_v45, %v1428_v43 }
 0x2a5   : > { %v1534_v9 = vpop.permute.xlu0 %1533  ;;  %2925 = vmatprep.subr.bf16.mxu1 %v3219_v37 }
 0x2a6   : > { %v1603_v52 = vsel %vm590_vm4, %v2755_v57, %v1534_v9  ;;  %v3231_v57 = vld [vmem:[#allocation9 + $0x118] sm:$0xff]  }
 0x2a7   : > { %1981 = vmatmul.mubr.bf16.gmra.mrb[12].mxu1 %v1567_v35  ;;  %v1494_v10 = vpop.permute.xlu1 %1493 }
 0x2a8   : > { %2926 = vmatpush3.bf16.msra.mxu1 %v3221_v33  ;;  %2021 = vmatprep.mubr.bf16.mxu1 %v1603_v52  ;;  %v1587_v20 = vsel %vm590_vm4, %v4444_v38, %v1494_v10 }
 0x2a9   : > { %2927 = vmatprep.subr.bf16.mxu1 %v3223_v41 }
 0x2ac   : > { %2928 = vmatpush3.bf16.msra.mxu1 %v3224_v11  ;;  %v1496_v45 = vpop.permute.xlu1 %1495 }
 0x2ad   : > { %2977 = vmatprep.subr.bf16.mxu1 %v3225_v8  ;;  %v1591_v51 = vsel %vm590_vm4, %v4481_v60, %v1496_v45 }
 0x2ae   : > { %v1536_v36 = vpop.permute.xlu0 %1535 }
 0x2af   : > { %2022 = vmatmul.mubr.bf16.vlgmr.msra.gmra.mrb[16].mxu1 %v1587_v20  ;;  %v1607_v56 = vsel %vm590_vm4, %v2756_v19, %v1536_v36  ;;  %v3257_v19 = vld [vmem:[#allocation2 + $0x48] sm:$0xf] }
 0x2b0   : > { %2978 = vmatpush3.bf16.msra.mxu1 %v3225_v8  ;;  %2029 = vmatprep.mubr.bf16.mxu1 %v1607_v56  ;;  %v2758_v39 = vcombine.low %v4778_v42, %v3257_v19 }
 0x2b1   : > { %2979 = vmatprep.subr.bf16.mxu1 %v3227_v14 }
 0x2b3   : > { %v1498_v4 = vpop.permute.xlu1 %1497 }
 0x2b4   : > { %2980 = vmatpush3.bf16.msra.mxu1 %v3227_v14  ;;  %v1595_v27 = vsel %vm590_vm4, %v4491_v49, %v1498_v4  ;;  %v3237_v49 = vld [vmem:[#allocation12 + $0x14] ss:$8 sps:$4 sm:$0xff]  }
 0x2b5   : > { %2981 = vmatprep.subr.bf16.mxu1 %v3229_v63  ;;  %v1538_v47 = vpop.permute.xlu0 %1537 }
 0x2b6   : > { %v1611_v38 = vsel %vm590_vm4, %v2757_v53, %v1538_v47  ;;  %v3234_v53 = vld [vmem:[#allocation12 + $0x4] ss:$8 sps:$4 sm:$0xff]  }
 0x2b7   : > { %2030 = vmatmul.mubr.bf16.gmra.mrb[20].mxu1 %v1591_v51  ;;  %2203 = vmatprep.subr.bf16.mxu0 %v3234_v53 }
 0x2b8   : > { %2982 = vmatpush3.bf16.msra.mxu1 %v3229_v63  ;;  %2037 = vmatprep.mubr.bf16.mxu1 %v1611_v38  ;;  %v1500_v29 = vpop.permute.xlu1 %1499 }
 0x2b9   : > { %2983 = vmatprep.subr.bf16.mxu1 %v3231_v57  ;;  %v1599_v58 = vsel %vm590_vm4, %v4501_v31, %v1500_v29  ;;  %2204 = vmatpush1.bf16.msra.mxu0 %v3232_v55  ;;  %v3235_v31 = vld [vmem:[#allocation12 + $0x10] ss:$8 sps:$4 sm:$0xff]  }
 0x2ba   : > { %v1540_v22 = vpop.permute.xlu0 %1539  ;;  %2205 = vmatprep.subr.bf16.mxu0 %v3237_v49 }
 0x2bb   : > { %v1615_v60 = vsel %vm590_vm4, %v2758_v39, %v1540_v22 }
 0x2bc   : > { %2984 = vmatpush3.bf16.msra.mxu1 %v3231_v57 }
 0x2bd   : > { %2206 = vmatpush1.bf16.msra.mxu0 %v3235_v31 }
 0x2be   : > { %2207 = vmatprep.subr.bf16.mxu0 %v3240_v50 }
 0x2bf   : > { %2038 = vmatmul.mubr.bf16.gmra.mrb[24].mxu1 %v1595_v27 }
 0x2c0   : > { %2045 = vmatprep.mubr.bf16.mxu1 %v1615_v60 }
 0x2c1   : > { %2208 = vmatpush1.bf16.msra.mxu0 %v3238_v59 }
 0x2c2   : > { %2209 = vmatprep.subr.bf16.mxu0 %v3243_v2 }
 0x2c7   : > { %2046 = vmatmul.mubr.bf16.gmra.mrb[28].mxu1 %v1599_v58 }
 0x2c8   : > { %2985 = vmatprep.mubr.msk.bf16.mxu1 %vm590_vm4, %v2763_v34 }
 0x2cf   : > { %2986 = vmatmul.mubr.msk.bf16.vlgmr.msra.gmra.mrb[32].mxu1 %vm590_vm4, %v2764_v3  ;;  %v3241_v3 = vld [vmem:[#allocation12 + $0x30] ss:$8 sps:$4 sm:$0xff]  }
 0x2d0   : > { %2989 = vmatprep.mubr.msk.bf16.mxu1 %vm590_vm4, %v2765_v17  ;;  %2210 = vmatpush1.bf16.msra.mxu0 %v3241_v3 }
 0x2d1   : > { %2336 = vmatprep.subr.bf16.mxu0 %v3246_v62 }
 0x2d7   : > { %2990 = vmatmul.mubr.msk.bf16.gmra.mrb[36].mxu1 %vm590_vm4, %v2766_v54 }
 0x362   : > { %v2889_v34 = vpop.f32.mrb[0].mxu1 }
 0x363   : > { %v2890_v5 = vpop.f32.mrb[1].mxu1 }
 0x364   : > { %v2891_v6 = vadd.f32 %v2890_v5, %v2889_v34  ;;  %v2892_v17 = vpop.f32.mrb[2].mxu1 }
 0x365   : > { %v2893_v40 = vpop.f32.mrb[3].mxu1 }
 0x366   : > { %v2894_v26 = vadd.f32 %v2893_v40, %v2892_v17  ;;  %v1959_v43 = vadd.f32 %v2891_v6, %v2767_v13 }
 0x368   : > { %v1962_v35 = vadd.f32 %v2894_v26, %v2767_v13 }
 0x36a   : > { %v2895_v54 = vpop.f32.mrb[4].mxu1 }
 0x36b   : > { %v2896_v23 = vpop.f32.mrb[5].mxu1 }
 0x36c   : > { %v2897_v7 = vadd.f32 %v2896_v23, %v2895_v54  ;;  %v2898_v61 = vpop.f32.mrb[6].mxu1 }
 0x36d   : > { %v2899_v28 = vpop.f32.mrb[7].mxu1 }
 0x36e   : > { %v2900_v25 = vadd.f32 %v2899_v28, %v2898_v61  ;;  %v1967_v20 = vadd.f32 %v2897_v7, %v2767_v13 }
 0x370   : > { %v1970_v45 = vadd.f32 %v2900_v25, %v2767_v13 }
 0x372   : > { %v2901_v12 = vpop.f32.mrb[8].mxu1 }
 0x373   : > { %v2902_v48 = vpop.f32.mrb[9].mxu1 }
 0x374   : > { %v2903_v16 = vadd.f32 %v2902_v48, %v2901_v12  ;;  %v2904_v15 = vpop.f32.mrb[10].mxu1 }
 0x375   : > { %v2905_v30 = vpop.f32.mrb[11].mxu1 }
 0x376   : > { %v2906_v1 = vadd.f32 %v2905_v30, %v2904_v15  ;;  %v1975_v22 = vadd.f32 %v2903_v16, %v2767_v13  ;;  %v3244_v16 = vld [vmem:[#allocation15] ss:$8 sps:$4 sm:$0xff]  }
 0x378   : > { %v1978_v27 = vadd.f32 %v2906_v1, %v2767_v13  ;;  %v3249_v1 = vld [vmem:[#allocation15 + $0x14] ss:$8 sps:$4 sm:$0xff]  }
 0x37a   : > { %v2907_v0 = vpop.f32.mrb[12].mxu1 }
 0x37b   : > { %v2908_v21 = vpop.f32.mrb[13].mxu1 }
 0x37c   : > { %v2909_v18 = vadd.f32 %v2908_v21, %v2907_v0  ;;  %v2910_v46 = vpop.f32.mrb[14].mxu1 }
 0x37d   : > { %v2911_v32 = vpop.f32.mrb[15].mxu1 }
 0x37e   : > { %v2912_v44 = vadd.f32 %v2911_v32, %v2910_v46  ;;  %v1983_v49 = vadd.f32 %v2909_v18, %v2767_v13 }
 0x380   : > { %v1986_v3 = vadd.f32 %v2912_v44, %v2767_v13  ;;  %v4779_v13 = vmov 0  }
 0x382   : > { %v2929_v24 = vpop.f32.mrb[16].mxu1 }
 0x383   : > { %v2930_v37 = vpop.f32.mrb[17].mxu1 }
 0x384   : > { %v2931_v33 = vadd.f32 %v2930_v37, %v2929_v24  ;;  %v2932_v9 = vpop.f32.mrb[18].mxu1  ;;  %v3247_v24 = vld [vmem:[#allocation15 + $0x10] ss:$8 sps:$4 sm:$0xff]  }
 0x385   : > { %v2933_v41 = vpop.f32.mrb[19].mxu1 }
 0x386   : > { %v2934_v52 = vadd.f32 %v2933_v41, %v2932_v9  ;;  %v2024_v11 = vadd.f32 %v2931_v33, %v1959_v43  ;;  %v3252_v43 = vld [vmem:[#allocation15 + $0x24] ss:$8 sps:$4 sm:$0xff]  }
 0x388   : > { %v2027_v8 = vadd.f32 %v2934_v52, %v1962_v35 }
 0x38a   : > { %v2935_v10 = vpop.f32.mrb[20].mxu1 }
 0x38b   : > { %v2936_v14 = vpop.f32.mrb[21].mxu1 }
 0x38c   : > { %v2937_v36 = vadd.f32 %v2936_v14, %v2935_v10  ;;  %v2938_v56 = vpop.f32.mrb[22].mxu1  ;;  %v3255_v10 = vld [vmem:[#allocation15 + $0x34] ss:$8 sps:$4 sm:$0xff]   ;;  %v3253_v14 = vld [vmem:[#allocation15 + $0x30] ss:$8 sps:$4 sm:$0xff]  }
 0x38d   : > { %v2939_v63 = vpop.f32.mrb[23].mxu1 }
 0x38e   : > { %v2940_v57 = vadd.f32 %v2939_v63, %v2938_v56  ;;  %v2032_v51 = vadd.f32 %v2937_v36, %v1967_v20  ;;  %v3258_v20 = vld [vmem:[%s3972_s28] sm:$0xff]   ;;  %v3259_v36 = vld [vmem:[%s3972_s28 + $0x8] sm:$0xff]   ;;  %v3260_v56 = vld [vmem:[%s3972_s28 + $0x10] sm:$0xff]  }
 0x38f   : > { %v3261_v63 = vld [vmem:[%s3972_s28 + $0x18] sm:$0xff]  }
 0x390   : > { %v2035_v47 = vadd.f32 %v2940_v57, %v1970_v45  ;;  %v2141_v45 = vlaneseq }
 0x392   : > { %v2941_v38 = vpop.f32.mrb[24].mxu1  ;;  %v2142_v57 = vshrl.u32 %v2141_v45, 7 }
 0x393   : > { %v2942_v4 = vpop.f32.mrb[25].mxu1 }
 0x394   : > { %v2943_v19 = vadd.f32 %v2942_v4, %v2941_v38  ;;  %v2944_v42 = vpop.f32.mrb[26].mxu1  ;;  %v2284_v38 = vld [vmem:[#allocation17] sm:$0x3]  ;;  %v2147_v4 = vsub.s32 1, %v2142_v57 }
 0x395   : > { %v2945_v39 = vpop.f32.mrb[27].mxu1 }
 0x396   : > { %v2946_v60 = vadd.f32 %v2945_v39, %v2944_v42  ;;  %v2040_v29 = vadd.f32 %v2943_v19, %v1975_v22  ;;  %v2293_v39 = vrot.slane %v2284_v38, %v2147_v4 }
 0x398   : > { %v2043_v58 = vadd.f32 %v2946_v60, %v1978_v27 }
 0x39a   : > { %v2947_v55 = vpop.f32.mrb[28].mxu1 }
 0x39b   : > { %v2948_v53 = vpop.f32.mrb[29].mxu1 }
 0x39c   : > { %v2949_v31 = vadd.f32 %v2948_v53, %v2947_v55  ;;  %v2950_v59 = vpop.f32.mrb[30].mxu1 }
 0x39d   : > { %v2951_v50 = vpop.f32.mrb[31].mxu1 }
 0x39e   : > { %v2952_v2 = vadd.f32 %v2951_v50, %v2950_v59  ;;  %v2048_v62 = vadd.f32 %v2949_v31, %v1983_v49 }
 0x3a0   : > { %v2051_v34 = vadd.f32 %v2952_v2, %v1986_v3 }
 0x3a2   : > { %v2987_v5 = vpop.f32.mrb[32].mxu1 }
 0x3a3   : > { %v2097_v6 = vadd.f32 %v2987_v5, %v2032_v51  ;;  %v2088_v17 = vpop.f32.mrb[33].mxu1  ;;  %v2143_v51 = vsub.s32 0, %v2142_v57 }
 0x3a4   : > { %v2089_v40 = vadd.f32 %v2088_v17, %v2024_v11  ;;  %v2988_v26 = vpop.f32.mrb[34].mxu1  ;;  %v3250_v11 = vld [vmem:[#allocation15 + $0x20] ss:$8 sps:$4 sm:$0xff]  }
 0x3a5   : > { %v2100_v54 = vadd.f32 %v2988_v26, %v2035_v47  ;;  %v2091_v23 = vpop.f32.mrb[35].mxu1  ;;  %v2121_v61 = vmax.f32 %v2097_v6, 0.0  ;;  %v2139_v47 = vld [vmem:[#allocation14] sm:$0x3]  ;;  %v2289_v19 = vrot.slane %v2284_v38, %v2143_v51 }
 0x3a6   : > { %v2092_v7 = vadd.f32 %v2091_v23, %v2027_v8  ;;  %v2119_v25 = vmax.f32 %v2089_v40, 0.0  ;;  %v2144_v22 = vrot.slane %v2139_v47, %v2143_v51  ;;  %v2148_v42 = vrot.slane %v2139_v47, %v2147_v4 }
 0x3a7   : > { %v2122_v28 = vmax.f32 %v2100_v54, 0.0 }
 0x3a8   : > { %v2120_v12 = vmax.f32 %v2092_v7, 0.0  ;;  %v2993_v27 = vadd.f32 %v2289_v19, %v2144_v22  ;;  %v2995_v60 = vadd.f32 %v2293_v39, %v2148_v42 }
 0x3a9   : > { %v2128_v48 = vpack.c.bf16 %v2122_v28, %v2121_v61 }
 0x3aa   : > { %v2127_v15 = vpack.c.bf16 %v2120_v12, %v2119_v25  ;;  %v2991_v30 = vpop.f32.mrb[36].mxu1 }
 0x3ab   : > { %v2113_v0 = vadd.f32 %v2991_v30, %v2048_v62  ;;  %v2104_v21 = vpop.f32.mrb[37].mxu1 }
 0x3ac   : > { %v2105_v18 = vadd.f32 %v2104_v21, %v2040_v29  ;;  %v2992_v46 = vpop.f32.mrb[38].mxu1  ;;  %2816 = vmatmul.mubr.msk.bf16.vlgmr.msra.gmra.mrb[8].mxu0 %vm590_vm4, %v2127_v15 }
 0x3ad   : > { %v2116_v32 = vadd.f32 %v2992_v46, %v2051_v34  ;;  %2337 = vmatpush1.bf16.msra.mxu0 %v3244_v16  ;;  %v2107_v44 = vpop.f32.mrb[39].mxu1  ;;  %2245 = vmatprep.mubr.bf16.mxu0 %v4779_v13  ;;  %v2125_v33 = vmax.f32 %v2113_v0, 0.0 }
 0x3ae   : > { %v2108_v37 = vadd.f32 %v2107_v44, %v2043_v58  ;;  %2338 = vmatprep.subr.bf16.mxu0 %v3249_v1  ;;  %v2123_v41 = vmax.f32 %v2105_v18, 0.0 }
 0x3af   : > { %v2126_v9 = vmax.f32 %v2116_v32, 0.0 }
 0x3b0   : > { %v2124_v35 = vmax.f32 %v2108_v37, 0.0 }
 0x3b1   : > { %v2130_v52 = vpack.c.bf16 %v2126_v9, %v2125_v33  ;;  %2339 = vmatpush1.bf16.msra.mxu0 %v3247_v24 }
 0x3b2   : > { %v2129_v8 = vpack.c.bf16 %v2124_v35, %v2123_v41  ;;  %2340 = vmatprep.subr.bf16.mxu0 %v3252_v43 }
 0x3b4   : > { %2817 = vmatmul.mubr.msk.bf16.gmra.mrb[12].mxu0 %vm590_vm4, %v2128_v48 }
 0x3b5   : > { %2255 = vmatprep.mubr.bf16.mxu0 %v4779_v13  ;;  %2341 = vmatpush1.bf16.msra.mxu0 %v3250_v11 }
 0x3b6   : > { %2342 = vmatprep.subr.bf16.mxu0 %v3255_v10 }
 0x3b9   : > { %2343 = vmatpush1.bf16.msra.mxu0 %v3253_v14 }
 0x3bc   : > { %2818 = vmatmul.mubr.msk.bf16.gmra.mrb[16].mxu0 %vm590_vm4, %v2129_v8 }
 0x3bd   : > { %2265 = vmatprep.mubr.bf16.mxu0 %v4779_v13 }
 0x3c4   : > { %2819 = vmatmul.mubr.msk.bf16.gmra.mrb[20].mxu0 %vm590_vm4, %v2130_v52 }
 0x3c5   : > { %2368 = vmatprep.mubr.bf16.mxu0 %v4779_v13 }
 0x3cc   : > { %2828 = vmatmul.mubr.msk.bf16.vlgmr.msra.gmra.mrb[8].mxu0 %vm590_vm4, %v3258_v20 }
 0x3cd   : > { %2378 = vmatprep.mubr.bf16.mxu0 %v4779_v13 }
 0x3d4   : > { %2829 = vmatmul.mubr.msk.bf16.gmra.mrb[12].mxu0 %vm590_vm4, %v3259_v36 }
 0x3d5   : > { %2388 = vmatprep.mubr.bf16.mxu0 %v4779_v13 }
 0x3dc   : > { %2830 = vmatmul.mubr.msk.bf16.gmra.mrb[16].mxu0 %vm590_vm4, %v3260_v56 }
 0x3dd   : > { %2398 = vmatprep.mubr.bf16.mxu0 %v4779_v13 }
 0x3e4   : > { %2831 = vmatmul.mubr.msk.bf16.gmra.mrb[20].mxu0 %vm590_vm4, %v3261_v63 }
 0x49f   : > { %v2370_v29 = vpop.f32.mrb[8].mxu0 }
 0x4a0   : > { %v2994_v58 = vadd.f32 %v2993_v27, %v2370_v29  ;;  %v2372_v55 = vpop.f32.mrb[9].mxu0 }
 0x4a1   : > { %v2996_v53 = vadd.f32 %v2995_v60, %v2372_v55  ;;  %v2374_v49 = vpop.f32.mrb[10].mxu0 }
 0x4a2   : > { %v2425_v31 = vmax.f32 %v2994_v58, 0.0  ;;  %v2998_v59 = vadd.f32 %v2993_v27, %v2374_v49  ;;  %v2376_v50 = vpop.f32.mrb[11].mxu0 }
 0x4a3   : > { %v2426_v3 = vmax.f32 %v2996_v53, 0.0  ;;  %v3000_v2 = vadd.f32 %v2995_v60, %v2376_v50 }
 0x4a4   : > { %v2427_v62 = vmax.f32 %v2998_v59, 0.0 }
 0x4a5   : > { %v2855_v34 = vpack.c.bf16 %v2426_v3, %v2425_v31  ;;  %v2428_v5 = vmax.f32 %v3000_v2, 0.0 }
 0x4a7   : > { %2489 = vst [vmem:[%s4625_s1] sm:$0xff] %v2855_v34  ;;  %v2856_v6 = vpack.c.bf16 %v2428_v5, %v2427_v62  ;;  %v2380_v17 = vpop.f32.mrb[12].mxu0 }
 0x4a8   : > { %v3002_v40 = vadd.f32 %v2993_v27, %v2380_v17  ;;  %v2382_v26 = vpop.f32.mrb[13].mxu0 }
 0x4a9   : > { %2490 = vst [vmem:[%s4625_s1 + $0x8] sm:$0xff] %v2856_v6  ;;  %v3004_v54 = vadd.f32 %v2995_v60, %v2382_v26  ;;  %v2384_v23 = vpop.f32.mrb[14].mxu0 }
 0x4aa   : > { %v2429_v7 = vmax.f32 %v3002_v40, 0.0  ;;  %v3006_v61 = vadd.f32 %v2993_v27, %v2384_v23  ;;  %v2386_v28 = vpop.f32.mrb[15].mxu0 }
 0x4ab   : > { %v2430_v25 = vmax.f32 %v3004_v54, 0.0  ;;  %v3008_v12 = vadd.f32 %v2995_v60, %v2386_v28 }
 0x4ac   : > { %v2431_v48 = vmax.f32 %v3006_v61, 0.0 }
 0x4ad   : > { %v2857_v16 = vpack.c.bf16 %v2430_v25, %v2429_v7  ;;  %v2432_v15 = vmax.f32 %v3008_v12, 0.0 }
 0x4af   : > { %2491 = vst [vmem:[%s4625_s1 + $0x10] sm:$0xff] %v2857_v16  ;;  %v2858_v30 = vpack.c.bf16 %v2432_v15, %v2431_v48  ;;  %v2390_v1 = vpop.f32.mrb[16].mxu0 }
 0x4b0   : > { %v3010_v0 = vadd.f32 %v2993_v27, %v2390_v1  ;;  %v2392_v21 = vpop.f32.mrb[17].mxu0 }
 0x4b1   : > { %2492 = vst [vmem:[%s4625_s1 + $0x18] sm:$0xff] %v2858_v30  ;;  %v3012_v18 = vadd.f32 %v2995_v60, %v2392_v21  ;;  %v2394_v46 = vpop.f32.mrb[18].mxu0 }
 0x4b2   : > { %v2433_v32 = vmax.f32 %v3010_v0, 0.0  ;;  %v3014_v44 = vadd.f32 %v2993_v27, %v2394_v46  ;;  %v2396_v13 = vpop.f32.mrb[19].mxu0 }
 0x4b3   : > { %v2434_v24 = vmax.f32 %v3012_v18, 0.0  ;;  %v3016_v37 = vadd.f32 %v2995_v60, %v2396_v13 }
 0x4b4   : > { %v2435_v43 = vmax.f32 %v3014_v44, 0.0 }
 0x4b5   : > { %v2859_v33 = vpack.c.bf16 %v2434_v24, %v2433_v32  ;;  %v2436_v9 = vmax.f32 %v3016_v37, 0.0 }
 0x4b7   : > { %2493 = vst [vmem:[%s4625_s1 + $0x20] sm:$0xff] %v2859_v33  ;;  %v2860_v41 = vpack.c.bf16 %v2436_v9, %v2435_v43  ;;  %v2400_v35 = vpop.f32.mrb[20].mxu0 }
 0x4b8   : > { %v3018_v52 = vadd.f32 %v2993_v27, %v2400_v35  ;;  %v2402_v11 = vpop.f32.mrb[21].mxu0 }
 0x4b9   : > { %2494 = vst [vmem:[%s4625_s1 + $0x28] sm:$0xff] %v2860_v41  ;;  %v3020_v8 = vadd.f32 %v2995_v60, %v2402_v11  ;;  %v2404_v10 = vpop.f32.mrb[22].mxu0 }
 0x4ba   : > { %v2437_v14 = vmax.f32 %v3018_v52, 0.0  ;;  %v3022_v20 = vadd.f32 %v2993_v27, %v2404_v10  ;;  %v2406_v36 = vpop.f32.mrb[23].mxu0 }
 0x4bb   : > { %v2438_v56 = vmax.f32 %v3020_v8, 0.0  ;;  %v3024_v63 = vadd.f32 %v2995_v60, %v2406_v36 }
 0x4bc   : > { %v2439_v45 = vmax.f32 %v3022_v20, 0.0 }
 0x4bd   : > { %v2861_v57 = vpack.c.bf16 %v2438_v56, %v2437_v14  ;;  %v2440_v51 = vmax.f32 %v3024_v63, 0.0 }
 0x4bf   : > { %2495 = vst [vmem:[%s4625_s1 + $0x30] sm:$0xff] %v2861_v57  ;;  %v2862_v47 = vpack.c.bf16 %v2440_v51, %v2439_v45 }
 0x4c1   : > { %2496 = vst [vmem:[%s4625_s1 + $0x38] sm:$0xff] %v2862_v47 }
 0x4c2   : > { %3529 = shalt.err (!%p3526_p10)
}
 0x4c3   : > { %s3530_s28 = scalar_lea.hbm %s4640_s24, 1024  ;;  %s3534_s1 = scalar_lea.hbm %s4780_s20, 2048 }
 0x4c4   : > { %p3531_p11 = scmp.ne.s32.totalorder %s4640_s24, %s3530_s28  ;;  %p3535_p7 = scmp.lt.u32.totalorder %s4640_s24, %s4780_s20 }
 0x4c5   : > { %p3536_p6 = scmp.lt.u32.totalorder %s3534_s1, %s3530_s28  ;;  %p3538_p12 = scmp.lt.u32.totalorder %s3530_s28, %s4640_s24 }
 0x4c6   : > { %p3532_p0 = pnand %p3531_p11, %p4781_p13 }
 0x4c7   : > { %p3537_p9 = por %p3536_p6, %p3535_p7 }
 0x4c8   : > { %p3533_p5 = pneg %p3532_p0 }
 0x4c9   : > { %p3539_p1 = por %p3538_p12, %p3537_p9 }
 0x4cb   : > { %p3540_p3 = pnand %p3539_p1, %p3533_p5 }
 0x4cd   : > { %3543 = shalt.err (!%p3540_p3)
}
 0x4ce   : > { %s3616_s17 = smov 128   ;;  %s3617_s9 = smov 8  }
 0x4cf   : > { %3075 = dma.vmem_to_hbm [thread:$0]  (%p4781_p13), %s4635_s3, 1024, %s4640_s24, %s2498_s23, %s3616_s17, %s3616_s17, %s3617_s9  }
 0x4d0 PF: > { %s2527_s15 = sand.u32 1, %s3586_s30   ;;  %p4782_p2 = scmp.ne.s32.totalorder %s4725_s14, 0 }
 0x4d1   : > { %p4783_p8 = scmp.ge.s32.totalorder %s3598_s12, 2  ;;  %s2528_s25 = scalar_lea.sflag [#allocation5], %s2527_s15 }
 0x4d3   : > { %p3107_p4 = pnand %p4783_p8, %p4782_p2 }
 0x4d5   : > { %3581 = dma.done.wait (!%p3107_p4), %s2528_s25, 1024  }
 0x4d6   : > { %3583 = vsyncadd (!%p3107_p4), %s2528_s25, 4294966272  ;;  %p26_p10 = scmp.ge.s32.totalorder %s3886_s19, 4   ;;  %s4784_s30 = smov %s3590_s10 }
 0x4d7   : > { %s4785_s10 = smov %s3594_s11  ;;  %s4786_s11 = smov %s3897_s21 }
 0x4d8   : > { %s4787_s12 = smov %s3886_s19  ;;  %28 = sbr.rel (!%p26_p10) target bundleno = 13 (0xd), region = 136 }
 0x4df   :  { %2533 = vsyncpa [#allocation4], 1 }
 0x4e0   :  { %2535 = vsyncpa [#allocation4 + $0x1], 1 }
 0x4e1   :  { %2536 = vsyncpa [#allocation7], 1 }
 0x4e2   :  { %2537 = vsyncpa [#allocation10], 1 }
 0x4e3   :  { %2538 = vsyncpa [#allocation13], 1 }
 0x4e4   :  { %2539 = vsyncpa [#allocation16], 1 }
 0x4e5   :  { %2540 = vsyncpa [#allocation5], 1 }
 0x4e6   :  { %2542 = vsyncpa [#allocation5 + $0x1], 1 }

</bundles_post_ra>
